<compile_context>
chip_gen: v7x
topology: tpu7x:2x2x1
jax: 0.10.0
libtpu: 0.0.40
codegen_flags: <defaults>
</compile_context>

<pallas_src>
import functools

import jax
import jax.numpy as jnp
from jax.experimental import pallas as pl
from jax.experimental.pallas import tpu as pltpu


def _round_up(n, m):
    return ((n + m - 1) // m) * m


# ----------------------------------------------------------------------------
# Pallas kernel: stacked LSTM over time + final linear layer, all in VMEM.
# ----------------------------------------------------------------------------
def _dqn_kernel(*refs, num_layers, seq_len, batch_pad, hidden_pad):
    # refs = [x_flat,
    #         w_ih0, w_hh0, b0,
    #         (w_cat_1, b_1), ..., (w_cat_{L-1}, b_{L-1}),
    #         fc_w, fc_b,
    #         out_ref]
    T, Bp, Hp = seq_len, batch_pad, hidden_pad

    x_ref = refs[0]
    w_ih0_ref, w_hh0_ref, b0_ref = refs[1], refs[2], refs[3]
    pos = 4
    wcat_refs, bcat_refs = [], []
    for _ in range(num_layers - 1):
        wcat_refs.append(refs[pos])
        bcat_refs.append(refs[pos + 1])
        pos += 2
    fc_w_ref, fc_b_ref, out_ref = refs[pos], refs[pos + 1], refs[pos + 2]

    # Load weights once; reused by every unrolled timestep.
    w_hh0 = w_hh0_ref[...]                         # (Hp, 4Hp)  bf16
    wcats = [r[...] for r in wcat_refs]            # (2Hp, 4Hp) bf16
    bcats = [r[...] for r in bcat_refs]            # (1, 4Hp)   f32

    # Hoisted layer-0 input projection: ONE GEMM covering all timesteps.
    zx0 = jnp.dot(x_ref[...], w_ih0_ref[...],
                  preferred_element_type=jnp.float32) + b0_ref[...]   # (T*Bp, 4Hp)

    def lstm_cell(z, c):
        # Gate layout after wrapper repack: [i | f | o | g], each Hp lanes.
        sig = jax.nn.sigmoid(z[:, :3 * Hp])        # one EUP pass: i, f, o
        g_g = jnp.tanh(z[:, 3 * Hp:])              # one EUP pass: g
        i_g = sig[:, 0 * Hp:1 * Hp]
        f_g = sig[:, 1 * Hp:2 * Hp]
        o_g = sig[:, 2 * Hp:3 * Hp]
        c_new = f_g * c + i_g * g_g
        h_new = o_g * jnp.tanh(c_new)
        return h_new, c_new

    h = [jnp.zeros((Bp, Hp), jnp.float32) for _ in range(num_layers)]
    c = [jnp.zeros((Bp, Hp), jnp.float32) for _ in range(num_layers)]

    for t in range(T):   # fully unrolled serial recurrence (T static, small)
        # Layer 0: input term precomputed, only h @ w_hh on the serial chain.
        # Slice is 8-sublane aligned (Bp == 8): whole tiles, no masking.
        z0 = zx0[t * Bp:(t + 1) * Bp, :] + jnp.dot(
            h[0].astype(jnp.bfloat16), w_hh0, preferred_element_type=jnp.float32)
        h[0], c[0] = lstm_cell(z0, c[0])

        # Layers l > 0: fused recurrent+input GEMM.  Depends only on the layer
        # below at THIS timestep -> time/layer wavefront in the unrolled DAG.
        for l in range(1, num_layers):
            lhs = jnp.concatenate([h[l], h[l - 1]], axis=1).astype(jnp.bfloat16)
            z = jnp.dot(lhs, wcats[l - 1],
                        preferred_element_type=jnp.float32) + bcats[l - 1]
            h[l], c[l] = lstm_cell(z, c[l])

    # Linear head on the last timestep of the top layer (lane-dense store).
    out_ref[...] = (
        jnp.dot(h[num_layers - 1].astype(jnp.bfloat16), fc_w_ref[...],
                preferred_element_type=jnp.float32) + fc_b_ref[...])


# ----------------------------------------------------------------------------
# One-time parameter packing: transpose, reorder gates [i,f,g,o] -> [i,f,o,g],
# pad each gate / hidden / action dim to 128 lanes, fuse w_hh/w_ih for l > 0,
# cast weights to bf16.  Runs once, outside the per-call path.
# ----------------------------------------------------------------------------
def prepare_params(lstm_params, fc_w, fc_b, hidden_size):
    H = hidden_size
    Hp = _round_up(max(H, 128), 128)
    A = fc_w.shape[0]
    Ap = _round_up(max(A, 128), 128)

    def pack_gate_cols(w_t):
        # w_t: (rows, 4H), column blocks [i, f, g, o] -> (rows, 4Hp) [i, f, o, g]
        rows = w_t.shape[0]
        blocks = [w_t[:, 0 * H:1 * H],   # i
                  w_t[:, 1 * H:2 * H],   # f
                  w_t[:, 3 * H:4 * H],   # o
                  w_t[:, 2 * H:3 * H]]   # g
        out = jnp.zeros((rows, 4 * Hp), jnp.float32)
        for k, blk in enumerate(blocks):
            out = out.at[:, k * Hp:k * Hp + H].set(blk.astype(jnp.float32))
        return out

    packed = []
    for li, (w_ih, w_hh, b_ih, b_hh) in enumerate(lstm_params):
        w_ih_t = pack_gate_cols(jnp.transpose(w_ih).astype(jnp.float32))  # (d_in, 4Hp)
        w_hh_t = pack_gate_cols(jnp.transpose(w_hh).astype(jnp.float32))  # (H, 4Hp)
        b_p = pack_gate_cols((b_ih + b_hh).reshape(1, -1).astype(jnp.float32))
        if li == 0:
            w_hh0 = jnp.zeros((Hp, 4 * Hp), jnp.float32).at[:H].set(w_hh_t)
            packed += [w_ih_t.astype(jnp.bfloat16),
                       w_hh0.astype(jnp.bfloat16),
                       b_p]
        else:
            # Fused weight for LHS [h_l(t-1) ; h_{l-1}(t)] (each half Hp lanes,
            # only the first H lanes of each half are nonzero -> exact).
            w_cat = jnp.zeros((2 * Hp, 4 * Hp), jnp.float32)
            w_cat = w_cat.at[0:H].set(w_hh_t)            # recurrent part
            w_cat = w_cat.at[Hp:Hp + H].set(w_ih_t)      # input (= H) part
            packed += [w_cat.astype(jnp.bfloat16), b_p]

    fc_w_t = jnp.transpose(fc_w).astype(jnp.float32)                      # (H, A)
    fc_w_p = jnp.zeros((Hp, Ap), jnp.float32).at[:H, :A].set(fc_w_t)
    fc_b_p = jnp.zeros((1, Ap), jnp.float32).at[0, :A].set(fc_b.astype(jnp.float32))
    packed += [fc_w_p.astype(jnp.bfloat16), fc_b_p]
    return tuple(packed), Hp, Ap


# ----------------------------------------------------------------------------
# Per-call wrapper: only x is transformed per call; weights were packed once.
# ----------------------------------------------------------------------------
def dqn_forward(x, packed_params, *, num_layers, hidden_pad, num_actions,
                action_pad):
    """x: (B, T, D) float32, batch-first like PyTorch."""
    B, T, D = x.shape
    Bp = _round_up(max(B, 8), 8)
    # Time-major, batch padded to a full 8-sublane tile; row index = t*Bp + b.
    x_tm = jnp.transpose(x, (1, 0, 2)).astype(jnp.float32)            # (T, B, D)
    x_pad = jnp.zeros((T, Bp, D), jnp.float32).at[:, :B, :].set(x_tm)
    x_flat = x_pad.reshape(T * Bp, D).astype(jnp.bfloat16)

    kernel = functools.partial(
        _dqn_kernel, num_layers=num_layers, seq_len=T, batch_pad=Bp,
        hidden_pad=hidden_pad)

    args = (x_flat,) + tuple(packed_params)
    out_pad = pl.pallas_call(
        kernel,
        out_shape=jax.ShapeDtypeStruct((Bp, action_pad), jnp.float32),
        in_specs=[pl.BlockSpec(memory_space=pltpu.MemorySpace.VMEM)] * len(args),
        out_specs=pl.BlockSpec(memory_space=pltpu.MemorySpace.VMEM),
    )(*args)
    # TODO(synk): on v7x with large serving batches (Bp >= 16), add a batch
    # grid axis with dimension_semantics=("parallel",) to use both TensorCores;
    # at B=2 a grid only adds per-iteration overhead.
    return out_pad[:B, :num_actions]


# ----------------------------------------------------------------------------
# Pure-JAX f32 reference (mirrors torch.nn.LSTM batch_first + nn.Linear).
# ----------------------------------------------------------------------------
def dqn_reference(x, lstm_params, fc_w, fc_b):
    B, T, _ = x.shape
    seq = x.astype(jnp.float32)
    for (w_ih, w_hh, b_ih, b_hh) in lstm_params:
        H = w_hh.shape[1]
        h = jnp.zeros((B, H), jnp.float32)
        c = jnp.zeros((B, H), jnp.float32)
        outs = []
        for t in range(T):
            z = seq[:, t, :] @ w_ih.T + b_ih + h @ w_hh.T + b_hh
            i = jax.nn.sigmoid(z[:, 0 * H:1 * H])
            f = jax.nn.sigmoid(z[:, 1 * H:2 * H])
            g = jnp.tanh(z[:, 2 * H:3 * H])
            o = jax.nn.sigmoid(z[:, 3 * H:4 * H])
            c = f * c + i * g
            h = o * jnp.tanh(c)
            outs.append(h)
        seq = jnp.stack(outs, axis=1)
    return seq[:, -1, :] @ fc_w.T + fc_b


# ----------------------------------------------------------------------------
# Deterministic parameter init (PyTorch-style uniform(-1/sqrt(H), 1/sqrt(H))).
# ----------------------------------------------------------------------------
def init_params(key, input_size, hidden_size, lstm_layers, num_actions):
    H = hidden_size
    bound = 1.0 / jnp.sqrt(jnp.float32(H))
    lstm_params = []
    for l in range(lstm_layers):
        d_in = input_size if l == 0 else H
        key, k1, k2, k3, k4 = jax.random.split(key, 5)
        w_ih = jax.random.uniform(k1, (4 * H, d_in), jnp.float32, -bound, bound)
        w_hh = jax.random.uniform(k2, (4 * H, H), jnp.float32, -bound, bound)
        b_ih = jax.random.uniform(k3, (4 * H,), jnp.float32, -bound, bound)
        b_hh = jax.random.uniform(k4, (4 * H,), jnp.float32, -bound, bound)
        lstm_params.append((w_ih, w_hh, b_ih, b_hh))
    key, k5, k6 = jax.random.split(key, 3)
    fc_w = jax.random.uniform(k5, (num_actions, H), jnp.float32, -bound, bound)
    fc_b = jax.random.uniform(k6, (num_actions,), jnp.float32, -bound, bound)
    return lstm_params, fc_w, fc_b


if __name__ == "__main__":
    # Small shapes consistent with the module's forward: x is (batch, seq, input_size).
    B, T = 2, 8
    input_size, hidden_size, lstm_layers, num_actions = 16, 32, 2, 4

    key = jax.random.PRNGKey(0)
    key, kx = jax.random.split(key)
    x = jax.random.normal(kx, (B, T, input_size), jnp.float32)

    lstm_params, fc_w, fc_b = init_params(
        key, input_size, hidden_size, lstm_layers, num_actions
    )

    # Weights packed / transposed / padded / bf16-cast ONCE, outside the call path.
    packed_params, Hp, Ap = prepare_params(lstm_params, fc_w, fc_b, hidden_size)

    out = dqn_forward(
        x, packed_params,
        num_layers=lstm_layers, hidden_pad=Hp,
        num_actions=num_actions, action_pad=Ap,
    )
    out = jax.block_until_ready(out)

    ref = dqn_reference(x, lstm_params, fc_w, fc_b)
    assert out.shape == (B, num_actions), out.shape
    # bf16 matmul operands (f32 accumulate / f32 gate math) -> tolerance relaxed
    # vs the pure-f32 version, per the perf review.
    assert jnp.allclose(out, ref, atol=3e-2, rtol=3e-2), (
        f"mismatch: max abs err {jnp.max(jnp.abs(out - ref))}"
    )

    print("KERNEL_OK")
</pallas_src>

<mosaic_0001>
module attributes {stable_mosaic.version = 11 : i64} {
  func.func @_dqn_kernel(%arg0: memref<64x16xbf16, #tpu.memory_space<vmem>>, %arg1: memref<16x512xbf16, #tpu.memory_space<vmem>>, %arg2: memref<128x512xbf16, #tpu.memory_space<vmem>>, %arg3: memref<1x512xf32, #tpu.memory_space<vmem>>, %arg4: memref<256x512xbf16, #tpu.memory_space<vmem>>, %arg5: memref<1x512xf32, #tpu.memory_space<vmem>>, %arg6: memref<128x128xbf16, #tpu.memory_space<vmem>>, %arg7: memref<1x128xf32, #tpu.memory_space<vmem>>, %arg8: memref<8x128xf32, #tpu.memory_space<vmem>>) attributes {dimension_semantics = [], scalar_prefetch = 0 : i64, scratch_operands = 0 : i64, tpu.core_type = #tpu.core_type<tc>} {
    %c0 = arith.constant 0 : index
    %c0_0 = arith.constant 0 : index
    %0 = vector.load %arg2[%c0, %c0_0] : memref<128x512xbf16, #tpu.memory_space<vmem>>, vector<128x512xbf16>
    %c0_1 = arith.constant 0 : index
    %c0_2 = arith.constant 0 : index
    %1 = vector.load %arg4[%c0_1, %c0_2] : memref<256x512xbf16, #tpu.memory_space<vmem>>, vector<256x512xbf16>
    %c0_3 = arith.constant 0 : index
    %c0_4 = arith.constant 0 : index
    %2 = vector.load %arg5[%c0_3, %c0_4] : memref<1x512xf32, #tpu.memory_space<vmem>>, vector<1x512xf32>
    %c0_5 = arith.constant 0 : index
    %c0_6 = arith.constant 0 : index
    %3 = vector.load %arg0[%c0_5, %c0_6] : memref<64x16xbf16, #tpu.memory_space<vmem>>, vector<64x16xbf16>
    %c0_7 = arith.constant 0 : index
    %c0_8 = arith.constant 0 : index
    %4 = vector.load %arg1[%c0_7, %c0_8] : memref<16x512xbf16, #tpu.memory_space<vmem>>, vector<16x512xbf16>
    %cst = arith.constant dense<0.000000e+00> : vector<64x512xf32>
    %5 = tpu.matmul %3, %4, %cst {dimension_numbers = #tpu.dot_dimension_numbers<[1], [0], [0], [1], [0, 0, 1, 1], [], []>} : vector<64x16xbf16>, vector<16x512xbf16>, vector<64x512xf32> -> vector<64x512xf32>
    %c0_9 = arith.constant 0 : index
    %c0_10 = arith.constant 0 : index
    %6 = vector.load %arg3[%c0_9, %c0_10] : memref<1x512xf32, #tpu.memory_space<vmem>>, vector<1x512xf32>
    %7 = vector.broadcast %6 : vector<1x512xf32> to vector<64x512xf32>
    %8 = arith.addf %5, %7 : vector<64x512xf32>
    %cst_11 = arith.constant 0.000000e+00 : f32
    %9 = vector.broadcast %cst_11 : f32 to vector<8x128xf32>
    %cst_12 = arith.constant 0.000000e+00 : f32
    %10 = vector.broadcast %cst_12 : f32 to vector<8x128xf32>
    %cst_13 = arith.constant 0.000000e+00 : f32
    %11 = vector.broadcast %cst_13 : f32 to vector<8x128xf32>
    %cst_14 = arith.constant 0.000000e+00 : f32
    %12 = vector.broadcast %cst_14 : f32 to vector<8x128xf32>
    %13 = vector.extract_strided_slice %8 {offsets = [0, 0], sizes = [8, 512], strides = [1, 1]} : vector<64x512xf32> to vector<8x512xf32>
    %14 = arith.truncf %9 : vector<8x128xf32> to vector<8x128xbf16>
    %cst_15 = arith.constant dense<0.000000e+00> : vector<8x512xf32>
    %15 = tpu.matmul %14, %0, %cst_15 {dimension_numbers = #tpu.dot_dimension_numbers<[1], [0], [0], [1], [0, 0, 1, 1], [], []>} : vector<8x128xbf16>, vector<128x512xbf16>, vector<8x512xf32> -> vector<8x512xf32>
    %16 = arith.addf %13, %15 : vector<8x512xf32>
    %17 = vector.extract_strided_slice %16 {offsets = [0, 0], sizes = [8, 384], strides = [1, 1]} : vector<8x512xf32> to vector<8x384xf32>
    %18 = arith.negf %17 : vector<8x384xf32>
    %19 = math.exp %18 : vector<8x384xf32>
    %cst_16 = arith.constant 1.000000e+00 : f32
    %20 = vector.broadcast %cst_16 : f32 to vector<8x384xf32>
    %21 = arith.addf %20, %19 : vector<8x384xf32>
    %22 = arith.divf %20, %21 : vector<8x384xf32>
    %23 = vector.extract_strided_slice %16 {offsets = [0, 384], sizes = [8, 128], strides = [1, 1]} : vector<8x512xf32> to vector<8x128xf32>
    %24 = math.tanh %23 : vector<8x128xf32>
    %25 = vector.extract_strided_slice %22 {offsets = [0, 0], sizes = [8, 128], strides = [1, 1]} : vector<8x384xf32> to vector<8x128xf32>
    %26 = vector.extract_strided_slice %22 {offsets = [0, 128], sizes = [8, 128], strides = [1, 1]} : vector<8x384xf32> to vector<8x128xf32>
    %27 = vector.extract_strided_slice %22 {offsets = [0, 256], sizes = [8, 128], strides = [1, 1]} : vector<8x384xf32> to vector<8x128xf32>
    %28 = arith.mulf %26, %11 : vector<8x128xf32>
    %29 = arith.mulf %25, %24 : vector<8x128xf32>
    %30 = arith.addf %28, %29 : vector<8x128xf32>
    %31 = math.tanh %30 : vector<8x128xf32>
    %32 = arith.mulf %27, %31 : vector<8x128xf32>
    %33 = tpu.concatenate %10, %32 in 1 : vector<8x128xf32>, vector<8x128xf32> -> vector<8x256xf32>
    %34 = arith.truncf %33 : vector<8x256xf32> to vector<8x256xbf16>
    %cst_17 = arith.constant dense<0.000000e+00> : vector<8x512xf32>
    %35 = tpu.matmul %34, %1, %cst_17 {dimension_numbers = #tpu.dot_dimension_numbers<[1], [0], [0], [1], [0, 0, 1, 1], [], []>} : vector<8x256xbf16>, vector<256x512xbf16>, vector<8x512xf32> -> vector<8x512xf32>
    %36 = vector.broadcast %2 : vector<1x512xf32> to vector<8x512xf32>
    %37 = arith.addf %35, %36 : vector<8x512xf32>
    %38 = vector.extract_strided_slice %37 {offsets = [0, 0], sizes = [8, 384], strides = [1, 1]} : vector<8x512xf32> to vector<8x384xf32>
    %39 = arith.negf %38 : vector<8x384xf32>
    %40 = math.exp %39 : vector<8x384xf32>
    %cst_18 = arith.constant 1.000000e+00 : f32
    %41 = vector.broadcast %cst_18 : f32 to vector<8x384xf32>
    %42 = arith.addf %41, %40 : vector<8x384xf32>
    %43 = arith.divf %41, %42 : vector<8x384xf32>
    %44 = vector.extract_strided_slice %37 {offsets = [0, 384], sizes = [8, 128], strides = [1, 1]} : vector<8x512xf32> to vector<8x128xf32>
    %45 = math.tanh %44 : vector<8x128xf32>
    %46 = vector.extract_strided_slice %43 {offsets = [0, 0], sizes = [8, 128], strides = [1, 1]} : vector<8x384xf32> to vector<8x128xf32>
    %47 = vector.extract_strided_slice %43 {offsets = [0, 128], sizes = [8, 128], strides = [1, 1]} : vector<8x384xf32> to vector<8x128xf32>
    %48 = vector.extract_strided_slice %43 {offsets = [0, 256], sizes = [8, 128], strides = [1, 1]} : vector<8x384xf32> to vector<8x128xf32>
    %49 = arith.mulf %47, %12 : vector<8x128xf32>
    %50 = arith.mulf %46, %45 : vector<8x128xf32>
    %51 = arith.addf %49, %50 : vector<8x128xf32>
    %52 = math.tanh %51 : vector<8x128xf32>
    %53 = arith.mulf %48, %52 : vector<8x128xf32>
    %54 = vector.extract_strided_slice %8 {offsets = [8, 0], sizes = [8, 512], strides = [1, 1]} : vector<64x512xf32> to vector<8x512xf32>
    %55 = arith.truncf %32 : vector<8x128xf32> to vector<8x128xbf16>
    %cst_19 = arith.constant dense<0.000000e+00> : vector<8x512xf32>
    %56 = tpu.matmul %55, %0, %cst_19 {dimension_numbers = #tpu.dot_dimension_numbers<[1], [0], [0], [1], [0, 0, 1, 1], [], []>} : vector<8x128xbf16>, vector<128x512xbf16>, vector<8x512xf32> -> vector<8x512xf32>
    %57 = arith.addf %54, %56 : vector<8x512xf32>
    %58 = vector.extract_strided_slice %57 {offsets = [0, 0], sizes = [8, 384], strides = [1, 1]} : vector<8x512xf32> to vector<8x384xf32>
    %59 = arith.negf %58 : vector<8x384xf32>
    %60 = math.exp %59 : vector<8x384xf32>
    %cst_20 = arith.constant 1.000000e+00 : f32
    %61 = vector.broadcast %cst_20 : f32 to vector<8x384xf32>
    %62 = arith.addf %61, %60 : vector<8x384xf32>
    %63 = arith.divf %61, %62 : vector<8x384xf32>
    %64 = vector.extract_strided_slice %57 {offsets = [0, 384], sizes = [8, 128], strides = [1, 1]} : vector<8x512xf32> to vector<8x128xf32>
    %65 = math.tanh %64 : vector<8x128xf32>
    %66 = vector.extract_strided_slice %63 {offsets = [0, 0], sizes = [8, 128], strides = [1, 1]} : vector<8x384xf32> to vector<8x128xf32>
    %67 = vector.extract_strided_slice %63 {offsets = [0, 128], sizes = [8, 128], strides = [1, 1]} : vector<8x384xf32> to vector<8x128xf32>
    %68 = vector.extract_strided_slice %63 {offsets = [0, 256], sizes = [8, 128], strides = [1, 1]} : vector<8x384xf32> to vector<8x128xf32>
    %69 = arith.mulf %67, %30 : vector<8x128xf32>
    %70 = arith.mulf %66, %65 : vector<8x128xf32>
    %71 = arith.addf %69, %70 : vector<8x128xf32>
    %72 = math.tanh %71 : vector<8x128xf32>
    %73 = arith.mulf %68, %72 : vector<8x128xf32>
    %74 = tpu.concatenate %53, %73 in 1 : vector<8x128xf32>, vector<8x128xf32> -> vector<8x256xf32>
    %75 = arith.truncf %74 : vector<8x256xf32> to vector<8x256xbf16>
    %cst_21 = arith.constant dense<0.000000e+00> : vector<8x512xf32>
    %76 = tpu.matmul %75, %1, %cst_21 {dimension_numbers = #tpu.dot_dimension_numbers<[1], [0], [0], [1], [0, 0, 1, 1], [], []>} : vector<8x256xbf16>, vector<256x512xbf16>, vector<8x512xf32> -> vector<8x512xf32>
    %77 = vector.broadcast %2 : vector<1x512xf32> to vector<8x512xf32>
    %78 = arith.addf %76, %77 : vector<8x512xf32>
    %79 = vector.extract_strided_slice %78 {offsets = [0, 0], sizes = [8, 384], strides = [1, 1]} : vector<8x512xf32> to vector<8x384xf32>
    %80 = arith.negf %79 : vector<8x384xf32>
    %81 = math.exp %80 : vector<8x384xf32>
    %cst_22 = arith.constant 1.000000e+00 : f32
    %82 = vector.broadcast %cst_22 : f32 to vector<8x384xf32>
    %83 = arith.addf %82, %81 : vector<8x384xf32>
    %84 = arith.divf %82, %83 : vector<8x384xf32>
    %85 = vector.extract_strided_slice %78 {offsets = [0, 384], sizes = [8, 128], strides = [1, 1]} : vector<8x512xf32> to vector<8x128xf32>
    %86 = math.tanh %85 : vector<8x128xf32>
    %87 = vector.extract_strided_slice %84 {offsets = [0, 0], sizes = [8, 128], strides = [1, 1]} : vector<8x384xf32> to vector<8x128xf32>
    %88 = vector.extract_strided_slice %84 {offsets = [0, 128], sizes = [8, 128], strides = [1, 1]} : vector<8x384xf32> to vector<8x128xf32>
    %89 = vector.extract_strided_slice %84 {offsets = [0, 256], sizes = [8, 128], strides = [1, 1]} : vector<8x384xf32> to vector<8x128xf32>
    %90 = arith.mulf %88, %51 : vector<8x128xf32>
    %91 = arith.mulf %87, %86 : vector<8x128xf32>
    %92 = arith.addf %90, %91 : vector<8x128xf32>
    %93 = math.tanh %92 : vector<8x128xf32>
    %94 = arith.mulf %89, %93 : vector<8x128xf32>
    %95 = vector.extract_strided_slice %8 {offsets = [16, 0], sizes = [8, 512], strides = [1, 1]} : vector<64x512xf32> to vector<8x512xf32>
    %96 = arith.truncf %73 : vector<8x128xf32> to vector<8x128xbf16>
    %cst_23 = arith.constant dense<0.000000e+00> : vector<8x512xf32>
    %97 = tpu.matmul %96, %0, %cst_23 {dimension_numbers = #tpu.dot_dimension_numbers<[1], [0], [0], [1], [0, 0, 1, 1], [], []>} : vector<8x128xbf16>, vector<128x512xbf16>, vector<8x512xf32> -> vector<8x512xf32>
    %98 = arith.addf %95, %97 : vector<8x512xf32>
    %99 = vector.extract_strided_slice %98 {offsets = [0, 0], sizes = [8, 384], strides = [1, 1]} : vector<8x512xf32> to vector<8x384xf32>
    %100 = arith.negf %99 : vector<8x384xf32>
    %101 = math.exp %100 : vector<8x384xf32>
    %cst_24 = arith.constant 1.000000e+00 : f32
    %102 = vector.broadcast %cst_24 : f32 to vector<8x384xf32>
    %103 = arith.addf %102, %101 : vector<8x384xf32>
    %104 = arith.divf %102, %103 : vector<8x384xf32>
    %105 = vector.extract_strided_slice %98 {offsets = [0, 384], sizes = [8, 128], strides = [1, 1]} : vector<8x512xf32> to vector<8x128xf32>
    %106 = math.tanh %105 : vector<8x128xf32>
    %107 = vector.extract_strided_slice %104 {offsets = [0, 0], sizes = [8, 128], strides = [1, 1]} : vector<8x384xf32> to vector<8x128xf32>
    %108 = vector.extract_strided_slice %104 {offsets = [0, 128], sizes = [8, 128], strides = [1, 1]} : vector<8x384xf32> to vector<8x128xf32>
    %109 = vector.extract_strided_slice %104 {offsets = [0, 256], sizes = [8, 128], strides = [1, 1]} : vector<8x384xf32> to vector<8x128xf32>
    %110 = arith.mulf %108, %71 : vector<8x128xf32>
    %111 = arith.mulf %107, %106 : vector<8x128xf32>
    %112 = arith.addf %110, %111 : vector<8x128xf32>
    %113 = math.tanh %112 : vector<8x128xf32>
    %114 = arith.mulf %109, %113 : vector<8x128xf32>
    %115 = tpu.concatenate %94, %114 in 1 : vector<8x128xf32>, vector<8x128xf32> -> vector<8x256xf32>
    %116 = arith.truncf %115 : vector<8x256xf32> to vector<8x256xbf16>
    %cst_25 = arith.constant dense<0.000000e+00> : vector<8x512xf32>
    %117 = tpu.matmul %116, %1, %cst_25 {dimension_numbers = #tpu.dot_dimension_numbers<[1], [0], [0], [1], [0, 0, 1, 1], [], []>} : vector<8x256xbf16>, vector<256x512xbf16>, vector<8x512xf32> -> vector<8x512xf32>
    %118 = vector.broadcast %2 : vector<1x512xf32> to vector<8x512xf32>
    %119 = arith.addf %117, %118 : vector<8x512xf32>
    %120 = vector.extract_strided_slice %119 {offsets = [0, 0], sizes = [8, 384], strides = [1, 1]} : vector<8x512xf32> to vector<8x384xf32>
    %121 = arith.negf %120 : vector<8x384xf32>
    %122 = math.exp %121 : vector<8x384xf32>
    %cst_26 = arith.constant 1.000000e+00 : f32
    %123 = vector.broadcast %cst_26 : f32 to vector<8x384xf32>
    %124 = arith.addf %123, %122 : vector<8x384xf32>
    %125 = arith.divf %123, %124 : vector<8x384xf32>
    %126 = vector.extract_strided_slice %119 {offsets = [0, 384], sizes = [8, 128], strides = [1, 1]} : vector<8x512xf32> to vector<8x128xf32>
    %127 = math.tanh %126 : vector<8x128xf32>
    %128 = vector.extract_strided_slice %125 {offsets = [0, 0], sizes = [8, 128], strides = [1, 1]} : vector<8x384xf32> to vector<8x128xf32>
    %129 = vector.extract_strided_slice %125 {offsets = [0, 128], sizes = [8, 128], strides = [1, 1]} : vector<8x384xf32> to vector<8x128xf32>
    %130 = vector.extract_strided_slice %125 {offsets = [0, 256], sizes = [8, 128], strides = [1, 1]} : vector<8x384xf32> to vector<8x128xf32>
    %131 = arith.mulf %129, %92 : vector<8x128xf32>
    %132 = arith.mulf %128, %127 : vector<8x128xf32>
    %133 = arith.addf %131, %132 : vector<8x128xf32>
    %134 = math.tanh %133 : vector<8x128xf32>
    %135 = arith.mulf %130, %134 : vector<8x128xf32>
    %136 = vector.extract_strided_slice %8 {offsets = [24, 0], sizes = [8, 512], strides = [1, 1]} : vector<64x512xf32> to vector<8x512xf32>
    %137 = arith.truncf %114 : vector<8x128xf32> to vector<8x128xbf16>
    %cst_27 = arith.constant dense<0.000000e+00> : vector<8x512xf32>
    %138 = tpu.matmul %137, %0, %cst_27 {dimension_numbers = #tpu.dot_dimension_numbers<[1], [0], [0], [1], [0, 0, 1, 1], [], []>} : vector<8x128xbf16>, vector<128x512xbf16>, vector<8x512xf32> -> vector<8x512xf32>
    %139 = arith.addf %136, %138 : vector<8x512xf32>
    %140 = vector.extract_strided_slice %139 {offsets = [0, 0], sizes = [8, 384], strides = [1, 1]} : vector<8x512xf32> to vector<8x384xf32>
    %141 = arith.negf %140 : vector<8x384xf32>
    %142 = math.exp %141 : vector<8x384xf32>
    %cst_28 = arith.constant 1.000000e+00 : f32
    %143 = vector.broadcast %cst_28 : f32 to vector<8x384xf32>
    %144 = arith.addf %143, %142 : vector<8x384xf32>
    %145 = arith.divf %143, %144 : vector<8x384xf32>
    %146 = vector.extract_strided_slice %139 {offsets = [0, 384], sizes = [8, 128], strides = [1, 1]} : vector<8x512xf32> to vector<8x128xf32>
    %147 = math.tanh %146 : vector<8x128xf32>
    %148 = vector.extract_strided_slice %145 {offsets = [0, 0], sizes = [8, 128], strides = [1, 1]} : vector<8x384xf32> to vector<8x128xf32>
    %149 = vector.extract_strided_slice %145 {offsets = [0, 128], sizes = [8, 128], strides = [1, 1]} : vector<8x384xf32> to vector<8x128xf32>
    %150 = vector.extract_strided_slice %145 {offsets = [0, 256], sizes = [8, 128], strides = [1, 1]} : vector<8x384xf32> to vector<8x128xf32>
    %151 = arith.mulf %149, %112 : vector<8x128xf32>
    %152 = arith.mulf %148, %147 : vector<8x128xf32>
    %153 = arith.addf %151, %152 : vector<8x128xf32>
    %154 = math.tanh %153 : vector<8x128xf32>
    %155 = arith.mulf %150, %154 : vector<8x128xf32>
    %156 = tpu.concatenate %135, %155 in 1 : vector<8x128xf32>, vector<8x128xf32> -> vector<8x256xf32>
    %157 = arith.truncf %156 : vector<8x256xf32> to vector<8x256xbf16>
    %cst_29 = arith.constant dense<0.000000e+00> : vector<8x512xf32>
    %158 = tpu.matmul %157, %1, %cst_29 {dimension_numbers = #tpu.dot_dimension_numbers<[1], [0], [0], [1], [0, 0, 1, 1], [], []>} : vector<8x256xbf16>, vector<256x512xbf16>, vector<8x512xf32> -> vector<8x512xf32>
    %159 = vector.broadcast %2 : vector<1x512xf32> to vector<8x512xf32>
    %160 = arith.addf %158, %159 : vector<8x512xf32>
    %161 = vector.extract_strided_slice %160 {offsets = [0, 0], sizes = [8, 384], strides = [1, 1]} : vector<8x512xf32> to vector<8x384xf32>
    %162 = arith.negf %161 : vector<8x384xf32>
    %163 = math.exp %162 : vector<8x384xf32>
    %cst_30 = arith.constant 1.000000e+00 : f32
    %164 = vector.broadcast %cst_30 : f32 to vector<8x384xf32>
    %165 = arith.addf %164, %163 : vector<8x384xf32>
    %166 = arith.divf %164, %165 : vector<8x384xf32>
    %167 = vector.extract_strided_slice %160 {offsets = [0, 384], sizes = [8, 128], strides = [1, 1]} : vector<8x512xf32> to vector<8x128xf32>
    %168 = math.tanh %167 : vector<8x128xf32>
    %169 = vector.extract_strided_slice %166 {offsets = [0, 0], sizes = [8, 128], strides = [1, 1]} : vector<8x384xf32> to vector<8x128xf32>
    %170 = vector.extract_strided_slice %166 {offsets = [0, 128], sizes = [8, 128], strides = [1, 1]} : vector<8x384xf32> to vector<8x128xf32>
    %171 = vector.extract_strided_slice %166 {offsets = [0, 256], sizes = [8, 128], strides = [1, 1]} : vector<8x384xf32> to vector<8x128xf32>
    %172 = arith.mulf %170, %133 : vector<8x128xf32>
    %173 = arith.mulf %169, %168 : vector<8x128xf32>
    %174 = arith.addf %172, %173 : vector<8x128xf32>
    %175 = math.tanh %174 : vector<8x128xf32>
    %176 = arith.mulf %171, %175 : vector<8x128xf32>
    %177 = vector.extract_strided_slice %8 {offsets = [32, 0], sizes = [8, 512], strides = [1, 1]} : vector<64x512xf32> to vector<8x512xf32>
    %178 = arith.truncf %155 : vector<8x128xf32> to vector<8x128xbf16>
    %cst_31 = arith.constant dense<0.000000e+00> : vector<8x512xf32>
    %179 = tpu.matmul %178, %0, %cst_31 {dimension_numbers = #tpu.dot_dimension_numbers<[1], [0], [0], [1], [0, 0, 1, 1], [], []>} : vector<8x128xbf16>, vector<128x512xbf16>, vector<8x512xf32> -> vector<8x512xf32>
    %180 = arith.addf %177, %179 : vector<8x512xf32>
    %181 = vector.extract_strided_slice %180 {offsets = [0, 0], sizes = [8, 384], strides = [1, 1]} : vector<8x512xf32> to vector<8x384xf32>
    %182 = arith.negf %181 : vector<8x384xf32>
    %183 = math.exp %182 : vector<8x384xf32>
    %cst_32 = arith.constant 1.000000e+00 : f32
    %184 = vector.broadcast %cst_32 : f32 to vector<8x384xf32>
    %185 = arith.addf %184, %183 : vector<8x384xf32>
    %186 = arith.divf %184, %185 : vector<8x384xf32>
    %187 = vector.extract_strided_slice %180 {offsets = [0, 384], sizes = [8, 128], strides = [1, 1]} : vector<8x512xf32> to vector<8x128xf32>
    %188 = math.tanh %187 : vector<8x128xf32>
    %189 = vector.extract_strided_slice %186 {offsets = [0, 0], sizes = [8, 128], strides = [1, 1]} : vector<8x384xf32> to vector<8x128xf32>
    %190 = vector.extract_strided_slice %186 {offsets = [0, 128], sizes = [8, 128], strides = [1, 1]} : vector<8x384xf32> to vector<8x128xf32>
    %191 = vector.extract_strided_slice %186 {offsets = [0, 256], sizes = [8, 128], strides = [1, 1]} : vector<8x384xf32> to vector<8x128xf32>
    %192 = arith.mulf %190, %153 : vector<8x128xf32>
    %193 = arith.mulf %189, %188 : vector<8x128xf32>
    %194 = arith.addf %192, %193 : vector<8x128xf32>
    %195 = math.tanh %194 : vector<8x128xf32>
    %196 = arith.mulf %191, %195 : vector<8x128xf32>
    %197 = tpu.concatenate %176, %196 in 1 : vector<8x128xf32>, vector<8x128xf32> -> vector<8x256xf32>
    %198 = arith.truncf %197 : vector<8x256xf32> to vector<8x256xbf16>
    %cst_33 = arith.constant dense<0.000000e+00> : vector<8x512xf32>
    %199 = tpu.matmul %198, %1, %cst_33 {dimension_numbers = #tpu.dot_dimension_numbers<[1], [0], [0], [1], [0, 0, 1, 1], [], []>} : vector<8x256xbf16>, vector<256x512xbf16>, vector<8x512xf32> -> vector<8x512xf32>
    %200 = vector.broadcast %2 : vector<1x512xf32> to vector<8x512xf32>
    %201 = arith.addf %199, %200 : vector<8x512xf32>
    %202 = vector.extract_strided_slice %201 {offsets = [0, 0], sizes = [8, 384], strides = [1, 1]} : vector<8x512xf32> to vector<8x384xf32>
    %203 = arith.negf %202 : vector<8x384xf32>
    %204 = math.exp %203 : vector<8x384xf32>
    %cst_34 = arith.constant 1.000000e+00 : f32
    %205 = vector.broadcast %cst_34 : f32 to vector<8x384xf32>
    %206 = arith.addf %205, %204 : vector<8x384xf32>
    %207 = arith.divf %205, %206 : vector<8x384xf32>
    %208 = vector.extract_strided_slice %201 {offsets = [0, 384], sizes = [8, 128], strides = [1, 1]} : vector<8x512xf32> to vector<8x128xf32>
    %209 = math.tanh %208 : vector<8x128xf32>
    %210 = vector.extract_strided_slice %207 {offsets = [0, 0], sizes = [8, 128], strides = [1, 1]} : vector<8x384xf32> to vector<8x128xf32>
    %211 = vector.extract_strided_slice %207 {offsets = [0, 128], sizes = [8, 128], strides = [1, 1]} : vector<8x384xf32> to vector<8x128xf32>
    %212 = vector.extract_strided_slice %207 {offsets = [0, 256], sizes = [8, 128], strides = [1, 1]} : vector<8x384xf32> to vector<8x128xf32>
    %213 = arith.mulf %211, %174 : vector<8x128xf32>
    %214 = arith.mulf %210, %209 : vector<8x128xf32>
    %215 = arith.addf %213, %214 : vector<8x128xf32>
    %216 = math.tanh %215 : vector<8x128xf32>
    %217 = arith.mulf %212, %216 : vector<8x128xf32>
    %218 = vector.extract_strided_slice %8 {offsets = [40, 0], sizes = [8, 512], strides = [1, 1]} : vector<64x512xf32> to vector<8x512xf32>
    %219 = arith.truncf %196 : vector<8x128xf32> to vector<8x128xbf16>
    %cst_35 = arith.constant dense<0.000000e+00> : vector<8x512xf32>
    %220 = tpu.matmul %219, %0, %cst_35 {dimension_numbers = #tpu.dot_dimension_numbers<[1], [0], [0], [1], [0, 0, 1, 1], [], []>} : vector<8x128xbf16>, vector<128x512xbf16>, vector<8x512xf32> -> vector<8x512xf32>
    %221 = arith.addf %218, %220 : vector<8x512xf32>
    %222 = vector.extract_strided_slice %221 {offsets = [0, 0], sizes = [8, 384], strides = [1, 1]} : vector<8x512xf32> to vector<8x384xf32>
    %223 = arith.negf %222 : vector<8x384xf32>
    %224 = math.exp %223 : vector<8x384xf32>
    %cst_36 = arith.constant 1.000000e+00 : f32
    %225 = vector.broadcast %cst_36 : f32 to vector<8x384xf32>
    %226 = arith.addf %225, %224 : vector<8x384xf32>
    %227 = arith.divf %225, %226 : vector<8x384xf32>
    %228 = vector.extract_strided_slice %221 {offsets = [0, 384], sizes = [8, 128], strides = [1, 1]} : vector<8x512xf32> to vector<8x128xf32>
    %229 = math.tanh %228 : vector<8x128xf32>
    %230 = vector.extract_strided_slice %227 {offsets = [0, 0], sizes = [8, 128], strides = [1, 1]} : vector<8x384xf32> to vector<8x128xf32>
    %231 = vector.extract_strided_slice %227 {offsets = [0, 128], sizes = [8, 128], strides = [1, 1]} : vector<8x384xf32> to vector<8x128xf32>
    %232 = vector.extract_strided_slice %227 {offsets = [0, 256], sizes = [8, 128], strides = [1, 1]} : vector<8x384xf32> to vector<8x128xf32>
    %233 = arith.mulf %231, %194 : vector<8x128xf32>
    %234 = arith.mulf %230, %229 : vector<8x128xf32>
    %235 = arith.addf %233, %234 : vector<8x128xf32>
    %236 = math.tanh %235 : vector<8x128xf32>
    %237 = arith.mulf %232, %236 : vector<8x128xf32>
    %238 = tpu.concatenate %217, %237 in 1 : vector<8x128xf32>, vector<8x128xf32> -> vector<8x256xf32>
    %239 = arith.truncf %238 : vector<8x256xf32> to vector<8x256xbf16>
    %cst_37 = arith.constant dense<0.000000e+00> : vector<8x512xf32>
    %240 = tpu.matmul %239, %1, %cst_37 {dimension_numbers = #tpu.dot_dimension_numbers<[1], [0], [0], [1], [0, 0, 1, 1], [], []>} : vector<8x256xbf16>, vector<256x512xbf16>, vector<8x512xf32> -> vector<8x512xf32>
    %241 = vector.broadcast %2 : vector<1x512xf32> to vector<8x512xf32>
    %242 = arith.addf %240, %241 : vector<8x512xf32>
    %243 = vector.extract_strided_slice %242 {offsets = [0, 0], sizes = [8, 384], strides = [1, 1]} : vector<8x512xf32> to vector<8x384xf32>
    %244 = arith.negf %243 : vector<8x384xf32>
    %245 = math.exp %244 : vector<8x384xf32>
    %cst_38 = arith.constant 1.000000e+00 : f32
    %246 = vector.broadcast %cst_38 : f32 to vector<8x384xf32>
    %247 = arith.addf %246, %245 : vector<8x384xf32>
    %248 = arith.divf %246, %247 : vector<8x384xf32>
    %249 = vector.extract_strided_slice %242 {offsets = [0, 384], sizes = [8, 128], strides = [1, 1]} : vector<8x512xf32> to vector<8x128xf32>
    %250 = math.tanh %249 : vector<8x128xf32>
    %251 = vector.extract_strided_slice %248 {offsets = [0, 0], sizes = [8, 128], strides = [1, 1]} : vector<8x384xf32> to vector<8x128xf32>
    %252 = vector.extract_strided_slice %248 {offsets = [0, 128], sizes = [8, 128], strides = [1, 1]} : vector<8x384xf32> to vector<8x128xf32>
    %253 = vector.extract_strided_slice %248 {offsets = [0, 256], sizes = [8, 128], strides = [1, 1]} : vector<8x384xf32> to vector<8x128xf32>
    %254 = arith.mulf %252, %215 : vector<8x128xf32>
    %255 = arith.mulf %251, %250 : vector<8x128xf32>
    %256 = arith.addf %254, %255 : vector<8x128xf32>
    %257 = math.tanh %256 : vector<8x128xf32>
    %258 = arith.mulf %253, %257 : vector<8x128xf32>
    %259 = vector.extract_strided_slice %8 {offsets = [48, 0], sizes = [8, 512], strides = [1, 1]} : vector<64x512xf32> to vector<8x512xf32>
    %260 = arith.truncf %237 : vector<8x128xf32> to vector<8x128xbf16>
    %cst_39 = arith.constant dense<0.000000e+00> : vector<8x512xf32>
    %261 = tpu.matmul %260, %0, %cst_39 {dimension_numbers = #tpu.dot_dimension_numbers<[1], [0], [0], [1], [0, 0, 1, 1], [], []>} : vector<8x128xbf16>, vector<128x512xbf16>, vector<8x512xf32> -> vector<8x512xf32>
    %262 = arith.addf %259, %261 : vector<8x512xf32>
    %263 = vector.extract_strided_slice %262 {offsets = [0, 0], sizes = [8, 384], strides = [1, 1]} : vector<8x512xf32> to vector<8x384xf32>
    %264 = arith.negf %263 : vector<8x384xf32>
    %265 = math.exp %264 : vector<8x384xf32>
    %cst_40 = arith.constant 1.000000e+00 : f32
    %266 = vector.broadcast %cst_40 : f32 to vector<8x384xf32>
    %267 = arith.addf %266, %265 : vector<8x384xf32>
    %268 = arith.divf %266, %267 : vector<8x384xf32>
    %269 = vector.extract_strided_slice %262 {offsets = [0, 384], sizes = [8, 128], strides = [1, 1]} : vector<8x512xf32> to vector<8x128xf32>
    %270 = math.tanh %269 : vector<8x128xf32>
    %271 = vector.extract_strided_slice %268 {offsets = [0, 0], sizes = [8, 128], strides = [1, 1]} : vector<8x384xf32> to vector<8x128xf32>
    %272 = vector.extract_strided_slice %268 {offsets = [0, 128], sizes = [8, 128], strides = [1, 1]} : vector<8x384xf32> to vector<8x128xf32>
    %273 = vector.extract_strided_slice %268 {offsets = [0, 256], sizes = [8, 128], strides = [1, 1]} : vector<8x384xf32> to vector<8x128xf32>
    %274 = arith.mulf %272, %235 : vector<8x128xf32>
    %275 = arith.mulf %271, %270 : vector<8x128xf32>
    %276 = arith.addf %274, %275 : vector<8x128xf32>
    %277 = math.tanh %276 : vector<8x128xf32>
    %278 = arith.mulf %273, %277 : vector<8x128xf32>
    %279 = tpu.concatenate %258, %278 in 1 : vector<8x128xf32>, vector<8x128xf32> -> vector<8x256xf32>
    %280 = arith.truncf %279 : vector<8x256xf32> to vector<8x256xbf16>
    %cst_41 = arith.constant dense<0.000000e+00> : vector<8x512xf32>
    %281 = tpu.matmul %280, %1, %cst_41 {dimension_numbers = #tpu.dot_dimension_numbers<[1], [0], [0], [1], [0, 0, 1, 1], [], []>} : vector<8x256xbf16>, vector<256x512xbf16>, vector<8x512xf32> -> vector<8x512xf32>
    %282 = vector.broadcast %2 : vector<1x512xf32> to vector<8x512xf32>
    %283 = arith.addf %281, %282 : vector<8x512xf32>
    %284 = vector.extract_strided_slice %283 {offsets = [0, 0], sizes = [8, 384], strides = [1, 1]} : vector<8x512xf32> to vector<8x384xf32>
    %285 = arith.negf %284 : vector<8x384xf32>
    %286 = math.exp %285 : vector<8x384xf32>
    %cst_42 = arith.constant 1.000000e+00 : f32
    %287 = vector.broadcast %cst_42 : f32 to vector<8x384xf32>
    %288 = arith.addf %287, %286 : vector<8x384xf32>
    %289 = arith.divf %287, %288 : vector<8x384xf32>
    %290 = vector.extract_strided_slice %283 {offsets = [0, 384], sizes = [8, 128], strides = [1, 1]} : vector<8x512xf32> to vector<8x128xf32>
    %291 = math.tanh %290 : vector<8x128xf32>
    %292 = vector.extract_strided_slice %289 {offsets = [0, 0], sizes = [8, 128], strides = [1, 1]} : vector<8x384xf32> to vector<8x128xf32>
    %293 = vector.extract_strided_slice %289 {offsets = [0, 128], sizes = [8, 128], strides = [1, 1]} : vector<8x384xf32> to vector<8x128xf32>
    %294 = vector.extract_strided_slice %289 {offsets = [0, 256], sizes = [8, 128], strides = [1, 1]} : vector<8x384xf32> to vector<8x128xf32>
    %295 = arith.mulf %293, %256 : vector<8x128xf32>
    %296 = arith.mulf %292, %291 : vector<8x128xf32>
    %297 = arith.addf %295, %296 : vector<8x128xf32>
    %298 = math.tanh %297 : vector<8x128xf32>
    %299 = arith.mulf %294, %298 : vector<8x128xf32>
    %300 = vector.extract_strided_slice %8 {offsets = [56, 0], sizes = [8, 512], strides = [1, 1]} : vector<64x512xf32> to vector<8x512xf32>
    %301 = arith.truncf %278 : vector<8x128xf32> to vector<8x128xbf16>
    %cst_43 = arith.constant dense<0.000000e+00> : vector<8x512xf32>
    %302 = tpu.matmul %301, %0, %cst_43 {dimension_numbers = #tpu.dot_dimension_numbers<[1], [0], [0], [1], [0, 0, 1, 1], [], []>} : vector<8x128xbf16>, vector<128x512xbf16>, vector<8x512xf32> -> vector<8x512xf32>
    %303 = arith.addf %300, %302 : vector<8x512xf32>
    %304 = vector.extract_strided_slice %303 {offsets = [0, 0], sizes = [8, 384], strides = [1, 1]} : vector<8x512xf32> to vector<8x384xf32>
    %305 = arith.negf %304 : vector<8x384xf32>
    %306 = math.exp %305 : vector<8x384xf32>
    %cst_44 = arith.constant 1.000000e+00 : f32
    %307 = vector.broadcast %cst_44 : f32 to vector<8x384xf32>
    %308 = arith.addf %307, %306 : vector<8x384xf32>
    %309 = arith.divf %307, %308 : vector<8x384xf32>
    %310 = vector.extract_strided_slice %303 {offsets = [0, 384], sizes = [8, 128], strides = [1, 1]} : vector<8x512xf32> to vector<8x128xf32>
    %311 = math.tanh %310 : vector<8x128xf32>
    %312 = vector.extract_strided_slice %309 {offsets = [0, 0], sizes = [8, 128], strides = [1, 1]} : vector<8x384xf32> to vector<8x128xf32>
    %313 = vector.extract_strided_slice %309 {offsets = [0, 128], sizes = [8, 128], strides = [1, 1]} : vector<8x384xf32> to vector<8x128xf32>
    %314 = vector.extract_strided_slice %309 {offsets = [0, 256], sizes = [8, 128], strides = [1, 1]} : vector<8x384xf32> to vector<8x128xf32>
    %315 = arith.mulf %313, %276 : vector<8x128xf32>
    %316 = arith.mulf %312, %311 : vector<8x128xf32>
    %317 = arith.addf %315, %316 : vector<8x128xf32>
    %318 = math.tanh %317 : vector<8x128xf32>
    %319 = arith.mulf %314, %318 : vector<8x128xf32>
    %320 = tpu.concatenate %299, %319 in 1 : vector<8x128xf32>, vector<8x128xf32> -> vector<8x256xf32>
    %321 = arith.truncf %320 : vector<8x256xf32> to vector<8x256xbf16>
    %cst_45 = arith.constant dense<0.000000e+00> : vector<8x512xf32>
    %322 = tpu.matmul %321, %1, %cst_45 {dimension_numbers = #tpu.dot_dimension_numbers<[1], [0], [0], [1], [0, 0, 1, 1], [], []>} : vector<8x256xbf16>, vector<256x512xbf16>, vector<8x512xf32> -> vector<8x512xf32>
    %323 = vector.broadcast %2 : vector<1x512xf32> to vector<8x512xf32>
    %324 = arith.addf %322, %323 : vector<8x512xf32>
    %325 = vector.extract_strided_slice %324 {offsets = [0, 0], sizes = [8, 384], strides = [1, 1]} : vector<8x512xf32> to vector<8x384xf32>
    %326 = arith.negf %325 : vector<8x384xf32>
    %327 = math.exp %326 : vector<8x384xf32>
    %cst_46 = arith.constant 1.000000e+00 : f32
    %328 = vector.broadcast %cst_46 : f32 to vector<8x384xf32>
    %329 = arith.addf %328, %327 : vector<8x384xf32>
    %330 = arith.divf %328, %329 : vector<8x384xf32>
    %331 = vector.extract_strided_slice %324 {offsets = [0, 384], sizes = [8, 128], strides = [1, 1]} : vector<8x512xf32> to vector<8x128xf32>
    %332 = math.tanh %331 : vector<8x128xf32>
    %333 = vector.extract_strided_slice %330 {offsets = [0, 0], sizes = [8, 128], strides = [1, 1]} : vector<8x384xf32> to vector<8x128xf32>
    %334 = vector.extract_strided_slice %330 {offsets = [0, 128], sizes = [8, 128], strides = [1, 1]} : vector<8x384xf32> to vector<8x128xf32>
    %335 = vector.extract_strided_slice %330 {offsets = [0, 256], sizes = [8, 128], strides = [1, 1]} : vector<8x384xf32> to vector<8x128xf32>
    %336 = arith.mulf %334, %297 : vector<8x128xf32>
    %337 = arith.mulf %333, %332 : vector<8x128xf32>
    %338 = arith.addf %336, %337 : vector<8x128xf32>
    %339 = math.tanh %338 : vector<8x128xf32>
    %340 = arith.mulf %335, %339 : vector<8x128xf32>
    %341 = arith.truncf %340 : vector<8x128xf32> to vector<8x128xbf16>
    %c0_47 = arith.constant 0 : index
    %c0_48 = arith.constant 0 : index
    %342 = vector.load %arg6[%c0_47, %c0_48] : memref<128x128xbf16, #tpu.memory_space<vmem>>, vector<128x128xbf16>
    %cst_49 = arith.constant dense<0.000000e+00> : vector<8x128xf32>
    %343 = tpu.matmul %341, %342, %cst_49 {dimension_numbers = #tpu.dot_dimension_numbers<[1], [0], [0], [1], [0, 0, 1, 1], [], []>} : vector<8x128xbf16>, vector<128x128xbf16>, vector<8x128xf32> -> vector<8x128xf32>
    %c0_50 = arith.constant 0 : index
    %c0_51 = arith.constant 0 : index
    %344 = vector.load %arg7[%c0_50, %c0_51] : memref<1x128xf32, #tpu.memory_space<vmem>>, vector<1x128xf32>
    %345 = vector.broadcast %344 : vector<1x128xf32> to vector<8x128xf32>
    %346 = arith.addf %343, %345 : vector<8x128xf32>
    %c0_52 = arith.constant 0 : index
    %c0_53 = arith.constant 0 : index
    %347 = vector.load %arg8[%c0_52, %c0_53] : memref<8x128xf32, #tpu.memory_space<vmem>>, vector<8x128xf32>
    tpu.vector_store %arg8[%c0_52, %c0_53], %346 {strides = array<i32>} : memref<8x128xf32, #tpu.memory_space<vmem>>, vector<8x128xf32>,
    return
  }
}

</mosaic_0001>

<bundles_post_ra>
// kernel: tpu_custom_call.1
= control target key start
LH: loop header
LB: loop body
LE: loop exit
PB: predicated region body
PF: predicated region fallthrough
CT: control target
= control target key end

     0   :  { %13 = vsyncpa [#allocation3], 0  ;;  %s5453_s0 = inlined_call_operand.vmem [shape: bf16[64,16], index: 0, kind: input, shape index: {}]   ;;  %s5454_s1 = inlined_call_operand.vmem [shape: bf16[16,512], index: 1, kind: input, shape index: {}]   ;;  %s5455_s2 = inlined_call_operand.hbm [shape: bf16[128,512], index: 2, kind: input, shape index: {}]   ;;  %s5456_s3 = inlined_call_operand.vmem [shape: f32[1,512], index: 3, kind: input, shape index: {}]   ;;  %s5457_s4 = inlined_call_operand.hbm [shape: bf16[256,512], index: 4, kind: input, shape index: {}]   ;;  %s5458_s5 = inlined_call_operand.vmem [shape: f32[1,512], index: 5, kind: input, shape index: {}]   ;;  %s5459_s6 = inlined_call_operand.hbm [shape: bf16[128,128], index: 6, kind: input, shape index: {}]   ;;  %s5460_s7 = inlined_call_operand.vmem [shape: f32[1,128], index: 7, kind: input, shape index: {}]   ;;  %s5461_s8 = inlined_call_operand.hbm [shape: f32[8,128], index: 8, kind: output, shape index: {}]  }
   0x1   :  { %14 = vsyncpa [#allocation6], 0 }
   0x2   :  { %15 = vsyncpa [#allocation4], 0  ;;  %s3690_s27 = smov [#allocation5]   ;;  %s3691_s29 = smov [#allocation2]  }
   0x3   :  { %s39_s28 = sshll.u32 %s3690_s27, 4  ;;  %s25_s30 = sshll.u32 %s3691_s29, 4  ;;  %s40_s28 = int_to_ptr.vmem [resolvable:$true] %s39_s28  ;;  %s3747_s30 = int_to_ptr.vmem [resolvable:$true] %s25_s30 }
   0x4   :  { %s3596_s11 = scalar_lea.hbm %s5457_s4, 8192 }
   0x5   :  { %p3597_p0 = scmp.ne.s32.totalorder %s5457_s4, %s3596_s11  ;;  %p3600_p1 = scmp.lt.u32.totalorder %s3596_s11, %s5457_s4 }
   0x7   :  { %p3602_p2 = pnand %p3600_p1, %p3597_p0 }
   0x9   :  { %3605 = shalt.err (!%p3602_p2)
}
   0xa   :  { %s3606_s16 = scalar_lea.vmem %s40_s28, 8192  ;;  %p3611_p4 = scmp.lt.s32.totalorder %s40_s28, %s40_s28 }
   0xb   :  { %p3607_p3 = scmp.ne.s32.totalorder %s40_s28, %s3606_s16  ;;  %p3612_p5 = scmp.lt.s32.totalorder %s3606_s16, %s3606_s16 }
   0xd   :  { %p3613_p6 = por %p3612_p5, %p3611_p4 }
   0xf   :  { %p3614_p7 = pnand %p3613_p6, %p3607_p3 }
  0x11   :  { %3617 = shalt.err (!%p3614_p7)
}
  0x12   :  { %s3692_s17 = smov 256   ;;  %s3693_s18 = smov 16  }
  0x13   :  { %45 = dma.hbm_to_vmem [thread:$0]  %s5457_s4, 8192, %s40_s28, [#allocation6], %s3692_s17, %s3692_s17, %s3693_s18  }
  0x14   :  { %s3618_s23 = scalar_lea.hbm %s5455_s2, 4096 }
  0x15   :  { %p3619_p8 = scmp.ne.s32.totalorder %s5455_s2, %s3618_s23  ;;  %p3622_p9 = scmp.lt.u32.totalorder %s3618_s23, %s5455_s2 }
  0x17   :  { %p3624_p10 = pnand %p3622_p9, %p3619_p8 }
  0x19   :  { %3627 = shalt.err (!%p3624_p10)
}
  0x1a   :  { %s3628_s29 = scalar_lea.vmem %s3747_s30, 4096  ;;  %p3633_p12 = scmp.lt.s32.totalorder %s3747_s30, %s3747_s30 }
  0x1b   :  { %p3629_p11 = scmp.ne.s32.totalorder %s3747_s30, %s3628_s29  ;;  %p3634_p13 = scmp.lt.s32.totalorder %s3628_s29, %s3628_s29 }
  0x1d   :  { %p3635_p0 = por %p3634_p13, %p3633_p12 }
  0x1f   :  { %p3636_p1 = pnand %p3635_p0, %p3629_p11 }
  0x21   :  { %3639 = shalt.err (!%p3636_p1)
}
  0x22   :  { %31 = dma.hbm_to_vmem [thread:$0]  %s5455_s2, 4096, %s3747_s30, [#allocation3], %s3692_s17, %s3692_s17, %s3693_s18  }
  0x23   :  { %s3694_s9 = smov [#allocation7]   ;;  %s3640_s13 = scalar_lea.hbm %s5459_s6, 1024 }
  0x24   :  { %s53_s10 = sshll.u32 %s3694_s9, 4  ;;  %p3641_p2 = scmp.ne.s32.totalorder %s5459_s6, %s3640_s13  ;;  %s54_s10 = int_to_ptr.vmem [resolvable:$true] %s53_s10 }
  0x25   :  { %p3644_p3 = scmp.lt.u32.totalorder %s3640_s13, %s5459_s6 }
  0x27   :  { %p3646_p4 = pnand %p3644_p3, %p3641_p2 }
  0x29   :  { %3649 = shalt.err (!%p3646_p4)
}
  0x2a   :  { %s3650_s20 = scalar_lea.vmem %s54_s10, 1024  ;;  %p3655_p6 = scmp.lt.s32.totalorder %s54_s10, %s54_s10 }
  0x2b   :  { %p3651_p5 = scmp.ne.s32.totalorder %s54_s10, %s3650_s20  ;;  %p3656_p7 = scmp.lt.s32.totalorder %s3650_s20, %s3650_s20 }
  0x2d   :  { %p3657_p8 = por %p3656_p7, %p3655_p6 }
  0x2f   :  { %p3658_p9 = pnand %p3657_p8, %p3651_p5 }
  0x31   :  { %3661 = shalt.err (!%p3658_p9)
}
  0x32   :  { %s3695_s2 = smov 64   ;;  %s3696_s30 = smov 4  }
  0x33   :  { %59 = dma.hbm_to_vmem [thread:$0]  %s5459_s6, 1024, %s54_s10, [#allocation6], %s3695_s2, %s3695_s2, %s3696_s30  }
  0x34   :  { %3684 = dma.done.wait [#allocation3], 4096  }
  0x35   :  { %3685 = vsyncadd [#allocation3], 4294963200 }
  0x36   :  { %3686 = dma.done.wait [#allocation6], 9216  }
  0x37   :  { %3687 = vsyncadd [#allocation6], 4294958080  ;;  %v5462_v0 = vmov 0   ;;  %v2986_v1 = vld [vmem:[%s5454_s1 + $0x4] ss:$16 sps:$4 sm:$0xff]   ;;  %vm243_vm0 = vcmask 130048  }
  0x38   :  { %288 = vmatprep.mubr.bf16.mxu0 %v5462_v0  ;;  %361 = vmatprep.mubr.bf16.mxu1 %v5462_v0  ;;  %v2988_v2 = vld [vmem:[%s5454_s1 + $0xc] ss:$16 sps:$4 sm:$0xff]   ;;  %v2990_v3 = vld [vmem:[%s5454_s1] ss:$16 sps:$4 sm:$0xff]   ;;  %v2991_v4 = vld [vmem:[%s5454_s1 + $0x8] ss:$16 sps:$4 sm:$0xff]  }
  0x39   :  { %256 = vmatprep.subr.bf16.mxu0 %v2986_v1  ;;  %329 = vmatprep.subr.bf16.mxu1 %v2988_v2  ;;  %v2992_v5 = vld [vmem:[%s5453_s0] sm:$0xff]   ;;  %v3809_v7 = vld [vmem:[#allocation2 + $0xc] ss:$16 sps:$4 sm:$0xff]   ;;  %v3814_v9 = vld [vmem:[#allocation2 + $0x8] ss:$16 sps:$4 sm:$0xff]   ;;  %vm3700_vm1 = vmmov 0  }
  0x3a   :  { %257 = vmatpush1.bf16.msra.mxu0 %v2990_v3  ;;  %330 = vmatpush1.bf16.msra.mxu1 %v2991_v4  ;;  %v3807_v6 = vld [vmem:[#allocation2 + $0x4] ss:$16 sps:$4 sm:$0xff]   ;;  %v3811_v8 = vld [vmem:[#allocation2] ss:$16 sps:$4 sm:$0xff]   ;;  %v3822_v11 = vld [vmem:[#allocation2 + $0x2c] ss:$16 sps:$4 sm:$0xff]  }
  0x3b   :  { %562 = vmatprep.subr.bf16.mxu0 %v3807_v6  ;;  %v3818_v10 = vld [vmem:[#allocation2 + $0x24] ss:$16 sps:$4 sm:$0xff]   ;;  %603 = vmatprep.subr.bf16.mxu1 %v3809_v7  ;;  %v3824_v12 = vld [vmem:[#allocation2 + $0x20] ss:$16 sps:$4 sm:$0xff]   ;;  %v3826_v13 = vld [vmem:[#allocation2 + $0x28] ss:$16 sps:$4 sm:$0xff]  }
  0x3c   :  { %v3005_v14 = vld [vmem:[%s5453_s0 + $0x8] sm:$0xff]   ;;  %v3835_v15 = vld [vmem:[#allocation2 + $0x44] ss:$16 sps:$4 sm:$0xff]   ;;  %v3841_v17 = vld [vmem:[#allocation2 + $0x40] ss:$16 sps:$4 sm:$0xff]   ;;  %s3701_s16 = smov [#allocation8]  }
  0x3d   :  { %2784 = vmatmul.mubr.msk.bf16.vlgmr.msra.gmra.mrb[0].mxu0 %vm243_vm0, %v2992_v5  ;;  %2788 = vmatmul.mubr.msk.bf16.vlgmr.msra.gmra.mrb[0].mxu1 %vm243_vm0, %v2992_v5  ;;  %v3838_v16 = vld [vmem:[#allocation2 + $0x4c] ss:$16 sps:$4 sm:$0xff]   ;;  %v3843_v18 = vld [vmem:[#allocation2 + $0x48] ss:$16 sps:$4 sm:$0xff]   ;;  %v3847_v19 = vld [vmem:[#allocation2 + $0x64] ss:$16 sps:$4 sm:$0xff]  }
  0x3e   :  { %563 = vmatpush1.bf16.msra.mxu0 %v3811_v8  ;;  %604 = vmatpush1.bf16.msra.mxu1 %v3814_v9  ;;  %v3850_v20 = vld [vmem:[#allocation2 + $0x6c] ss:$16 sps:$4 sm:$0xff]   ;;  %v3854_v21 = vld [vmem:[#allocation2 + $0x60] ss:$16 sps:$4 sm:$0xff]   ;;  %v3857_v22 = vld [vmem:[#allocation2 + $0x68] ss:$16 sps:$4 sm:$0xff]  }
  0x3f   :  { %564 = vmatprep.subr.bf16.mxu0 %v3818_v10  ;;  %605 = vmatprep.subr.bf16.mxu1 %v3822_v11  ;;  %v3862_v23 = vld [vmem:[#allocation2 + $0x84] ss:$16 sps:$4 sm:$0xff]   ;;  %v3866_v24 = vld [vmem:[#allocation2 + $0x8c] ss:$16 sps:$4 sm:$0xff]   ;;  %v3872_v26 = vld [vmem:[#allocation2 + $0x80] ss:$16 sps:$4 sm:$0xff]  }
  0x40   :  { %298 = vmatprep.mubr.bf16.mxu0 %v5462_v0  ;;  %371 = vmatprep.mubr.bf16.mxu1 %v5462_v0  ;;  %v3018_v25 = vld [vmem:[%s5453_s0 + $0x10] sm:$0xff]   ;;  %v3876_v27 = vld [vmem:[#allocation2 + $0x88] ss:$16 sps:$4 sm:$0xff]   ;;  %v3881_v29 = vld [vmem:[#allocation2 + $0xac] ss:$16 sps:$4 sm:$0xff]   ;;  %s2766_s19 = sshll.u32 %s3701_s16, 4  ;;  %s2767_s19 = int_to_ptr.vmem [resolvable:$true] %s2766_s19 }
  0x41   :  { %v3878_v28 = vld [vmem:[#allocation2 + $0xa4] ss:$16 sps:$4 sm:$0xff]   ;;  %v3886_v30 = vld [vmem:[#allocation2 + $0xa0] ss:$16 sps:$4 sm:$0xff]   ;;  %v3888_v31 = vld [vmem:[#allocation2 + $0xa8] ss:$16 sps:$4 sm:$0xff]   ;;  %p3667_p11 = scmp.lt.s32.totalorder %s2767_s19, %s2767_s19 }
  0x42   :  { %565 = vmatpush1.bf16.msra.mxu0 %v3824_v12  ;;  %606 = vmatpush1.bf16.msra.mxu1 %v3826_v13  ;;  %v3031_v32 = vld [vmem:[%s5453_s0 + $0x18] sm:$0xff]   ;;  %v3896_v33 = vld [vmem:[#allocation2 + $0xc4] ss:$16 sps:$4 sm:$0xff]   ;;  %v3902_v35 = vld [vmem:[#allocation2 + $0xc0] ss:$16 sps:$4 sm:$0xff]   ;;  %s3662_s20 = scalar_lea.vmem %s2767_s19, 128 }
  0x43   :  { %566 = vmatprep.subr.bf16.mxu0 %v3835_v15  ;;  %607 = vmatprep.subr.bf16.mxu1 %v3838_v16  ;;  %v3900_v34 = vld [vmem:[#allocation2 + $0xcc] ss:$16 sps:$4 sm:$0xff]   ;;  %v3904_v36 = vld [vmem:[#allocation2 + $0xc8] ss:$16 sps:$4 sm:$0xff]   ;;  %v3906_v37 = vld [vmem:[#allocation2 + $0xe4] ss:$16 sps:$4 sm:$0xff]   ;;  %p3663_p10 = scmp.ne.s32.totalorder %s2767_s19, %s3662_s20  ;;  %p3668_p12 = scmp.lt.s32.totalorder %s3662_s20, %s3662_s20 }
  0x44   :  { %v3909_v38 = vld [vmem:[#allocation2 + $0xec] ss:$16 sps:$4 sm:$0xff]   ;;  %v3914_v39 = vld [vmem:[#allocation2 + $0xe0] ss:$16 sps:$4 sm:$0xff]   ;;  %v3918_v40 = vld [vmem:[#allocation2 + $0xe8] ss:$16 sps:$4 sm:$0xff]  }
  0x45   :  { %2785 = vmatmul.mubr.msk.bf16.gmra.mrb[4].mxu0 %vm243_vm0, %v3005_v14  ;;  %2789 = vmatmul.mubr.msk.bf16.gmra.mrb[4].mxu1 %vm243_vm0, %v3005_v14  ;;  %v3930_v41 = vld [vmem:[#allocation5 + $0x4] ss:$16 sps:$4 sm:$0xff]   ;;  %v3932_v42 = vld [vmem:[#allocation5 + $0xc] ss:$16 sps:$4 sm:$0xff]   ;;  %v3934_v43 = vld [vmem:[#allocation5] ss:$16 sps:$4 sm:$0xff]   ;;  %p3669_p13 = por %p3668_p12, %p3667_p11 }
  0x46   :  { %567 = vmatpush1.bf16.msra.mxu0 %v3841_v17  ;;  %308 = vmatprep.mubr.bf16.mxu0 %v5462_v0  ;;  %v3936_v44 = vld [vmem:[#allocation5 + $0x8] ss:$16 sps:$4 sm:$0xff]   ;;  %v3942_v45 = vld [vmem:[#allocation5 + $0x24] ss:$16 sps:$4 sm:$0xff]   ;;  %v3944_v46 = vld [vmem:[#allocation5 + $0x2c] ss:$16 sps:$4 sm:$0xff]  }
  0x47   :  { %608 = vmatpush1.bf16.msra.mxu1 %v3843_v18  ;;  %568 = vmatprep.subr.bf16.mxu0 %v3847_v19  ;;  %v3946_v47 = vld [vmem:[#allocation5 + $0x20] ss:$16 sps:$4 sm:$0xff]   ;;  %v3948_v48 = vld [vmem:[#allocation5 + $0x28] ss:$16 sps:$4 sm:$0xff]   ;;  %v3954_v49 = vld [vmem:[#allocation5 + $0x44] ss:$16 sps:$4 sm:$0xff]   ;;  %p3670_p0 = pnand %p3669_p13, %p3663_p10 }
  0x48   :  { %609 = vmatprep.subr.bf16.mxu1 %v3850_v20  ;;  %381 = vmatprep.mubr.bf16.mxu1 %v5462_v0  ;;  %v3956_v50 = vld [vmem:[#allocation5 + $0x4c] ss:$16 sps:$4 sm:$0xff]   ;;  %v3958_v51 = vld [vmem:[#allocation5 + $0x40] ss:$16 sps:$4 sm:$0xff]   ;;  %v3960_v52 = vld [vmem:[#allocation5 + $0x48] ss:$16 sps:$4 sm:$0xff]  }
  0x49   :  { %5804 = vst [vmem:[#allocation12_spill] sm:$0xff] %v3956_v50  ;;  %5805 = vst [vmem:[#allocation13_spill] sm:$0xff] %v3958_v51  ;;  %v3966_v53 = vld [vmem:[#allocation5 + $0x64] ss:$16 sps:$4 sm:$0xff]   ;;  %v3968_v54 = vld [vmem:[#allocation5 + $0x6c] ss:$16 sps:$4 sm:$0xff]  }
  0x4a   :  { %569 = vmatpush1.bf16.msra.mxu0 %v3854_v21  ;;  %5806 = vst [vmem:[#allocation14_spill] sm:$0xff] %v3960_v52  ;;  %5807 = vst [vmem:[#allocation15_spill] sm:$0xff] %v3966_v53  ;;  %v3970_v55 = vld [vmem:[#allocation5 + $0x60] ss:$16 sps:$4 sm:$0xff]   ;;  %v3972_v56 = vld [vmem:[#allocation5 + $0x68] ss:$16 sps:$4 sm:$0xff]  }
  0x4b   :  { %610 = vmatpush1.bf16.msra.mxu1 %v3857_v22  ;;  %570 = vmatprep.subr.bf16.mxu0 %v3862_v23  ;;  %5808 = vst [vmem:[#allocation16_spill] sm:$0xff] %v3968_v54  ;;  %5809 = vst [vmem:[#allocation17_spill] sm:$0xff] %v3970_v55  ;;  %v3978_v57 = vld [vmem:[#allocation5 + $0x84] ss:$16 sps:$4 sm:$0xff]   ;;  %v3980_v58 = vld [vmem:[#allocation5 + $0x8c] ss:$16 sps:$4 sm:$0xff]  }
  0x4c   :  { %611 = vmatprep.subr.bf16.mxu1 %v3866_v24  ;;  %5810 = vst [vmem:[#allocation18_spill] sm:$0xff] %v3972_v56  ;;  %5811 = vst [vmem:[#allocation19_spill] sm:$0xff] %v3978_v57  ;;  %v3982_v59 = vld [vmem:[#allocation5 + $0x80] ss:$16 sps:$4 sm:$0xff]   ;;  %v3984_v60 = vld [vmem:[#allocation5 + $0x88] ss:$16 sps:$4 sm:$0xff]  }
  0x4d   :  { %2786 = vmatmul.mubr.msk.bf16.gmra.mrb[8].mxu0 %vm243_vm0, %v3018_v25  ;;  %2790 = vmatmul.mubr.msk.bf16.gmra.mrb[8].mxu1 %vm243_vm0, %v3018_v25  ;;  %5812 = vst [vmem:[#allocation20_spill] sm:$0xff] %v3980_v58  ;;  %5813 = vst [vmem:[#allocation21_spill] sm:$0xff] %v3982_v59  ;;  %v3990_v61 = vld [vmem:[#allocation5 + $0xa4] ss:$16 sps:$4 sm:$0xff]   ;;  %v3992_v62 = vld [vmem:[#allocation5 + $0xac] ss:$16 sps:$4 sm:$0xff]  }
  0x4e   :  { %571 = vmatpush1.bf16.msra.mxu0 %v3872_v26  ;;  %318 = vmatprep.mubr.bf16.mxu0 %v5462_v0  ;;  %5814 = vst [vmem:[#allocation22_spill] sm:$0xff] %v3984_v60  ;;  %5815 = vst [vmem:[#allocation23_spill] sm:$0xff] %v3990_v61  ;;  %v3994_v63 = vld [vmem:[#allocation5 + $0xa0] ss:$16 sps:$4 sm:$0xff]   ;;  %v3996_v1 = vld [vmem:[#allocation5 + $0xa8] ss:$16 sps:$4 sm:$0xff]  }
  0x4f   :  { %612 = vmatpush1.bf16.msra.mxu1 %v3876_v27  ;;  %572 = vmatprep.subr.bf16.mxu0 %v3878_v28  ;;  %5816 = vst [vmem:[#allocation24_spill] sm:$0xff] %v3992_v62  ;;  %5817 = vst [vmem:[#allocation25_spill] sm:$0xff] %v3994_v63  ;;  %v4002_v2 = vld [vmem:[#allocation5 + $0xc4] ss:$16 sps:$4 sm:$0xff]   ;;  %v4004_v3 = vld [vmem:[#allocation5 + $0xcc] ss:$16 sps:$4 sm:$0xff]  }
  0x50   :  { %613 = vmatprep.subr.bf16.mxu1 %v3881_v29  ;;  %391 = vmatprep.mubr.bf16.mxu1 %v5462_v0  ;;  %5818 = vst [vmem:[#allocation26_spill] sm:$0xff] %v3996_v1  ;;  %5819 = vst [vmem:[#allocation27_spill] sm:$0xff] %v4002_v2  ;;  %v4006_v4 = vld [vmem:[#allocation5 + $0xc0] ss:$16 sps:$4 sm:$0xff]   ;;  %v4008_v5 = vld [vmem:[#allocation5 + $0xc8] ss:$16 sps:$4 sm:$0xff]  }
  0x51   :  { %5820 = vst [vmem:[#allocation28_spill] sm:$0xff] %v4004_v3  ;;  %5821 = vst [vmem:[#allocation29_spill] sm:$0xff] %v4006_v4  ;;  %v4014_v14 = vld [vmem:[#allocation5 + $0xe4] ss:$16 sps:$4 sm:$0xff]   ;;  %v4016_v25 = vld [vmem:[#allocation5 + $0xec] ss:$16 sps:$4 sm:$0xff]  }
  0x52   :  { %573 = vmatpush1.bf16.msra.mxu0 %v3886_v30  ;;  %5822 = vst [vmem:[#allocation30_spill] sm:$0xff] %v4008_v5  ;;  %5823 = vst [vmem:[#allocation31_spill] sm:$0xff] %v4014_v14 }
  0x53   :  { %614 = vmatpush1.bf16.msra.mxu1 %v3888_v31  ;;  %574 = vmatprep.subr.bf16.mxu0 %v3896_v33  ;;  %5824 = vst [vmem:[#allocation32_spill] sm:$0xff] %v4016_v25 }
  0x54   :  { %615 = vmatprep.subr.bf16.mxu1 %v3900_v34 }
  0x55   :  { %2787 = vmatmul.mubr.msk.bf16.gmra.mrb[12].mxu0 %vm243_vm0, %v3031_v32  ;;  %2791 = vmatmul.mubr.msk.bf16.gmra.mrb[12].mxu1 %vm243_vm0, %v3031_v32  ;;  %v4018_v32 = vld [vmem:[#allocation5 + $0xe0] ss:$16 sps:$4 sm:$0xff]  }
  0x56   :  { %575 = vmatpush1.bf16.msra.mxu0 %v3902_v35  ;;  %594 = vmatprep.mubr.bf16.mxu0 %v5462_v0  ;;  %5825 = vst [vmem:[#allocation33_spill] sm:$0xff] %v4018_v32 }
  0x57   :  { %616 = vmatpush1.bf16.msra.mxu1 %v3904_v36  ;;  %576 = vmatprep.subr.bf16.mxu0 %v3906_v37 }
  0x58   :  { %617 = vmatprep.subr.bf16.mxu1 %v3909_v38  ;;  %635 = vmatprep.mubr.bf16.mxu1 %v5462_v0 }
  0x5a   :  { %577 = vmatpush1.bf16.msra.mxu0 %v3914_v39 }
  0x5b   :  { %618 = vmatpush1.bf16.msra.mxu1 %v3918_v40  ;;  %1015 = vmatprep.subr.bf16.mxu0 %v3930_v41 }
  0x5c   :  { %1056 = vmatprep.subr.bf16.mxu1 %v3932_v42 }
  0x5d   :  { %595 = vmatmul.mubr.bf16.vlgmr.msra.gmra.mrb[16].mxu0 %v5462_v0 }
  0x5e   :  { %636 = vmatmul.mubr.bf16.vlgmr.msra.gmra.mrb[16].mxu1 %v5462_v0  ;;  %1016 = vmatpush1.bf16.msra.mxu0 %v3934_v43  ;;  %v4020_v0 = vld [vmem:[#allocation5 + $0xe8] ss:$16 sps:$4 sm:$0xff]  }
  0x5f   :  { %1057 = vmatpush1.bf16.msra.mxu1 %v3936_v44  ;;  %1017 = vmatprep.subr.bf16.mxu0 %v3942_v45  ;;  %5826 = vst [vmem:[#allocation34_spill] sm:$0xff] %v4020_v0 }
  0x60   :  { %1058 = vmatprep.subr.bf16.mxu1 %v3944_v46 }
  0x62   :  { %1018 = vmatpush1.bf16.msra.mxu0 %v3946_v47 }
  0x63   :  { %1059 = vmatpush1.bf16.msra.mxu1 %v3948_v48  ;;  %1019 = vmatprep.subr.bf16.mxu0 %v3954_v49 }
  0x64   :  { %1060 = vmatprep.subr.bf16.mxu1 %v3956_v50 }
  0x66   :  { %1020 = vmatpush1.bf16.msra.mxu0 %v3958_v51 }
  0x67   :  { %1061 = vmatpush1.bf16.msra.mxu1 %v3960_v52  ;;  %1021 = vmatprep.subr.bf16.mxu0 %v3966_v53 }
  0x68   :  { %1062 = vmatprep.subr.bf16.mxu1 %v3968_v54 }
  0x6a   :  { %1022 = vmatpush1.bf16.msra.mxu0 %v3970_v55 }
  0x6b   :  { %1063 = vmatpush1.bf16.msra.mxu1 %v3972_v56  ;;  %1023 = vmatprep.subr.bf16.mxu0 %v3978_v57 }
  0x6c   :  { %1064 = vmatprep.subr.bf16.mxu1 %v3980_v58 }
  0x6e   :  { %1024 = vmatpush1.bf16.msra.mxu0 %v3982_v59 }
  0x6f   :  { %1065 = vmatpush1.bf16.msra.mxu1 %v3984_v60  ;;  %1025 = vmatprep.subr.bf16.mxu0 %v3990_v61 }
  0x70   :  { %1066 = vmatprep.subr.bf16.mxu1 %v3992_v62 }
  0x72   :  { %1026 = vmatpush1.bf16.msra.mxu0 %v3994_v63  ;;  %v4084_v63 = vld [vmem:[#allocation5 + $0x1ac] ss:$16 sps:$4 sm:$0xff]  }
  0x73   :  { %1067 = vmatpush1.bf16.msra.mxu1 %v3996_v1  ;;  %1027 = vmatprep.subr.bf16.mxu0 %v4002_v2  ;;  %v4032_v2 = vld [vmem:[#allocation5 + $0x108] ss:$16 sps:$4 sm:$0xff]   ;;  %v4082_v1 = vld [vmem:[#allocation5 + $0x1a4] ss:$16 sps:$4 sm:$0xff]   ;;  %5848 = vst [vmem:[#allocation56_spill] sm:$0xff] %v4084_v63 }
  0x74   :  { %1068 = vmatprep.subr.bf16.mxu1 %v4004_v3  ;;  %v4026_v3 = vld [vmem:[#allocation5 + $0x104] ss:$16 sps:$4 sm:$0xff]   ;;  %5830 = vst [vmem:[#allocation38_spill] sm:$0xff] %v4032_v2  ;;  %5847 = vst [vmem:[#allocation55_spill] sm:$0xff] %v4082_v1 }
  0x75   :  { %5827 = vst [vmem:[#allocation35_spill] sm:$0xff] %v4026_v3 }
  0x76   :  { %1028 = vmatpush1.bf16.msra.mxu0 %v4006_v4  ;;  %v4028_v4 = vld [vmem:[#allocation5 + $0x10c] ss:$16 sps:$4 sm:$0xff]  }
  0x77   :  { %1069 = vmatpush1.bf16.msra.mxu1 %v4008_v5  ;;  %1029 = vmatprep.subr.bf16.mxu0 %v4014_v14  ;;  %5828 = vst [vmem:[#allocation36_spill] sm:$0xff] %v4028_v4  ;;  %v4030_v5 = vld [vmem:[#allocation5 + $0x100] ss:$16 sps:$4 sm:$0xff]   ;;  %v4044_v14 = vld [vmem:[#allocation5 + $0x128] ss:$16 sps:$4 sm:$0xff]  }
  0x78   :  { %1070 = vmatprep.subr.bf16.mxu1 %v4016_v25  ;;  %5829 = vst [vmem:[#allocation37_spill] sm:$0xff] %v4030_v5  ;;  %v4038_v25 = vld [vmem:[#allocation5 + $0x124] ss:$16 sps:$4 sm:$0xff]   ;;  %5834 = vst [vmem:[#allocation42_spill] sm:$0xff] %v4044_v14 }
  0x79   :  { %5831 = vst [vmem:[#allocation39_spill] sm:$0xff] %v4038_v25 }
  0x7a   :  { %1030 = vmatpush1.bf16.msra.mxu0 %v4018_v32  ;;  %v4040_v32 = vld [vmem:[#allocation5 + $0x12c] ss:$16 sps:$4 sm:$0xff]  }
  0x7b   :  { %1071 = vmatpush1.bf16.msra.mxu1 %v4020_v0  ;;  %1031 = vmatprep.subr.bf16.mxu0 %v4026_v3  ;;  %5832 = vst [vmem:[#allocation40_spill] sm:$0xff] %v4040_v32  ;;  %v4042_v0 = vld [vmem:[#allocation5 + $0x120] ss:$16 sps:$4 sm:$0xff]   ;;  %v4056_v3 = vld [vmem:[#allocation5 + $0x148] ss:$16 sps:$4 sm:$0xff]  }
  0x7c   :  { %1072 = vmatprep.subr.bf16.mxu1 %v4028_v4  ;;  %5833 = vst [vmem:[#allocation41_spill] sm:$0xff] %v4042_v0  ;;  %v4050_v4 = vld [vmem:[#allocation5 + $0x144] ss:$16 sps:$4 sm:$0xff]   ;;  %5838 = vst [vmem:[#allocation46_spill] sm:$0xff] %v4056_v3 }
  0x7d   :  { %5835 = vst [vmem:[#allocation43_spill] sm:$0xff] %v4050_v4 }
  0x7e   :  { %1032 = vmatpush1.bf16.msra.mxu0 %v4030_v5  ;;  %v4052_v5 = vld [vmem:[#allocation5 + $0x14c] ss:$16 sps:$4 sm:$0xff]  }
  0x7f   :  { %1073 = vmatpush1.bf16.msra.mxu1 %v4032_v2  ;;  %1033 = vmatprep.subr.bf16.mxu0 %v4038_v25  ;;  %5836 = vst [vmem:[#allocation44_spill] sm:$0xff] %v4052_v5  ;;  %v4054_v2 = vld [vmem:[#allocation5 + $0x140] ss:$16 sps:$4 sm:$0xff]   ;;  %v4068_v25 = vld [vmem:[#allocation5 + $0x168] ss:$16 sps:$4 sm:$0xff]  }
  0x80   :  { %1074 = vmatprep.subr.bf16.mxu1 %v4040_v32  ;;  %5837 = vst [vmem:[#allocation45_spill] sm:$0xff] %v4054_v2  ;;  %v4062_v32 = vld [vmem:[#allocation5 + $0x164] ss:$16 sps:$4 sm:$0xff]   ;;  %5842 = vst [vmem:[#allocation50_spill] sm:$0xff] %v4068_v25 }
  0x81   :  { %5839 = vst [vmem:[#allocation47_spill] sm:$0xff] %v4062_v32 }
  0x82   :  { %1034 = vmatpush1.bf16.msra.mxu0 %v4042_v0  ;;  %v4064_v0 = vld [vmem:[#allocation5 + $0x16c] ss:$16 sps:$4 sm:$0xff]  }
  0x83   :  { %1075 = vmatpush1.bf16.msra.mxu1 %v4044_v14  ;;  %1035 = vmatprep.subr.bf16.mxu0 %v4050_v4  ;;  %5840 = vst [vmem:[#allocation48_spill] sm:$0xff] %v4064_v0  ;;  %v4066_v14 = vld [vmem:[#allocation5 + $0x160] ss:$16 sps:$4 sm:$0xff]   ;;  %v4080_v4 = vld [vmem:[#allocation5 + $0x188] ss:$16 sps:$4 sm:$0xff]  }
  0x84   :  { %1076 = vmatprep.subr.bf16.mxu1 %v4052_v5  ;;  %5841 = vst [vmem:[#allocation49_spill] sm:$0xff] %v4066_v14  ;;  %v4074_v5 = vld [vmem:[#allocation5 + $0x184] ss:$16 sps:$4 sm:$0xff]   ;;  %5846 = vst [vmem:[#allocation54_spill] sm:$0xff] %v4080_v4 }
  0x85   :  { %5843 = vst [vmem:[#allocation51_spill] sm:$0xff] %v4074_v5 }
  0x86   :  { %1036 = vmatpush1.bf16.msra.mxu0 %v4054_v2  ;;  %v4076_v2 = vld [vmem:[#allocation5 + $0x18c] ss:$16 sps:$4 sm:$0xff]  }
  0x87   :  { %1077 = vmatpush1.bf16.msra.mxu1 %v4056_v3  ;;  %1037 = vmatprep.subr.bf16.mxu0 %v4062_v32  ;;  %5844 = vst [vmem:[#allocation52_spill] sm:$0xff] %v4076_v2  ;;  %v4078_v3 = vld [vmem:[#allocation5 + $0x180] ss:$16 sps:$4 sm:$0xff]   ;;  %v4098_v32 = vld [vmem:[#allocation5 + $0x1cc] ss:$16 sps:$4 sm:$0xff]  }
  0x88   :  { %1078 = vmatprep.subr.bf16.mxu1 %v4064_v0  ;;  %5845 = vst [vmem:[#allocation53_spill] sm:$0xff] %v4078_v3  ;;  %v4096_v0 = vld [vmem:[#allocation5 + $0x1c4] ss:$16 sps:$4 sm:$0xff]   ;;  %5852 = vst [vmem:[#allocation60_spill] sm:$0xff] %v4098_v32 }
  0x89   :  { %5851 = vst [vmem:[#allocation59_spill] sm:$0xff] %v4096_v0 }
  0x8a   :  { %1038 = vmatpush1.bf16.msra.mxu0 %v4066_v14  ;;  %v4092_v14 = vld [vmem:[#allocation5 + $0x1a8] ss:$16 sps:$4 sm:$0xff]  }
  0x8b   :  { %1079 = vmatpush1.bf16.msra.mxu1 %v4068_v25  ;;  %1039 = vmatprep.subr.bf16.mxu0 %v4074_v5  ;;  %v4090_v25 = vld [vmem:[#allocation5 + $0x1a0] ss:$16 sps:$4 sm:$0xff]   ;;  %5850 = vst [vmem:[#allocation58_spill] sm:$0xff] %v4092_v14 }
  0x8c   :  { %1080 = vmatprep.subr.bf16.mxu1 %v4076_v2  ;;  %5849 = vst [vmem:[#allocation57_spill] sm:$0xff] %v4090_v25  ;;  %v4102_v2 = vld [vmem:[#allocation5 + $0x1c0] ss:$16 sps:$4 sm:$0xff]  }
  0x8d   :  { %5853 = vst [vmem:[#allocation61_spill] sm:$0xff] %v4102_v2 }
  0x8e   :  { %1040 = vmatpush1.bf16.msra.mxu0 %v4078_v3  ;;  %v4104_v3 = vld [vmem:[#allocation5 + $0x1c8] ss:$16 sps:$4 sm:$0xff]  }
  0x8f   :  { %1081 = vmatpush1.bf16.msra.mxu1 %v4080_v4  ;;  %1041 = vmatprep.subr.bf16.mxu0 %v4082_v1  ;;  %5854 = vst [vmem:[#allocation62_spill] sm:$0xff] %v4104_v3  ;;  %v4108_v4 = vld [vmem:[#allocation5 + $0x1e4] ss:$16 sps:$4 sm:$0xff]   ;;  %v4110_v1 = vld [vmem:[#allocation5 + $0x1ec] ss:$16 sps:$4 sm:$0xff]  }
  0x90   :  { %1082 = vmatprep.subr.bf16.mxu1 %v4084_v63  ;;  %5855 = vst [vmem:[#allocation63_spill] sm:$0xff] %v4108_v4  ;;  %5856 = vst [vmem:[#allocation64_spill] sm:$0xff] %v4110_v1  ;;  %v4114_v63 = vld [vmem:[#allocation5 + $0x1e0] ss:$16 sps:$4 sm:$0xff]  }
  0x91   :  { %5857 = vst [vmem:[#allocation65_spill] sm:$0xff] %v4114_v63 }
  0x92   :  { %1042 = vmatpush1.bf16.msra.mxu0 %v4090_v25  ;;  %v4116_v25 = vld [vmem:[#allocation5 + $0x1e8] ss:$16 sps:$4 sm:$0xff]  }
  0x93   :  { %1083 = vmatpush1.bf16.msra.mxu1 %v4092_v14  ;;  %1043 = vmatprep.subr.bf16.mxu0 %v4096_v0  ;;  %5858 = vst [vmem:[#allocation66_spill] sm:$0xff] %v4116_v25 }
  0x94   :  { %1084 = vmatprep.subr.bf16.mxu1 %v4098_v32  ;;  %v183_v32 = vlaneseq }
  0x96   :  { %1044 = vmatpush1.bf16.msra.mxu0 %v4102_v2  ;;  %v4124_v2 = vshrl.u32 %v183_v32, 7 }
  0x97   :  { %1085 = vmatpush1.bf16.msra.mxu1 %v4104_v3  ;;  %1045 = vmatprep.subr.bf16.mxu0 %v4108_v4 }
  0x98   :  { %1086 = vmatprep.subr.bf16.mxu1 %v4110_v1  ;;  %5859 = vst [vmem:[#allocation67_spill] sm:$0xff] %v4124_v2  ;;  %v5556_v3 = vsub.s32 2, %v4124_v2  ;;  %v5565_v0 = vsub.s32 3, %v4124_v2  ;;  %v5566_v14 = vsub.s32 0, %v4124_v2  ;;  %v181_v1 = vld [vmem:[%s5456_s3] sm:$0xf] }
  0x9a   :  { %1046 = vmatpush1.bf16.msra.mxu0 %v4114_v63  ;;  %v5573_v63 = vsub.s32 1, %v4124_v2  ;;  %v186_v4 = vrot.slane %v181_v1, %v5566_v14 }
  0x9b   :  { %1087 = vmatpush1.bf16.msra.mxu1 %v4116_v25  ;;  %1121 = vmatprep.subr.bf16.mxu0 %v3807_v6  ;;  %v4135_v6 = vrot.slane %v181_v1, %v5556_v3  ;;  %v4143_v25 = vrot.slane %v181_v1, %v5565_v0 }
  0x9c   :  { %1162 = vmatprep.subr.bf16.mxu1 %v3809_v7  ;;  %v190_v61 = vrot.slane %v181_v1, %v5573_v63 }
 0x110   :  { %v4137_v7 = vpop.f32.mrb[0].mxu0  ;;  %v4139_v32 = vpop.f32.mrb[0].mxu1 }
 0x111   :  { %v292_v5 = vpop.f32.mrb[1].mxu0  ;;  %v365_v62 = vpop.f32.mrb[1].mxu1 }
 0x112   :  { %v294_v60 = vpop.f32.mrb[2].mxu0  ;;  %v367_v59 = vpop.f32.mrb[2].mxu1 }
 0x113   :  { %v4149_v3 = vadd.f32 %v294_v60, %v186_v4  ;;  %v296_v58 = vpop.f32.mrb[3].mxu0  ;;  %v4152_v57 = vadd.f32 %v367_v59, %v4135_v6  ;;  %v369_v56 = vpop.f32.mrb[3].mxu1 }
 0x114   :  { %v4154_v55 = vadd.f32 %v296_v58, %v190_v61  ;;  %v4157_v0 = vadd.f32 %v369_v56, %v4143_v25 }
 0x115   :  { %5860 = vst [vmem:[#allocation68_spill] sm:$0xff] %v4149_v3  ;;  %5861 = vst [vmem:[#allocation69_spill] sm:$0xff] %v4152_v57 }
 0x116   :  { %5862 = vst [vmem:[#allocation70_spill] sm:$0xff] %v4154_v55  ;;  %5863 = vst [vmem:[#allocation71_spill] sm:$0xff] %v4157_v0 }
 0x118   :  { %v300_v14 = vpop.f32.mrb[4].mxu0  ;;  %v373_v54 = vpop.f32.mrb[4].mxu1 }
 0x119   :  { %v4159_v53 = vadd.f32 %v300_v14, %v186_v4  ;;  %v302_v2 = vpop.f32.mrb[5].mxu0  ;;  %v4162_v1 = vadd.f32 %v373_v54, %v4135_v6  ;;  %v375_v60 = vpop.f32.mrb[5].mxu1 }
 0x11a   :  { %v4164_v63 = vadd.f32 %v302_v2, %v190_v61  ;;  %v304_v3 = vpop.f32.mrb[6].mxu0  ;;  %v4167_v59 = vadd.f32 %v375_v60, %v4143_v25  ;;  %v377_v58 = vpop.f32.mrb[6].mxu1 }
 0x11b   :  { %5864 = vst [vmem:[#allocation72_spill] sm:$0xff] %v4159_v53  ;;  %5865 = vst [vmem:[#allocation73_spill] sm:$0xff] %v4162_v1  ;;  %v4169_v55 = vadd.f32 %v304_v3, %v186_v4  ;;  %v306_v56 = vpop.f32.mrb[7].mxu0  ;;  %v4172_v0 = vadd.f32 %v377_v58, %v4135_v6  ;;  %v379_v14 = vpop.f32.mrb[7].mxu1 }
 0x11c   :  { %5866 = vst [vmem:[#allocation74_spill] sm:$0xff] %v4164_v63  ;;  %5867 = vst [vmem:[#allocation75_spill] sm:$0xff] %v4167_v59  ;;  %v4174_v53 = vadd.f32 %v306_v56, %v190_v61  ;;  %v4177_v54 = vadd.f32 %v379_v14, %v4143_v25 }
 0x11d   :  { %5868 = vst [vmem:[#allocation76_spill] sm:$0xff] %v4169_v55  ;;  %5869 = vst [vmem:[#allocation77_spill] sm:$0xff] %v4172_v0 }
 0x11e   :  { %5870 = vst [vmem:[#allocation78_spill] sm:$0xff] %v4174_v53  ;;  %5871 = vst [vmem:[#allocation79_spill] sm:$0xff] %v4177_v54 }
 0x120   :  { %v310_v1 = vpop.f32.mrb[8].mxu0  ;;  %v383_v2 = vpop.f32.mrb[8].mxu1 }
 0x121   :  { %v4179_v63 = vadd.f32 %v310_v1, %v186_v4  ;;  %v312_v57 = vpop.f32.mrb[9].mxu0  ;;  %v4182_v60 = vadd.f32 %v383_v2, %v4135_v6  ;;  %v385_v3 = vpop.f32.mrb[9].mxu1 }
 0x122   :  { %v4184_v55 = vadd.f32 %v312_v57, %v190_v61  ;;  %v314_v59 = vpop.f32.mrb[10].mxu0  ;;  %v4187_v58 = vadd.f32 %v385_v3, %v4143_v25  ;;  %v387_v56 = vpop.f32.mrb[10].mxu1 }
 0x123   :  { %5872 = vst [vmem:[#allocation80_spill] sm:$0xff] %v4179_v63  ;;  %5873 = vst [vmem:[#allocation81_spill] sm:$0xff] %v4182_v60  ;;  %v4189_v53 = vadd.f32 %v314_v59, %v186_v4  ;;  %v316_v14 = vpop.f32.mrb[11].mxu0  ;;  %v4192_v54 = vadd.f32 %v387_v56, %v4135_v6  ;;  %v389_v1 = vpop.f32.mrb[11].mxu1 }
 0x124   :  { %5874 = vst [vmem:[#allocation82_spill] sm:$0xff] %v4184_v55  ;;  %5875 = vst [vmem:[#allocation83_spill] sm:$0xff] %v4187_v58  ;;  %v4194_v63 = vadd.f32 %v316_v14, %v190_v61  ;;  %v4197_v2 = vadd.f32 %v389_v1, %v4143_v25 }
 0x125   :  { %5876 = vst [vmem:[#allocation84_spill] sm:$0xff] %v4189_v53  ;;  %5877 = vst [vmem:[#allocation85_spill] sm:$0xff] %v4192_v54 }
 0x126   :  { %5878 = vst [vmem:[#allocation86_spill] sm:$0xff] %v4194_v63  ;;  %5879 = vst [vmem:[#allocation87_spill] sm:$0xff] %v4197_v2 }
 0x128   :  { %v320_v60 = vpop.f32.mrb[12].mxu0  ;;  %v393_v57 = vpop.f32.mrb[12].mxu1 }
 0x129   :  { %v4199_v55 = vadd.f32 %v320_v60, %v186_v4  ;;  %v322_v0 = vpop.f32.mrb[13].mxu0  ;;  %v4202_v3 = vadd.f32 %v393_v57, %v4135_v6  ;;  %v395_v59 = vpop.f32.mrb[13].mxu1 }
 0x12a   :  { %v4204_v53 = vadd.f32 %v322_v0, %v190_v61  ;;  %v324_v58 = vpop.f32.mrb[14].mxu0  ;;  %v4207_v56 = vadd.f32 %v395_v59, %v4143_v25  ;;  %v397_v14 = vpop.f32.mrb[14].mxu1  ;;  %v291_v0 = vadd.f32 %v4137_v7, %v186_v4  ;;  %v364_v59 = vadd.f32 %v4139_v32, %v4135_v6 }
 0x12b   :  { %5880 = vst [vmem:[#allocation88_spill] sm:$0xff] %v4199_v55  ;;  %5881 = vst [vmem:[#allocation89_spill] sm:$0xff] %v4202_v3  ;;  %v4209_v63 = vadd.f32 %v324_v58, %v186_v4  ;;  %v326_v1 = vpop.f32.mrb[15].mxu0  ;;  %v4212_v2 = vadd.f32 %v397_v14, %v4135_v6  ;;  %v399_v60 = vpop.f32.mrb[15].mxu1  ;;  %v366_v58 = vadd.f32 %v365_v62, %v4143_v25 }
 0x12c   :  { %5882 = vst [vmem:[#allocation90_spill] sm:$0xff] %v4204_v53  ;;  %5883 = vst [vmem:[#allocation91_spill] sm:$0xff] %v4207_v56  ;;  %v4214_v55 = vadd.f32 %v326_v1, %v190_v61  ;;  %v4217_v57 = vadd.f32 %v399_v60, %v4143_v25  ;;  %v293_v53 = vadd.f32 %v292_v5, %v190_v61 }
 0x12d   :  { %5884 = vst [vmem:[#allocation92_spill] sm:$0xff] %v4209_v63  ;;  %5885 = vst [vmem:[#allocation93_spill] sm:$0xff] %v4212_v2 }
 0x12e   :  { %5886 = vst [vmem:[#allocation94_spill] sm:$0xff] %v4214_v55  ;;  %5887 = vst [vmem:[#allocation95_spill] sm:$0xff] %v4217_v57 }
 0x130   :  { %v596_v56 = vpop.f32.mrb[16].mxu0 }
 0x131   :  { %v644_v63 = vadd.f32 %v596_v56, %v291_v0  ;;  %v637_v3 = vpop.f32.mrb[16].mxu1  ;;  %v598_v54 = vpop.f32.mrb[17].mxu0  ;;  %v5888_v0 = vmov 0  }
 0x132   :  { %v646_v14 = vadd.f32 %v637_v3, %v364_v59  ;;  %v645_v2 = vadd.f32 %v598_v54, %v293_v53  ;;  %v639_v52 = vpop.f32.mrb[17].mxu1  ;;  %v600_v1 = vpop.f32.mrb[18].mxu0  ;;  %v5919_v59 = vld [vmem:[#allocation42_spill] sm:$0xff] }
 0x133   :  { %v2824_v55 = vmul.f32 -1.442695, %v644_v63  ;;  %v647_v51 = vadd.f32 %v639_v52, %v366_v58  ;;  %v601_v60 = vpop.f32.mrb[19].mxu0  ;;  %v641_v57 = vpop.f32.mrb[18].mxu1  ;;  %v5920_v58 = vld [vmem:[#allocation43_spill] sm:$0xff]  ;;  %v5922_v1 = vld [vmem:[#allocation45_spill] sm:$0xff] }
 0x134   :  { %v2825_v50 = vmul.f32 -1.442695, %v645_v2  ;;  %v642_v4 = vpop.f32.mrb[19].mxu1  ;;  %v2826_v61 = vmul.f32 -1.442695, %v646_v14  ;;  %v5921_v14 = vld [vmem:[#allocation44_spill] sm:$0xff] }
 0x135   :  { %3148 = vpow2.f32 %v2824_v55  ;;  %v5923_v60 = vld [vmem:[#allocation46_spill] sm:$0xff]  ;;  %v5924_v4 = vld [vmem:[#allocation47_spill] sm:$0xff] }
 0x136   :  { %3150 = vpow2.f32 %v2825_v50 }
 0x137   :  { %3152 = vpow2.f32 %v2826_v61  ;;  %v5925_v61 = vld [vmem:[#allocation48_spill] sm:$0xff] }
 0x138   :  { %3154 = vtanh.f32 %v647_v51  ;;  %v3698_v51 = vmov 0.0|0.0  }
 0x13f   :  { %v3149_v5 = vpop.eup %3148 }
 0x140   :  { %v657_v6 = vadd.f32 1.0, %v3149_v5  ;;  %v3151_v62 = vpop.eup %3150  ;;  %v5926_v5 = vld [vmem:[#allocation49_spill] sm:$0xff] }
 0x141   :  { %v658_v25 = vadd.f32 1.0, %v3151_v62  ;;  %v3153_v53 = vpop.eup %3152  ;;  %v5928_v62 = vld [vmem:[#allocation51_spill] sm:$0xff] }
 0x142   :  { %3156 = vrcp.f32 %v657_v6  ;;  %v3155_v7 = vpop.eup %3154  ;;  %v659_v54 = vadd.f32 1.0, %v3153_v53  ;;  %v5927_v6 = vld [vmem:[#allocation50_spill] sm:$0xff]  ;;  %v5930_v53 = vld [vmem:[#allocation53_spill] sm:$0xff] }
 0x143   :  { %3158 = vrcp.f32 %v658_v25  ;;  %v5929_v25 = vld [vmem:[#allocation52_spill] sm:$0xff] }
 0x144   :  { %3160 = vrcp.f32 %v659_v54  ;;  %v5935_v54 = vld [vmem:[#allocation58_spill] sm:$0xff] }
 0x14c   :  { %v3157_v32 = vpop.eup %3156 }
 0x14d   :  { %v668_v63 = vmul.f32 %v3157_v32, %v3155_v7  ;;  %v3159_v52 = vpop.eup %3158  ;;  %v5931_v7 = vld [vmem:[#allocation54_spill] sm:$0xff]  ;;  %v5932_v32 = vld [vmem:[#allocation55_spill] sm:$0xff] }
 0x14e   :  { %v667_v3 = vmul.f32 0.0, %v3159_v52  ;;  %v3161_v50 = vpop.eup %3160  ;;  %v5934_v52 = vld [vmem:[#allocation57_spill] sm:$0xff] }
 0x150   :  { %v4223_v2 = vadd.f32 %v668_v63, %v667_v3  ;;  %v5933_v63 = vld [vmem:[#allocation56_spill] sm:$0xff]  ;;  %v5936_v3 = vld [vmem:[#allocation59_spill] sm:$0xff] }
 0x152   :  { %3162 = vtanh.f32 %v4223_v2 }
 0x15c   :  { %v3163_v55 = vpop.eup %3162 }
 0x15d   :  { %v671_v56 = vmul.f32 %v3163_v55, %v3161_v50  ;;  %v5937_v50 = vld [vmem:[#allocation60_spill] sm:$0xff]  ;;  %v5938_v55 = vld [vmem:[#allocation61_spill] sm:$0xff] }
 0x15f   :  { %v673_v57 = vpack.c.bf16 %v671_v56, %v671_v56  ;;  %v5939_v56 = vld [vmem:[#allocation62_spill] sm:$0xff] }
 0x161   :  { %1047 = vmatprep.mubr.bf16.mxu0 %v673_v57  ;;  %1088 = vmatprep.mubr.bf16.mxu1 %v673_v57 }
 0x162   :  { %1048 = vmatmul.mubr.bf16.vlgmr.msra.gmra.mrb[20].mxu0 %v3698_v51  ;;  %1089 = vmatmul.mubr.bf16.vlgmr.msra.gmra.mrb[20].mxu1 %v3698_v51  ;;  %v5941_v51 = vld [vmem:[#allocation64_spill] sm:$0xff] }
 0x163   :  { %1122 = vmatpush1.bf16.msra.mxu0 %v3811_v8  ;;  %1163 = vmatpush1.bf16.msra.mxu1 %v3814_v9  ;;  %v5889_v8 = vld [vmem:[#allocation12_spill] sm:$0xff]  ;;  %v5890_v9 = vld [vmem:[#allocation13_spill] sm:$0xff] }
 0x164   :  { %1123 = vmatprep.subr.bf16.mxu0 %v3818_v10  ;;  %1164 = vmatprep.subr.bf16.mxu1 %v3822_v11  ;;  %v5891_v10 = vld [vmem:[#allocation14_spill] sm:$0xff]  ;;  %v5892_v11 = vld [vmem:[#allocation15_spill] sm:$0xff] }
 0x165   :  { %1153 = vmatprep.mubr.bf16.mxu0 %v5888_v0  ;;  %1194 = vmatprep.mubr.bf16.mxu1 %v5888_v0 }
 0x167   :  { %1124 = vmatpush1.bf16.msra.mxu0 %v3824_v12  ;;  %1165 = vmatpush1.bf16.msra.mxu1 %v3826_v13  ;;  %v5893_v12 = vld [vmem:[#allocation16_spill] sm:$0xff]  ;;  %v5894_v13 = vld [vmem:[#allocation17_spill] sm:$0xff] }
 0x168   :  { %1125 = vmatprep.subr.bf16.mxu0 %v3835_v15  ;;  %1166 = vmatprep.subr.bf16.mxu1 %v3838_v16  ;;  %v5895_v15 = vld [vmem:[#allocation18_spill] sm:$0xff]  ;;  %v5896_v16 = vld [vmem:[#allocation19_spill] sm:$0xff] }
 0x16b   :  { %1126 = vmatpush1.bf16.msra.mxu0 %v3841_v17  ;;  %1167 = vmatpush1.bf16.msra.mxu1 %v3843_v18  ;;  %v5897_v17 = vld [vmem:[#allocation20_spill] sm:$0xff]  ;;  %v5898_v18 = vld [vmem:[#allocation21_spill] sm:$0xff] }
 0x16c   :  { %1127 = vmatprep.subr.bf16.mxu0 %v3847_v19  ;;  %1168 = vmatprep.subr.bf16.mxu1 %v3850_v20  ;;  %v5899_v19 = vld [vmem:[#allocation22_spill] sm:$0xff]  ;;  %v5900_v20 = vld [vmem:[#allocation23_spill] sm:$0xff] }
 0x16f   :  { %1128 = vmatpush1.bf16.msra.mxu0 %v3854_v21  ;;  %1169 = vmatpush1.bf16.msra.mxu1 %v3857_v22  ;;  %v5901_v21 = vld [vmem:[#allocation24_spill] sm:$0xff]  ;;  %v5902_v22 = vld [vmem:[#allocation25_spill] sm:$0xff] }
 0x170   :  { %1129 = vmatprep.subr.bf16.mxu0 %v3862_v23  ;;  %1170 = vmatprep.subr.bf16.mxu1 %v3866_v24  ;;  %v5903_v23 = vld [vmem:[#allocation26_spill] sm:$0xff]  ;;  %v5904_v24 = vld [vmem:[#allocation27_spill] sm:$0xff] }
 0x173   :  { %1130 = vmatpush1.bf16.msra.mxu0 %v3872_v26  ;;  %1171 = vmatpush1.bf16.msra.mxu1 %v3876_v27  ;;  %v5905_v26 = vld [vmem:[#allocation28_spill] sm:$0xff]  ;;  %v5906_v27 = vld [vmem:[#allocation29_spill] sm:$0xff] }
 0x174   :  { %1131 = vmatprep.subr.bf16.mxu0 %v3878_v28  ;;  %1172 = vmatprep.subr.bf16.mxu1 %v3881_v29  ;;  %v5907_v28 = vld [vmem:[#allocation30_spill] sm:$0xff]  ;;  %v5908_v29 = vld [vmem:[#allocation31_spill] sm:$0xff] }
 0x177   :  { %1132 = vmatpush1.bf16.msra.mxu0 %v3886_v30  ;;  %1173 = vmatpush1.bf16.msra.mxu1 %v3888_v31  ;;  %v5909_v30 = vld [vmem:[#allocation32_spill] sm:$0xff]  ;;  %v5910_v31 = vld [vmem:[#allocation33_spill] sm:$0xff] }
 0x178   :  { %1133 = vmatprep.subr.bf16.mxu0 %v3896_v33  ;;  %1174 = vmatprep.subr.bf16.mxu1 %v3900_v34  ;;  %v5911_v33 = vld [vmem:[#allocation34_spill] sm:$0xff]  ;;  %v5912_v34 = vld [vmem:[#allocation35_spill] sm:$0xff] }
 0x17b   :  { %1134 = vmatpush1.bf16.msra.mxu0 %v3902_v35  ;;  %1175 = vmatpush1.bf16.msra.mxu1 %v3904_v36  ;;  %v5913_v35 = vld [vmem:[#allocation36_spill] sm:$0xff]  ;;  %v5914_v36 = vld [vmem:[#allocation37_spill] sm:$0xff] }
 0x17c   :  { %1135 = vmatprep.subr.bf16.mxu0 %v3906_v37  ;;  %1176 = vmatprep.subr.bf16.mxu1 %v3909_v38  ;;  %v5915_v37 = vld [vmem:[#allocation38_spill] sm:$0xff]  ;;  %v5916_v38 = vld [vmem:[#allocation39_spill] sm:$0xff] }
 0x17f   :  { %1136 = vmatpush1.bf16.msra.mxu0 %v3914_v39  ;;  %1177 = vmatpush1.bf16.msra.mxu1 %v3918_v40  ;;  %v5917_v39 = vld [vmem:[#allocation40_spill] sm:$0xff]  ;;  %v5918_v40 = vld [vmem:[#allocation41_spill] sm:$0xff] }
 0x180   :  { %1233 = vmatprep.subr.bf16.mxu0 %v3930_v41  ;;  %1274 = vmatprep.subr.bf16.mxu1 %v3932_v42 }
 0x182   :  { %1154 = vmatmul.mubr.bf16.vlgmr.msra.gmra.mrb[24].mxu0 %v673_v57  ;;  %1195 = vmatmul.mubr.bf16.vlgmr.msra.gmra.mrb[24].mxu1 %v673_v57  ;;  %v5940_v57 = vld [vmem:[#allocation63_spill] sm:$0xff] }
 0x183   :  { %1234 = vmatpush1.bf16.msra.mxu0 %v3934_v43  ;;  %1275 = vmatpush1.bf16.msra.mxu1 %v3936_v44 }
 0x184   :  { %1235 = vmatprep.subr.bf16.mxu0 %v3942_v45  ;;  %1276 = vmatprep.subr.bf16.mxu1 %v3944_v46 }
 0x187   :  { %1236 = vmatpush1.bf16.msra.mxu0 %v3946_v47  ;;  %1277 = vmatpush1.bf16.msra.mxu1 %v3948_v48 }
 0x188   :  { %1237 = vmatprep.subr.bf16.mxu0 %v3954_v49  ;;  %1278 = vmatprep.subr.bf16.mxu1 %v5889_v8 }
 0x18b   :  { %1238 = vmatpush1.bf16.msra.mxu0 %v5890_v9  ;;  %1279 = vmatpush1.bf16.msra.mxu1 %v5891_v10 }
 0x18c   :  { %1239 = vmatprep.subr.bf16.mxu0 %v5892_v11  ;;  %1280 = vmatprep.subr.bf16.mxu1 %v5893_v12 }
 0x18f   :  { %1240 = vmatpush1.bf16.msra.mxu0 %v5894_v13  ;;  %1281 = vmatpush1.bf16.msra.mxu1 %v5895_v15 }
 0x190   :  { %1241 = vmatprep.subr.bf16.mxu0 %v5896_v16  ;;  %1282 = vmatprep.subr.bf16.mxu1 %v5897_v17 }
 0x193   :  { %1242 = vmatpush1.bf16.msra.mxu0 %v5898_v18  ;;  %1283 = vmatpush1.bf16.msra.mxu1 %v5899_v19 }
 0x194   :  { %1243 = vmatprep.subr.bf16.mxu0 %v5900_v20  ;;  %1284 = vmatprep.subr.bf16.mxu1 %v5901_v21 }
 0x197   :  { %1244 = vmatpush1.bf16.msra.mxu0 %v5902_v22  ;;  %1285 = vmatpush1.bf16.msra.mxu1 %v5903_v23 }
 0x198   :  { %1245 = vmatprep.subr.bf16.mxu0 %v5904_v24  ;;  %1286 = vmatprep.subr.bf16.mxu1 %v5905_v26 }
 0x19b   :  { %1246 = vmatpush1.bf16.msra.mxu0 %v5906_v27  ;;  %1287 = vmatpush1.bf16.msra.mxu1 %v5907_v28 }
 0x19c   :  { %1247 = vmatprep.subr.bf16.mxu0 %v5908_v29  ;;  %1288 = vmatprep.subr.bf16.mxu1 %v5909_v30 }
 0x19f   :  { %1248 = vmatpush1.bf16.msra.mxu0 %v5910_v31  ;;  %1289 = vmatpush1.bf16.msra.mxu1 %v5911_v33 }
 0x1a0   :  { %1249 = vmatprep.subr.bf16.mxu0 %v5912_v34  ;;  %1290 = vmatprep.subr.bf16.mxu1 %v5913_v35 }
 0x1a3   :  { %1250 = vmatpush1.bf16.msra.mxu0 %v5914_v36  ;;  %1291 = vmatpush1.bf16.msra.mxu1 %v5915_v37 }
 0x1a4   :  { %1251 = vmatprep.subr.bf16.mxu0 %v5916_v38  ;;  %1292 = vmatprep.subr.bf16.mxu1 %v5917_v39 }
 0x1a7   :  { %1252 = vmatpush1.bf16.msra.mxu0 %v5918_v40  ;;  %1293 = vmatpush1.bf16.msra.mxu1 %v5919_v59 }
 0x1a8   :  { %1253 = vmatprep.subr.bf16.mxu0 %v5920_v58  ;;  %1294 = vmatprep.subr.bf16.mxu1 %v5921_v14 }
 0x1ab   :  { %1254 = vmatpush1.bf16.msra.mxu0 %v5922_v1  ;;  %1295 = vmatpush1.bf16.msra.mxu1 %v5923_v60 }
 0x1ac   :  { %1255 = vmatprep.subr.bf16.mxu0 %v5924_v4  ;;  %1296 = vmatprep.subr.bf16.mxu1 %v5925_v61 }
 0x1af   :  { %1256 = vmatpush1.bf16.msra.mxu0 %v5926_v5  ;;  %1297 = vmatpush1.bf16.msra.mxu1 %v5927_v6 }
 0x1b0   :  { %1257 = vmatprep.subr.bf16.mxu0 %v5928_v62  ;;  %1298 = vmatprep.subr.bf16.mxu1 %v5929_v25 }
 0x1b3   :  { %1258 = vmatpush1.bf16.msra.mxu0 %v5930_v53  ;;  %1299 = vmatpush1.bf16.msra.mxu1 %v5931_v7  ;;  %v5942_v7 = vld [vmem:[#allocation65_spill] sm:$0xff] }
 0x1b4   :  { %1259 = vmatprep.subr.bf16.mxu0 %v5932_v32  ;;  %1300 = vmatprep.subr.bf16.mxu1 %v5933_v63  ;;  %v5943_v32 = vld [vmem:[#allocation66_spill] sm:$0xff]  ;;  %v4322_v63 = vld [vmem:[#allocation2 + $0x4] ss:$16 sps:$4 sm:$0xff]  }
 0x1b5   :  { %5944 = vst [vmem:[#allocation12_spill] sm:$0xff] %v4322_v63 }
 0x1b7   :  { %1260 = vmatpush1.bf16.msra.mxu0 %v5934_v52  ;;  %1301 = vmatpush1.bf16.msra.mxu1 %v5935_v54  ;;  %v4325_v54 = vld [vmem:[#allocation2 + $0xc] ss:$16 sps:$4 sm:$0xff]  }
 0x1b8   :  { %1261 = vmatprep.subr.bf16.mxu0 %v5936_v3  ;;  %1302 = vmatprep.subr.bf16.mxu1 %v5937_v50  ;;  %5945 = vst [vmem:[#allocation13_spill] sm:$0xff] %v4325_v54 }
 0x1bb   :  { %1262 = vmatpush1.bf16.msra.mxu0 %v5938_v55  ;;  %1303 = vmatpush1.bf16.msra.mxu1 %v5939_v56  ;;  %v168_v56 = vld [vmem:[%s5458_s5] sm:$0xf] }
 0x1bc   :  { %1263 = vmatprep.subr.bf16.mxu0 %v5940_v57  ;;  %1304 = vmatprep.subr.bf16.mxu1 %v5941_v51  ;;  %v5946_v55 = vld [vmem:[#allocation67_spill] sm:$0xff] }
 0x1bd   :  { %v5947_v57 = vsub.s32 0, %v5946_v55 }
 0x1bf   :  { %1264 = vmatpush1.bf16.msra.mxu0 %v5942_v7  ;;  %1305 = vmatpush1.bf16.msra.mxu1 %v5943_v32  ;;  %v4333_v50 = vrot.slane %v168_v56, %v5947_v57  ;;  %v5949_v7 = vsub.s32 1, %v5946_v55  ;;  %v5951_v57 = vsub.s32 3, %v5946_v55 }
 0x1c0   :  { %1339 = vmatprep.subr.bf16.mxu0 %v4322_v63  ;;  %1380 = vmatprep.subr.bf16.mxu1 %v4325_v54 }
 0x1c1   :  { %5948 = vst [vmem:[#allocation14_spill] sm:$0xff] %v4333_v50  ;;  %v4337_v51 = vrot.slane %v168_v56, %v5949_v7  ;;  %v4343_v7 = vrot.slane %v168_v56, %v5951_v57 }
 0x1c3   :  { %5950 = vst [vmem:[#allocation15_spill] sm:$0xff] %v4337_v51  ;;  %5952 = vst [vmem:[#allocation16_spill] sm:$0xff] %v4343_v7 }
 0x235   :  { %v1049_v32 = vpop.f32.mrb[20].mxu0  ;;  %v1090_v3 = vpop.f32.mrb[20].mxu1 }
 0x236   :  { %v1050_v63 = vadd.f32 %v1049_v32, %v4333_v50  ;;  %v1051_v52 = vpop.f32.mrb[21].mxu0  ;;  %v1092_v53 = vpop.f32.mrb[21].mxu1 }
 0x237   :  { %v1052_v54 = vadd.f32 %v1051_v52, %v4337_v51  ;;  %v1053_v25 = vpop.f32.mrb[22].mxu0  ;;  %v1094_v62 = vpop.f32.mrb[22].mxu1  ;;  %v1093_v60 = vadd.f32 %v1092_v53, %v4343_v7  ;;  %v5954_v51 = vld [vmem:[#allocation69_spill] sm:$0xff] }
 0x238   :  { %v2891_v6 = vmul.f32 -1.442695, %v1050_v63  ;;  %v1054_v5 = vpop.f32.mrb[23].mxu0  ;;  %v1095_v61 = vpop.f32.mrb[23].mxu1 }
 0x239   :  { %v2892_v4 = vmul.f32 -1.442695, %v1052_v54  ;;  %v5953_v54 = vld [vmem:[#allocation68_spill] sm:$0xff] }
 0x23a   :  { %3164 = vpow2.f32 %v2891_v6 }
 0x23b   :  { %3166 = vpow2.f32 %v2892_v4 }
 0x23c   :  { %3168 = vtanh.f32 %v1093_v60 }
 0x244   :  { %v3165_v1 = vpop.eup %3164 }
 0x245   :  { %v3167_v32 = vpop.eup %3166  ;;  %v1106_v50 = vadd.f32 1.0, %v3165_v1  ;;  %v5955_v1 = vsub.s32 2, %v5946_v55 }
 0x246   :  { %v1107_v14 = vadd.f32 1.0, %v3167_v32  ;;  %v3169_v62 = vpop.eup %3168  ;;  %v5957_v32 = vld [vmem:[#allocation71_spill] sm:$0xff] }
 0x247   :  { %3170 = vrcp.f32 %v1106_v50  ;;  %v4352_v60 = vrot.slane %v168_v56, %v5955_v1 }
 0x248   :  { %3172 = vrcp.f32 %v1107_v14  ;;  %v5956_v14 = vld [vmem:[#allocation70_spill] sm:$0xff] }
 0x251   :  { %v3171_v25 = vpop.eup %3170 }
 0x252   :  { %v3173_v5 = vpop.eup %3172  ;;  %v1117_v61 = vmul.f32 %v3171_v25, %v3169_v62 }
 0x253   :  { %v1116_v63 = vmul.f32 0.0, %v3173_v5 }
 0x255   :  { %v4346_v6 = vadd.f32 %v1117_v61, %v1116_v63  ;;  %v1155_v4 = vpop.f32.mrb[24].mxu0  ;;  %v1196_v52 = vpop.f32.mrb[24].mxu1 }
 0x256   :  { %v1203_v57 = vadd.f32 %v1155_v4, %v5953_v54  ;;  %v1205_v53 = vadd.f32 %v1196_v52, %v5954_v51  ;;  %v1157_v7 = vpop.f32.mrb[25].mxu0  ;;  %v1198_v58 = vpop.f32.mrb[25].mxu1  ;;  %v1091_v4 = vadd.f32 %v1090_v3, %v4352_v60 }
 0x257   :  { %v1204_v50 = vadd.f32 %v1157_v7, %v5956_v14  ;;  %v1206_v59 = vadd.f32 %v1198_v58, %v5957_v32  ;;  %v1159_v62 = vpop.f32.mrb[26].mxu0  ;;  %v1200_v25 = vpop.f32.mrb[26].mxu1 }
 0x258   :  { %v2894_v5 = vmul.f32 -1.442695, %v1203_v57  ;;  %v1160_v61 = vpop.f32.mrb[27].mxu0  ;;  %v1201_v63 = vpop.f32.mrb[27].mxu1  ;;  %v2893_v51 = vmul.f32 -1.442695, %v1091_v4 }
 0x259   :  { %v2895_v40 = vmul.f32 -1.442695, %v1204_v50  ;;  %v2896_v52 = vmul.f32 -1.442695, %v1205_v53 }
 0x25a   :  { %3174 = vpow2.f32 %v2894_v5 }
 0x25b   :  { %3176 = vpow2.f32 %v2895_v40 }
 0x25c   :  { %3178 = vpow2.f32 %v2893_v51 }
 0x25d   :  { %3180 = vtanh.f32 %v1206_v59 }
 0x25e   :  { %3182 = vpow2.f32 %v2896_v52 }
 0x264   :  { %v3175_v55 = vpop.eup %3174 }
 0x265   :  { %v1216_v56 = vadd.f32 1.0, %v3175_v55  ;;  %v3177_v54 = vpop.eup %3176  ;;  %v4369_v55 = vld [vmem:[#allocation2 + $0x8] ss:$16 sps:$4 sm:$0xff]  }
 0x266   :  { %v1217_v58 = vadd.f32 1.0, %v3177_v54  ;;  %v3179_v7 = vpop.eup %3178  ;;  %v4375_v54 = vld [vmem:[#allocation2 + $0x2c] ss:$16 sps:$4 sm:$0xff]  }
 0x267   :  { %3184 = vrcp.f32 %v1216_v56  ;;  %v3181_v57 = vpop.eup %3180  ;;  %v1108_v14 = vadd.f32 1.0, %v3179_v7  ;;  %v4372_v56 = vld [vmem:[#allocation2 + $0x24] ss:$16 sps:$4 sm:$0xff]   ;;  %v4383_v7 = vld [vmem:[#allocation2 + $0x28] ss:$16 sps:$4 sm:$0xff]  }
 0x268   :  { %3186 = vrcp.f32 %v1217_v58  ;;  %v3183_v1 = vpop.eup %3182  ;;  %v4380_v58 = vld [vmem:[#allocation2 + $0x20] ss:$16 sps:$4 sm:$0xff]  }
 0x269   :  { %v1218_v3 = vadd.f32 1.0, %v3183_v1  ;;  %3188 = vrcp.f32 %v1108_v14  ;;  %v4389_v1 = vld [vmem:[#allocation2 + $0x4c] ss:$16 sps:$4 sm:$0xff]   ;;  %v4392_v14 = vld [vmem:[#allocation2 + $0x40] ss:$16 sps:$4 sm:$0xff]  }
 0x26a   :  { %3190 = vtanh.f32 %v4346_v6 }
 0x26b   :  { %3192 = vrcp.f32 %v1218_v3  ;;  %v4404_v3 = vld [vmem:[#allocation2 + $0x60] ss:$16 sps:$4 sm:$0xff]  }
 0x271   :  { %v3185_v50 = vpop.eup %3184 }
 0x272   :  { %v1227_v32 = vmul.f32 %v3185_v50, %v3181_v57  ;;  %v3187_v62 = vpop.eup %3186  ;;  %v4386_v57 = vld [vmem:[#allocation2 + $0x44] ss:$16 sps:$4 sm:$0xff]   ;;  %v4395_v50 = vld [vmem:[#allocation2 + $0x48] ss:$16 sps:$4 sm:$0xff]  }
 0x273   :  { %v1226_v40 = vmul.f32 %v3187_v62, %v4223_v2  ;;  %v3189_v59 = vpop.eup %3188  ;;  %v4366_v2 = vld [vmem:[#allocation2] ss:$16 sps:$4 sm:$0xff]   ;;  %v4401_v62 = vld [vmem:[#allocation2 + $0x6c] ss:$16 sps:$4 sm:$0xff]  }
 0x274   :  { %v3191_v25 = vpop.eup %3190 }
 0x275   :  { %v4359_v53 = vadd.f32 %v1227_v32, %v1226_v40  ;;  %v3193_v5 = vpop.eup %3192  ;;  %v1120_v63 = vmul.f32 %v3191_v25, %v3189_v59  ;;  %v4398_v32 = vld [vmem:[#allocation2 + $0x64] ss:$16 sps:$4 sm:$0xff]   ;;  %v4407_v40 = vld [vmem:[#allocation2 + $0x68] ss:$16 sps:$4 sm:$0xff]   ;;  %v4413_v25 = vld [vmem:[#allocation2 + $0x8c] ss:$16 sps:$4 sm:$0xff]  }
 0x276   :  { %v4410_v59 = vld [vmem:[#allocation2 + $0x84] ss:$16 sps:$4 sm:$0xff]   ;;  %5958 = vst [vmem:[#allocation17_spill] sm:$0xff] %v4413_v25 }
 0x277   :  { %3194 = vtanh.f32 %v4359_v53  ;;  %v1231_v52 = vpack.c.bf16 %v1120_v63, %v1120_v63  ;;  %v4422_v63 = vld [vmem:[#allocation2 + $0xa4] ss:$16 sps:$4 sm:$0xff]  }
 0x278   :  { %5961 = vst [vmem:[#allocation20_spill] sm:$0xff] %v4422_v63 }
 0x281   :  { %v3195_v61 = vpop.eup %3194 }
 0x282   :  { %v1230_v4 = vmul.f32 %v3195_v61, %v3193_v5  ;;  %v4416_v5 = vld [vmem:[#allocation2 + $0x80] ss:$16 sps:$4 sm:$0xff]   ;;  %v4419_v61 = vld [vmem:[#allocation2 + $0x88] ss:$16 sps:$4 sm:$0xff]  }
 0x283   :  { %5959 = vst [vmem:[#allocation18_spill] sm:$0xff] %v4416_v5  ;;  %5960 = vst [vmem:[#allocation19_spill] sm:$0xff] %v4419_v61 }
 0x284   :  { %v4362_v51 = vpack.c.bf16 %v1230_v4, %v1230_v4  ;;  %v4425_v4 = vld [vmem:[#allocation2 + $0xac] ss:$16 sps:$4 sm:$0xff]  }
 0x285   :  { %5962 = vst [vmem:[#allocation21_spill] sm:$0xff] %v4425_v4 }
 0x286   :  { %1265 = vmatprep.mubr.bf16.mxu0 %v4362_v51  ;;  %1306 = vmatprep.mubr.bf16.mxu1 %v4362_v51 }
 0x287   :  { %1266 = vmatmul.mubr.bf16.vlgmr.msra.gmra.mrb[28].mxu0 %v1231_v52  ;;  %1307 = vmatmul.mubr.bf16.vlgmr.msra.gmra.mrb[28].mxu1 %v1231_v52  ;;  %v4428_v52 = vld [vmem:[#allocation2 + $0xa0] ss:$16 sps:$4 sm:$0xff]  }
 0x288   :  { %1340 = vmatpush1.bf16.msra.mxu0 %v4366_v2  ;;  %1381 = vmatpush1.bf16.msra.mxu1 %v4369_v55  ;;  %5963 = vst [vmem:[#allocation22_spill] sm:$0xff] %v4428_v52 }
 0x289   :  { %1341 = vmatprep.subr.bf16.mxu0 %v4372_v56  ;;  %1382 = vmatprep.subr.bf16.mxu1 %v4375_v54 }
 0x28a   :  { %1371 = vmatprep.mubr.bf16.mxu0 %v5888_v0  ;;  %1412 = vmatprep.mubr.bf16.mxu1 %v5888_v0 }
 0x28c   :  { %1342 = vmatpush1.bf16.msra.mxu0 %v4380_v58  ;;  %1383 = vmatpush1.bf16.msra.mxu1 %v4383_v7 }
 0x28d   :  { %1343 = vmatprep.subr.bf16.mxu0 %v4386_v57  ;;  %1384 = vmatprep.subr.bf16.mxu1 %v4389_v1 }
 0x290   :  { %1344 = vmatpush1.bf16.msra.mxu0 %v4392_v14  ;;  %1385 = vmatpush1.bf16.msra.mxu1 %v4395_v50 }
 0x291   :  { %1345 = vmatprep.subr.bf16.mxu0 %v4398_v32  ;;  %1386 = vmatprep.subr.bf16.mxu1 %v4401_v62 }
 0x294   :  { %1346 = vmatpush1.bf16.msra.mxu0 %v4404_v3  ;;  %1387 = vmatpush1.bf16.msra.mxu1 %v4407_v40 }
 0x295   :  { %1347 = vmatprep.subr.bf16.mxu0 %v4410_v59  ;;  %1388 = vmatprep.subr.bf16.mxu1 %v4413_v25  ;;  %v4431_v25 = vld [vmem:[#allocation2 + $0xa8] ss:$16 sps:$4 sm:$0xff]  }
 0x296   :  { %5964 = vst [vmem:[#allocation23_spill] sm:$0xff] %v4431_v25 }
 0x298   :  { %1348 = vmatpush1.bf16.msra.mxu0 %v4416_v5  ;;  %1389 = vmatpush1.bf16.msra.mxu1 %v4419_v61  ;;  %v4434_v5 = vld [vmem:[#allocation2 + $0xc4] ss:$16 sps:$4 sm:$0xff]   ;;  %v4437_v61 = vld [vmem:[#allocation2 + $0xcc] ss:$16 sps:$4 sm:$0xff]  }
 0x299   :  { %1349 = vmatprep.subr.bf16.mxu0 %v4422_v63  ;;  %1390 = vmatprep.subr.bf16.mxu1 %v4425_v4  ;;  %5965 = vst [vmem:[#allocation24_spill] sm:$0xff] %v4434_v5  ;;  %5966 = vst [vmem:[#allocation25_spill] sm:$0xff] %v4437_v61  ;;  %v4440_v63 = vld [vmem:[#allocation2 + $0xc0] ss:$16 sps:$4 sm:$0xff]   ;;  %v4443_v4 = vld [vmem:[#allocation2 + $0xc8] ss:$16 sps:$4 sm:$0xff]  }
 0x29c   :  { %1350 = vmatpush1.bf16.msra.mxu0 %v4428_v52  ;;  %1391 = vmatpush1.bf16.msra.mxu1 %v4431_v25  ;;  %v4446_v52 = vld [vmem:[#allocation2 + $0xe4] ss:$16 sps:$4 sm:$0xff]   ;;  %v4449_v25 = vld [vmem:[#allocation2 + $0xec] ss:$16 sps:$4 sm:$0xff]  }
 0x29d   :  { %1351 = vmatprep.subr.bf16.mxu0 %v4434_v5  ;;  %1392 = vmatprep.subr.bf16.mxu1 %v4437_v61  ;;  %v4452_v5 = vld [vmem:[#allocation2 + $0xe0] ss:$16 sps:$4 sm:$0xff]   ;;  %v4455_v61 = vld [vmem:[#allocation2 + $0xe8] ss:$16 sps:$4 sm:$0xff]  }
 0x2a0   :  { %1352 = vmatpush1.bf16.msra.mxu0 %v4440_v63  ;;  %1393 = vmatpush1.bf16.msra.mxu1 %v4443_v4 }
 0x2a1   :  { %1353 = vmatprep.subr.bf16.mxu0 %v4446_v52  ;;  %1394 = vmatprep.subr.bf16.mxu1 %v4449_v25 }
 0x2a4   :  { %1354 = vmatpush1.bf16.msra.mxu0 %v4452_v5  ;;  %1395 = vmatpush1.bf16.msra.mxu1 %v4455_v61 }
 0x2a5   :  { %1451 = vmatprep.subr.bf16.mxu0 %v3930_v41  ;;  %1492 = vmatprep.subr.bf16.mxu1 %v3932_v42  ;;  %v5967_v41 = vld [vmem:[#allocation41_spill] sm:$0xff]  ;;  %v5968_v42 = vld [vmem:[#allocation42_spill] sm:$0xff] }
 0x2a7   :  { %1372 = vmatmul.mubr.bf16.vlgmr.msra.gmra.mrb[32].mxu0 %v4362_v51  ;;  %1413 = vmatmul.mubr.bf16.vlgmr.msra.gmra.mrb[32].mxu1 %v4362_v51 }
 0x2a8   :  { %1452 = vmatpush1.bf16.msra.mxu0 %v3934_v43  ;;  %1493 = vmatpush1.bf16.msra.mxu1 %v3936_v44  ;;  %v5969_v43 = vld [vmem:[#allocation43_spill] sm:$0xff]  ;;  %v5970_v44 = vld [vmem:[#allocation44_spill] sm:$0xff] }
 0x2a9   :  { %1453 = vmatprep.subr.bf16.mxu0 %v3942_v45  ;;  %1494 = vmatprep.subr.bf16.mxu1 %v3944_v46  ;;  %v5971_v45 = vld [vmem:[#allocation45_spill] sm:$0xff]  ;;  %v5972_v46 = vld [vmem:[#allocation46_spill] sm:$0xff] }
 0x2ac   :  { %1454 = vmatpush1.bf16.msra.mxu0 %v3946_v47  ;;  %1495 = vmatpush1.bf16.msra.mxu1 %v3948_v48  ;;  %v5973_v47 = vld [vmem:[#allocation47_spill] sm:$0xff]  ;;  %v5974_v48 = vld [vmem:[#allocation48_spill] sm:$0xff] }
 0x2ad   :  { %1455 = vmatprep.subr.bf16.mxu0 %v3954_v49  ;;  %1496 = vmatprep.subr.bf16.mxu1 %v5889_v8  ;;  %v5975_v49 = vld [vmem:[#allocation49_spill] sm:$0xff]  ;;  %v5976_v8 = vld [vmem:[#allocation50_spill] sm:$0xff] }
 0x2b0   :  { %1456 = vmatpush1.bf16.msra.mxu0 %v5890_v9  ;;  %1497 = vmatpush1.bf16.msra.mxu1 %v5891_v10  ;;  %v5977_v9 = vld [vmem:[#allocation51_spill] sm:$0xff]  ;;  %v5978_v10 = vld [vmem:[#allocation52_spill] sm:$0xff] }
 0x2b1   :  { %1457 = vmatprep.subr.bf16.mxu0 %v5892_v11  ;;  %1498 = vmatprep.subr.bf16.mxu1 %v5893_v12  ;;  %v5979_v11 = vld [vmem:[#allocation53_spill] sm:$0xff]  ;;  %v5980_v12 = vld [vmem:[#allocation54_spill] sm:$0xff] }
 0x2b4   :  { %1458 = vmatpush1.bf16.msra.mxu0 %v5894_v13  ;;  %1499 = vmatpush1.bf16.msra.mxu1 %v5895_v15  ;;  %v5981_v13 = vld [vmem:[#allocation55_spill] sm:$0xff]  ;;  %v5982_v15 = vld [vmem:[#allocation56_spill] sm:$0xff] }
 0x2b5   :  { %1459 = vmatprep.subr.bf16.mxu0 %v5896_v16  ;;  %1500 = vmatprep.subr.bf16.mxu1 %v5897_v17  ;;  %v5983_v16 = vld [vmem:[#allocation57_spill] sm:$0xff]  ;;  %v5984_v17 = vld [vmem:[#allocation58_spill] sm:$0xff] }
 0x2b8   :  { %1460 = vmatpush1.bf16.msra.mxu0 %v5898_v18  ;;  %1501 = vmatpush1.bf16.msra.mxu1 %v5899_v19  ;;  %v5985_v18 = vld [vmem:[#allocation59_spill] sm:$0xff]  ;;  %v5986_v19 = vld [vmem:[#allocation60_spill] sm:$0xff] }
 0x2b9   :  { %1461 = vmatprep.subr.bf16.mxu0 %v5900_v20  ;;  %1502 = vmatprep.subr.bf16.mxu1 %v5901_v21  ;;  %v5987_v20 = vld [vmem:[#allocation61_spill] sm:$0xff]  ;;  %v5988_v21 = vld [vmem:[#allocation62_spill] sm:$0xff] }
 0x2bc   :  { %1462 = vmatpush1.bf16.msra.mxu0 %v5902_v22  ;;  %1503 = vmatpush1.bf16.msra.mxu1 %v5903_v23  ;;  %v5989_v22 = vld [vmem:[#allocation63_spill] sm:$0xff]  ;;  %v5990_v23 = vld [vmem:[#allocation64_spill] sm:$0xff] }
 0x2bd   :  { %1463 = vmatprep.subr.bf16.mxu0 %v5904_v24  ;;  %1504 = vmatprep.subr.bf16.mxu1 %v5905_v26  ;;  %v5991_v24 = vld [vmem:[#allocation65_spill] sm:$0xff]  ;;  %v5992_v26 = vld [vmem:[#allocation66_spill] sm:$0xff] }
 0x2c0   :  { %1464 = vmatpush1.bf16.msra.mxu0 %v5906_v27  ;;  %1505 = vmatpush1.bf16.msra.mxu1 %v5907_v28  ;;  %v5993_v27 = vld [vmem:[#allocation12_spill] sm:$0xff]  ;;  %v5994_v28 = vld [vmem:[#allocation13_spill] sm:$0xff] }
 0x2c1   :  { %1465 = vmatprep.subr.bf16.mxu0 %v5908_v29  ;;  %1506 = vmatprep.subr.bf16.mxu1 %v5909_v30 }
 0x2c4   :  { %1466 = vmatpush1.bf16.msra.mxu0 %v5910_v31  ;;  %1507 = vmatpush1.bf16.msra.mxu1 %v5911_v33  ;;  %v5995_v31 = vld [vmem:[#allocation14_spill] sm:$0xff] }
 0x2c5   :  { %1467 = vmatprep.subr.bf16.mxu0 %v5912_v34  ;;  %1508 = vmatprep.subr.bf16.mxu1 %v5913_v35 }
 0x2c8   :  { %1468 = vmatpush1.bf16.msra.mxu0 %v5914_v36  ;;  %1509 = vmatpush1.bf16.msra.mxu1 %v5915_v37  ;;  %v5996_v36 = vld [vmem:[#allocation15_spill] sm:$0xff] }
 0x2c9   :  { %1469 = vmatprep.subr.bf16.mxu0 %v5916_v38  ;;  %1510 = vmatprep.subr.bf16.mxu1 %v5917_v39 }
 0x2cc   :  { %1470 = vmatpush1.bf16.msra.mxu0 %v5967_v41  ;;  %1511 = vmatpush1.bf16.msra.mxu1 %v5968_v42 }
 0x2cd   :  { %1471 = vmatprep.subr.bf16.mxu0 %v5969_v43  ;;  %1512 = vmatprep.subr.bf16.mxu1 %v5970_v44  ;;  %v5997_v44 = vld [vmem:[#allocation16_spill] sm:$0xff] }
 0x2d0   :  { %1472 = vmatpush1.bf16.msra.mxu0 %v5971_v45  ;;  %1513 = vmatpush1.bf16.msra.mxu1 %v5972_v46 }
 0x2d1   :  { %1473 = vmatprep.subr.bf16.mxu0 %v5973_v47  ;;  %1514 = vmatprep.subr.bf16.mxu1 %v5974_v48 }
 0x2d4   :  { %1474 = vmatpush1.bf16.msra.mxu0 %v5975_v49  ;;  %1515 = vmatpush1.bf16.msra.mxu1 %v5976_v8 }
 0x2d5   :  { %1475 = vmatprep.subr.bf16.mxu0 %v5977_v9  ;;  %1516 = vmatprep.subr.bf16.mxu1 %v5978_v10 }
 0x2d8   :  { %1476 = vmatpush1.bf16.msra.mxu0 %v5979_v11  ;;  %1517 = vmatpush1.bf16.msra.mxu1 %v5980_v12 }
 0x2d9   :  { %1477 = vmatprep.subr.bf16.mxu0 %v5981_v13  ;;  %1518 = vmatprep.subr.bf16.mxu1 %v5982_v15 }
 0x2dc   :  { %1478 = vmatpush1.bf16.msra.mxu0 %v5983_v16  ;;  %1519 = vmatpush1.bf16.msra.mxu1 %v5984_v17  ;;  %v5998_v17 = vld [vmem:[#allocation72_spill] sm:$0xff] }
 0x2dd   :  { %1479 = vmatprep.subr.bf16.mxu0 %v5985_v18  ;;  %1520 = vmatprep.subr.bf16.mxu1 %v5986_v19  ;;  %v5999_v19 = vld [vmem:[#allocation73_spill] sm:$0xff] }
 0x2e0   :  { %1480 = vmatpush1.bf16.msra.mxu0 %v5987_v20  ;;  %1521 = vmatpush1.bf16.msra.mxu1 %v5988_v21 }
 0x2e1   :  { %1481 = vmatprep.subr.bf16.mxu0 %v5989_v22  ;;  %1522 = vmatprep.subr.bf16.mxu1 %v5990_v23  ;;  %v6000_v23 = vld [vmem:[#allocation74_spill] sm:$0xff] }
 0x2e4   :  { %1482 = vmatpush1.bf16.msra.mxu0 %v5991_v24  ;;  %1523 = vmatpush1.bf16.msra.mxu1 %v5992_v26  ;;  %v6001_v26 = vld [vmem:[#allocation75_spill] sm:$0xff] }
 0x2e5   :  { %1557 = vmatprep.subr.bf16.mxu0 %v5993_v27  ;;  %1598 = vmatprep.subr.bf16.mxu1 %v5994_v28 }
 0x35a   :  { %v1267_v29 = vpop.f32.mrb[28].mxu0  ;;  %v1308_v30 = vpop.f32.mrb[28].mxu1 }
 0x35b   :  { %v1268_v33 = vadd.f32 %v1267_v29, %v5995_v31  ;;  %v1269_v34 = vpop.f32.mrb[29].mxu0  ;;  %v1310_v35 = vpop.f32.mrb[29].mxu1 }
 0x35c   :  { %v1270_v37 = vadd.f32 %v1269_v34, %v5996_v36  ;;  %v1271_v38 = vpop.f32.mrb[30].mxu0  ;;  %v1312_v39 = vpop.f32.mrb[30].mxu1  ;;  %v1311_v45 = vadd.f32 %v1310_v35, %v5997_v44 }
 0x35d   :  { %v2897_v51 = vmul.f32 -1.442695, %v1268_v33  ;;  %v1272_v41 = vpop.f32.mrb[31].mxu0  ;;  %v1313_v42 = vpop.f32.mrb[31].mxu1  ;;  %v1309_v39 = vadd.f32 %v1308_v30, %v4352_v60 }
 0x35e   :  { %v2898_v43 = vmul.f32 -1.442695, %v1270_v37 }
 0x35f   :  { %3196 = vpow2.f32 %v2897_v51  ;;  %v2899_v51 = vmul.f32 -1.442695, %v1309_v39  ;;  %v4577_v39 = vld [vmem:[#allocation5 + $0xc] ss:$16 sps:$4 sm:$0xff]  }
 0x360   :  { %3198 = vpow2.f32 %v2898_v43 }
 0x361   :  { %3200 = vtanh.f32 %v1311_v45 }
 0x369   :  { %v3197_v46 = vpop.eup %3196 }
 0x36a   :  { %v1324_v47 = vadd.f32 1.0, %v3197_v46  ;;  %v3199_v48 = vpop.eup %3198 }
 0x36b   :  { %v1325_v49 = vadd.f32 1.0, %v3199_v48  ;;  %v3201_v8 = vpop.eup %3200 }
 0x36c   :  { %3202 = vrcp.f32 %v1324_v47 }
 0x36d   :  { %3204 = vrcp.f32 %v1325_v49 }
 0x376   :  { %v3203_v9 = vpop.eup %3202 }
 0x377   :  { %v1335_v10 = vmul.f32 %v3203_v9, %v3201_v8  ;;  %v3205_v11 = vpop.eup %3204 }
 0x378   :  { %v1334_v12 = vmul.f32 %v3205_v11, %v4346_v6 }
 0x37a   :  { %v1373_v13 = vpop.f32.mrb[32].mxu0  ;;  %v1414_v15 = vpop.f32.mrb[32].mxu1  ;;  %v4530_v16 = vadd.f32 %v1335_v10, %v1334_v12 }
 0x37b   :  { %v1421_v18 = vadd.f32 %v1373_v13, %v5998_v17  ;;  %v1423_v20 = vadd.f32 %v1414_v15, %v5999_v19  ;;  %v1375_v21 = vpop.f32.mrb[33].mxu0  ;;  %v1416_v22 = vpop.f32.mrb[33].mxu1 }
 0x37c   :  { %v1422_v24 = vadd.f32 %v1375_v21, %v6000_v23  ;;  %v1424_v29 = vadd.f32 %v1416_v22, %v6001_v26  ;;  %v1377_v33 = vpop.f32.mrb[34].mxu0  ;;  %v1418_v34 = vpop.f32.mrb[34].mxu1  ;;  %v6004_v26 = vld [vmem:[#allocation19_spill] sm:$0xff] }
 0x37d   :  { %v2900_v35 = vmul.f32 -1.442695, %v1421_v18  ;;  %v1378_v37 = vpop.f32.mrb[35].mxu0  ;;  %v1419_v38 = vpop.f32.mrb[35].mxu1  ;;  %v2902_v41 = vmul.f32 -1.442695, %v1423_v20 }
 0x37e   :  { %v2901_v6 = vmul.f32 -1.442695, %v1422_v24  ;;  %v6003_v24 = vld [vmem:[#allocation18_spill] sm:$0xff]  ;;  %v6006_v33 = vld [vmem:[#allocation21_spill] sm:$0xff]  ;;  %v6009_v37 = vld [vmem:[#allocation24_spill] sm:$0xff] }
 0x37f   :  { %3206 = vpow2.f32 %v2900_v35  ;;  %v6007_v34 = vld [vmem:[#allocation22_spill] sm:$0xff]  ;;  %v6008_v35 = vld [vmem:[#allocation23_spill] sm:$0xff]  ;;  %v6010_v38 = vld [vmem:[#allocation25_spill] sm:$0xff] }
 0x380   :  { %3208 = vpow2.f32 %v2901_v6  ;;  %v4574_v6 = vld [vmem:[#allocation5 + $0x4] ss:$16 sps:$4 sm:$0xff]  }
 0x381   :  { %3210 = vpow2.f32 %v2899_v51  ;;  %v4580_v51 = vld [vmem:[#allocation5] ss:$16 sps:$4 sm:$0xff]  }
 0x382   :  { %3212 = vtanh.f32 %v1424_v29  ;;  %v6005_v29 = vld [vmem:[#allocation20_spill] sm:$0xff] }
 0x383   :  { %3214 = vpow2.f32 %v2902_v41  ;;  %v4583_v41 = vld [vmem:[#allocation5 + $0x8] ss:$16 sps:$4 sm:$0xff]  }
 0x389   :  { %v3207_v42 = vpop.eup %3206 }
 0x38a   :  { %v1434_v43 = vadd.f32 1.0, %v3207_v42  ;;  %v3209_v45 = vpop.eup %3208  ;;  %v4586_v42 = vld [vmem:[#allocation5 + $0x24] ss:$16 sps:$4 sm:$0xff]  }
 0x38b   :  { %v1435_v46 = vadd.f32 1.0, %v3209_v45  ;;  %v3211_v47 = vpop.eup %3210  ;;  %v4592_v45 = vld [vmem:[#allocation5 + $0x20] ss:$16 sps:$4 sm:$0xff]  }
 0x38c   :  { %3216 = vrcp.f32 %v1434_v43  ;;  %v3213_v48 = vpop.eup %3212  ;;  %v1326_v9 = vadd.f32 1.0, %v3211_v47  ;;  %v4589_v43 = vld [vmem:[#allocation5 + $0x2c] ss:$16 sps:$4 sm:$0xff]   ;;  %v4598_v47 = vld [vmem:[#allocation5 + $0x44] ss:$16 sps:$4 sm:$0xff]  }
 0x38d   :  { %3218 = vrcp.f32 %v1435_v46  ;;  %v3215_v49 = vpop.eup %3214  ;;  %v4595_v46 = vld [vmem:[#allocation5 + $0x28] ss:$16 sps:$4 sm:$0xff]   ;;  %6011 = vst [vmem:[#allocation26_spill] sm:$0xff] %v4598_v47 }
 0x38e   :  { %v1436_v30 = vadd.f32 1.0, %v3215_v49  ;;  %3220 = vtanh.f32 %v4530_v16  ;;  %v4604_v49 = vld [vmem:[#allocation5 + $0x40] ss:$16 sps:$4 sm:$0xff]  }
 0x38f   :  { %3222 = vrcp.f32 %v1326_v9  ;;  %6013 = vst [vmem:[#allocation28_spill] sm:$0xff] %v4604_v49  ;;  %v4610_v9 = vld [vmem:[#allocation5 + $0x64] ss:$16 sps:$4 sm:$0xff]  }
 0x390   :  { %3224 = vrcp.f32 %v1436_v30  ;;  %6015 = vst [vmem:[#allocation30_spill] sm:$0xff] %v4610_v9  ;;  %v4619_v30 = vld [vmem:[#allocation5 + $0x68] ss:$16 sps:$4 sm:$0xff]  }
 0x391   :  { %6018 = vst [vmem:[#allocation33_spill] sm:$0xff] %v4619_v30 }
 0x396   :  { %v3217_v8 = vpop.eup %3216 }
 0x397   :  { %v1445_v10 = vmul.f32 %v3217_v8, %v3213_v48  ;;  %v3219_v11 = vpop.eup %3218  ;;  %v4601_v48 = vld [vmem:[#allocation5 + $0x4c] ss:$16 sps:$4 sm:$0xff]   ;;  %v4607_v8 = vld [vmem:[#allocation5 + $0x48] ss:$16 sps:$4 sm:$0xff]  }
 0x398   :  { %v1444_v12 = vmul.f32 %v3219_v11, %v4359_v53  ;;  %v3221_v15 = vpop.eup %3220  ;;  %v6002_v53 = vld [vmem:[#allocation17_spill] sm:$0xff]  ;;  %6012 = vst [vmem:[#allocation27_spill] sm:$0xff] %v4601_v48  ;;  %6014 = vst [vmem:[#allocation29_spill] sm:$0xff] %v4607_v8 }
 0x399   :  { %v3223_v17 = vpop.eup %3222  ;;  %v4616_v11 = vld [vmem:[#allocation5 + $0x60] ss:$16 sps:$4 sm:$0xff]  }
 0x39a   :  { %v4539_v13 = vadd.f32 %v1445_v10, %v1444_v12  ;;  %v3225_v18 = vpop.eup %3224  ;;  %v1338_v20 = vmul.f32 %v3223_v17, %v3221_v15  ;;  %v4613_v10 = vld [vmem:[#allocation5 + $0x6c] ss:$16 sps:$4 sm:$0xff]   ;;  %6017 = vst [vmem:[#allocation32_spill] sm:$0xff] %v4616_v11  ;;  %v4622_v12 = vld [vmem:[#allocation5 + $0x84] ss:$16 sps:$4 sm:$0xff]  }
 0x39b   :  { %6016 = vst [vmem:[#allocation31_spill] sm:$0xff] %v4613_v10  ;;  %6019 = vst [vmem:[#allocation34_spill] sm:$0xff] %v4622_v12  ;;  %v4625_v15 = vld [vmem:[#allocation5 + $0x8c] ss:$16 sps:$4 sm:$0xff]   ;;  %v4628_v17 = vld [vmem:[#allocation5 + $0x80] ss:$16 sps:$4 sm:$0xff]  }
 0x39c   :  { %3226 = vtanh.f32 %v4539_v13  ;;  %v1449_v23 = vpack.c.bf16 %v1338_v20, %v1338_v20  ;;  %6020 = vst [vmem:[#allocation35_spill] sm:$0xff] %v4625_v15  ;;  %6021 = vst [vmem:[#allocation36_spill] sm:$0xff] %v4628_v17  ;;  %v4637_v20 = vld [vmem:[#allocation5 + $0xac] ss:$16 sps:$4 sm:$0xff]  }
 0x39d   :  { %6024 = vst [vmem:[#allocation39_spill] sm:$0xff] %v4637_v20 }
 0x3a6   :  { %v3227_v19 = vpop.eup %3226 }
 0x3a7   :  { %v1448_v21 = vmul.f32 %v3227_v19, %v3225_v18  ;;  %v4631_v18 = vld [vmem:[#allocation5 + $0x88] ss:$16 sps:$4 sm:$0xff]   ;;  %v4634_v19 = vld [vmem:[#allocation5 + $0xa4] ss:$16 sps:$4 sm:$0xff]  }
 0x3a8   :  { %6022 = vst [vmem:[#allocation37_spill] sm:$0xff] %v4631_v18  ;;  %6023 = vst [vmem:[#allocation38_spill] sm:$0xff] %v4634_v19 }
 0x3a9   :  { %v1450_v22 = vpack.c.bf16 %v1448_v21, %v1448_v21  ;;  %v4640_v21 = vld [vmem:[#allocation5 + $0xa0] ss:$16 sps:$4 sm:$0xff]  }
 0x3aa   :  { %6025 = vst [vmem:[#allocation40_spill] sm:$0xff] %v4640_v21 }
 0x3ab   :  { %1483 = vmatprep.mubr.bf16.mxu0 %v1450_v22  ;;  %1524 = vmatprep.mubr.bf16.mxu1 %v1450_v22 }
 0x3ac   :  { %1484 = vmatmul.mubr.bf16.vlgmr.msra.gmra.mrb[36].mxu0 %v1449_v23  ;;  %1525 = vmatmul.mubr.bf16.vlgmr.msra.gmra.mrb[36].mxu1 %v1449_v23  ;;  %v4646_v23 = vld [vmem:[#allocation5 + $0xc4] ss:$16 sps:$4 sm:$0xff]  }
 0x3ad   :  { %1558 = vmatpush1.bf16.msra.mxu0 %v4366_v2  ;;  %1599 = vmatpush1.bf16.msra.mxu1 %v4369_v55  ;;  %6027 = vst [vmem:[#allocation68_spill] sm:$0xff] %v4646_v23 }
 0x3ae   :  { %1559 = vmatprep.subr.bf16.mxu0 %v4372_v56  ;;  %1600 = vmatprep.subr.bf16.mxu1 %v4375_v54 }
 0x3af   :  { %1589 = vmatprep.mubr.bf16.mxu0 %v5888_v0  ;;  %1630 = vmatprep.mubr.bf16.mxu1 %v5888_v0 }
 0x3b1   :  { %1560 = vmatpush1.bf16.msra.mxu0 %v4380_v58  ;;  %1601 = vmatpush1.bf16.msra.mxu1 %v4383_v7 }
 0x3b2   :  { %1561 = vmatprep.subr.bf16.mxu0 %v4386_v57  ;;  %1602 = vmatprep.subr.bf16.mxu1 %v4389_v1 }
 0x3b5   :  { %1562 = vmatpush1.bf16.msra.mxu0 %v4392_v14  ;;  %1603 = vmatpush1.bf16.msra.mxu1 %v4395_v50 }
 0x3b6   :  { %1563 = vmatprep.subr.bf16.mxu0 %v4398_v32  ;;  %1604 = vmatprep.subr.bf16.mxu1 %v4401_v62 }
 0x3b9   :  { %1564 = vmatpush1.bf16.msra.mxu0 %v4404_v3  ;;  %1605 = vmatpush1.bf16.msra.mxu1 %v4407_v40 }
 0x3ba   :  { %1565 = vmatprep.subr.bf16.mxu0 %v4410_v59  ;;  %1606 = vmatprep.subr.bf16.mxu1 %v6002_v53 }
 0x3bd   :  { %1566 = vmatpush1.bf16.msra.mxu0 %v6003_v24  ;;  %1607 = vmatpush1.bf16.msra.mxu1 %v6004_v26 }
 0x3be   :  { %1567 = vmatprep.subr.bf16.mxu0 %v6005_v29  ;;  %1608 = vmatprep.subr.bf16.mxu1 %v6006_v33 }
 0x3c1   :  { %1568 = vmatpush1.bf16.msra.mxu0 %v6007_v34  ;;  %1609 = vmatpush1.bf16.msra.mxu1 %v6008_v35 }
 0x3c2   :  { %1569 = vmatprep.subr.bf16.mxu0 %v6009_v37  ;;  %1610 = vmatprep.subr.bf16.mxu1 %v6010_v38 }
 0x3c5   :  { %1570 = vmatpush1.bf16.msra.mxu0 %v4440_v63  ;;  %1611 = vmatpush1.bf16.msra.mxu1 %v4443_v4 }
 0x3c6   :  { %1571 = vmatprep.subr.bf16.mxu0 %v4446_v52  ;;  %1612 = vmatprep.subr.bf16.mxu1 %v4449_v25 }
 0x3c9   :  { %1572 = vmatpush1.bf16.msra.mxu0 %v4452_v5  ;;  %1613 = vmatpush1.bf16.msra.mxu1 %v4455_v61 }
 0x3ca   :  { %1669 = vmatprep.subr.bf16.mxu0 %v4574_v6  ;;  %1710 = vmatprep.subr.bf16.mxu1 %v4577_v39 }
 0x3cc   :  { %1590 = vmatmul.mubr.bf16.vlgmr.msra.gmra.mrb[40].mxu0 %v1450_v22  ;;  %1631 = vmatmul.mubr.bf16.vlgmr.msra.gmra.mrb[40].mxu1 %v1450_v22  ;;  %v4643_v22 = vld [vmem:[#allocation5 + $0xa8] ss:$16 sps:$4 sm:$0xff]  }
 0x3cd   :  { %1670 = vmatpush1.bf16.msra.mxu0 %v4580_v51  ;;  %1711 = vmatpush1.bf16.msra.mxu1 %v4583_v41  ;;  %6026 = vst [vmem:[#allocation67_spill] sm:$0xff] %v4643_v22 }
 0x3ce   :  { %1671 = vmatprep.subr.bf16.mxu0 %v4586_v42  ;;  %1712 = vmatprep.subr.bf16.mxu1 %v4589_v43 }
 0x3d1   :  { %1672 = vmatpush1.bf16.msra.mxu0 %v4592_v45  ;;  %1713 = vmatpush1.bf16.msra.mxu1 %v4595_v46 }
 0x3d2   :  { %1673 = vmatprep.subr.bf16.mxu0 %v4598_v47  ;;  %1714 = vmatprep.subr.bf16.mxu1 %v4601_v48 }
 0x3d5   :  { %1674 = vmatpush1.bf16.msra.mxu0 %v4604_v49  ;;  %1715 = vmatpush1.bf16.msra.mxu1 %v4607_v8 }
 0x3d6   :  { %1675 = vmatprep.subr.bf16.mxu0 %v4610_v9  ;;  %1716 = vmatprep.subr.bf16.mxu1 %v4613_v10 }
 0x3d9   :  { %1676 = vmatpush1.bf16.msra.mxu0 %v4616_v11  ;;  %1717 = vmatpush1.bf16.msra.mxu1 %v4619_v30 }
 0x3da   :  { %1677 = vmatprep.subr.bf16.mxu0 %v4622_v12  ;;  %1718 = vmatprep.subr.bf16.mxu1 %v4625_v15 }
 0x3dd   :  { %1678 = vmatpush1.bf16.msra.mxu0 %v4628_v17  ;;  %1719 = vmatpush1.bf16.msra.mxu1 %v4631_v18  ;;  %v4649_v18 = vld [vmem:[#allocation5 + $0xcc] ss:$16 sps:$4 sm:$0xff]  }
 0x3de   :  { %1679 = vmatprep.subr.bf16.mxu0 %v4634_v19  ;;  %1720 = vmatprep.subr.bf16.mxu1 %v4637_v20  ;;  %6028 = vst [vmem:[#allocation69_spill] sm:$0xff] %v4649_v18  ;;  %v4652_v19 = vld [vmem:[#allocation5 + $0xc0] ss:$16 sps:$4 sm:$0xff]   ;;  %v4655_v20 = vld [vmem:[#allocation5 + $0xc8] ss:$16 sps:$4 sm:$0xff]  }
 0x3df   :  { %6029 = vst [vmem:[#allocation70_spill] sm:$0xff] %v4652_v19  ;;  %6030 = vst [vmem:[#allocation71_spill] sm:$0xff] %v4655_v20 }
 0x3e1   :  { %1680 = vmatpush1.bf16.msra.mxu0 %v4640_v21  ;;  %1721 = vmatpush1.bf16.msra.mxu1 %v4643_v22  ;;  %v4658_v21 = vld [vmem:[#allocation5 + $0xe4] ss:$16 sps:$4 sm:$0xff]   ;;  %v4661_v22 = vld [vmem:[#allocation5 + $0xec] ss:$16 sps:$4 sm:$0xff]  }
 0x3e2   :  { %1681 = vmatprep.subr.bf16.mxu0 %v4646_v23  ;;  %1722 = vmatprep.subr.bf16.mxu1 %v4649_v18  ;;  %6031 = vst [vmem:[#allocation41_spill] sm:$0xff] %v4658_v21  ;;  %6032 = vst [vmem:[#allocation42_spill] sm:$0xff] %v4661_v22  ;;  %v4664_v23 = vld [vmem:[#allocation5 + $0xe0] ss:$16 sps:$4 sm:$0xff]   ;;  %v4667_v18 = vld [vmem:[#allocation5 + $0xe8] ss:$16 sps:$4 sm:$0xff]  }
 0x3e3   :  { %6033 = vst [vmem:[#allocation43_spill] sm:$0xff] %v4664_v23  ;;  %6034 = vst [vmem:[#allocation44_spill] sm:$0xff] %v4667_v18 }
 0x3e5   :  { %1682 = vmatpush1.bf16.msra.mxu0 %v4652_v19  ;;  %1723 = vmatpush1.bf16.msra.mxu1 %v4655_v20  ;;  %v4670_v19 = vld [vmem:[#allocation5 + $0x104] ss:$16 sps:$4 sm:$0xff]   ;;  %v4673_v20 = vld [vmem:[#allocation5 + $0x10c] ss:$16 sps:$4 sm:$0xff]  }
 0x3e6   :  { %1683 = vmatprep.subr.bf16.mxu0 %v4658_v21  ;;  %1724 = vmatprep.subr.bf16.mxu1 %v4661_v22  ;;  %6035 = vst [vmem:[#allocation45_spill] sm:$0xff] %v4670_v19  ;;  %6036 = vst [vmem:[#allocation46_spill] sm:$0xff] %v4673_v20  ;;  %v4676_v21 = vld [vmem:[#allocation5 + $0x100] ss:$16 sps:$4 sm:$0xff]   ;;  %v4679_v22 = vld [vmem:[#allocation5 + $0x108] ss:$16 sps:$4 sm:$0xff]  }
 0x3e7   :  { %6037 = vst [vmem:[#allocation47_spill] sm:$0xff] %v4676_v21  ;;  %6038 = vst [vmem:[#allocation48_spill] sm:$0xff] %v4679_v22 }
 0x3e9   :  { %1684 = vmatpush1.bf16.msra.mxu0 %v4664_v23  ;;  %1725 = vmatpush1.bf16.msra.mxu1 %v4667_v18  ;;  %v4682_v23 = vld [vmem:[#allocation5 + $0x124] ss:$16 sps:$4 sm:$0xff]   ;;  %v4685_v18 = vld [vmem:[#allocation5 + $0x12c] ss:$16 sps:$4 sm:$0xff]  }
 0x3ea   :  { %1685 = vmatprep.subr.bf16.mxu0 %v4670_v19  ;;  %1726 = vmatprep.subr.bf16.mxu1 %v4673_v20  ;;  %6039 = vst [vmem:[#allocation49_spill] sm:$0xff] %v4682_v23  ;;  %6040 = vst [vmem:[#allocation50_spill] sm:$0xff] %v4685_v18  ;;  %v4688_v19 = vld [vmem:[#allocation5 + $0x120] ss:$16 sps:$4 sm:$0xff]   ;;  %v4691_v20 = vld [vmem:[#allocation5 + $0x128] ss:$16 sps:$4 sm:$0xff]  }
 0x3eb   :  { %6041 = vst [vmem:[#allocation51_spill] sm:$0xff] %v4688_v19  ;;  %6042 = vst [vmem:[#allocation52_spill] sm:$0xff] %v4691_v20 }
 0x3ed   :  { %1686 = vmatpush1.bf16.msra.mxu0 %v4676_v21  ;;  %1727 = vmatpush1.bf16.msra.mxu1 %v4679_v22  ;;  %v4694_v21 = vld [vmem:[#allocation5 + $0x144] ss:$16 sps:$4 sm:$0xff]   ;;  %v4697_v22 = vld [vmem:[#allocation5 + $0x14c] ss:$16 sps:$4 sm:$0xff]  }
 0x3ee   :  { %1687 = vmatprep.subr.bf16.mxu0 %v4682_v23  ;;  %1728 = vmatprep.subr.bf16.mxu1 %v4685_v18  ;;  %6043 = vst [vmem:[#allocation53_spill] sm:$0xff] %v4694_v21  ;;  %6044 = vst [vmem:[#allocation54_spill] sm:$0xff] %v4697_v22  ;;  %v4700_v23 = vld [vmem:[#allocation5 + $0x140] ss:$16 sps:$4 sm:$0xff]   ;;  %v4703_v18 = vld [vmem:[#allocation5 + $0x148] ss:$16 sps:$4 sm:$0xff]  }
 0x3ef   :  { %6045 = vst [vmem:[#allocation55_spill] sm:$0xff] %v4700_v23  ;;  %6046 = vst [vmem:[#allocation56_spill] sm:$0xff] %v4703_v18 }
 0x3f1   :  { %1688 = vmatpush1.bf16.msra.mxu0 %v4688_v19  ;;  %1729 = vmatpush1.bf16.msra.mxu1 %v4691_v20  ;;  %v4706_v19 = vld [vmem:[#allocation5 + $0x164] ss:$16 sps:$4 sm:$0xff]   ;;  %v4709_v20 = vld [vmem:[#allocation5 + $0x16c] ss:$16 sps:$4 sm:$0xff]  }
 0x3f2   :  { %1689 = vmatprep.subr.bf16.mxu0 %v4694_v21  ;;  %1730 = vmatprep.subr.bf16.mxu1 %v4697_v22  ;;  %6047 = vst [vmem:[#allocation57_spill] sm:$0xff] %v4706_v19  ;;  %6048 = vst [vmem:[#allocation58_spill] sm:$0xff] %v4709_v20  ;;  %v4712_v21 = vld [vmem:[#allocation5 + $0x160] ss:$16 sps:$4 sm:$0xff]   ;;  %v4715_v22 = vld [vmem:[#allocation5 + $0x168] ss:$16 sps:$4 sm:$0xff]  }
 0x3f3   :  { %6049 = vst [vmem:[#allocation59_spill] sm:$0xff] %v4712_v21  ;;  %6050 = vst [vmem:[#allocation60_spill] sm:$0xff] %v4715_v22 }
 0x3f5   :  { %1690 = vmatpush1.bf16.msra.mxu0 %v4700_v23  ;;  %1731 = vmatpush1.bf16.msra.mxu1 %v4703_v18  ;;  %v4718_v23 = vld [vmem:[#allocation5 + $0x184] ss:$16 sps:$4 sm:$0xff]   ;;  %v4721_v18 = vld [vmem:[#allocation5 + $0x18c] ss:$16 sps:$4 sm:$0xff]  }
 0x3f6   :  { %1691 = vmatprep.subr.bf16.mxu0 %v4706_v19  ;;  %1732 = vmatprep.subr.bf16.mxu1 %v4709_v20  ;;  %6051 = vst [vmem:[#allocation61_spill] sm:$0xff] %v4718_v23  ;;  %6052 = vst [vmem:[#allocation62_spill] sm:$0xff] %v4721_v18  ;;  %v4724_v19 = vld [vmem:[#allocation5 + $0x180] ss:$16 sps:$4 sm:$0xff]   ;;  %v4727_v20 = vld [vmem:[#allocation5 + $0x188] ss:$16 sps:$4 sm:$0xff]  }
 0x3f7   :  { %6053 = vst [vmem:[#allocation63_spill] sm:$0xff] %v4724_v19  ;;  %6054 = vst [vmem:[#allocation64_spill] sm:$0xff] %v4727_v20 }
 0x3f9   :  { %1692 = vmatpush1.bf16.msra.mxu0 %v4712_v21  ;;  %1733 = vmatpush1.bf16.msra.mxu1 %v4715_v22  ;;  %v4730_v21 = vld [vmem:[#allocation5 + $0x1a4] ss:$16 sps:$4 sm:$0xff]   ;;  %v4733_v22 = vld [vmem:[#allocation5 + $0x1ac] ss:$16 sps:$4 sm:$0xff]  }
 0x3fa   :  { %1693 = vmatprep.subr.bf16.mxu0 %v4718_v23  ;;  %1734 = vmatprep.subr.bf16.mxu1 %v4721_v18  ;;  %6055 = vst [vmem:[#allocation65_spill] sm:$0xff] %v4730_v21  ;;  %6056 = vst [vmem:[#allocation66_spill] sm:$0xff] %v4733_v22  ;;  %v4736_v23 = vld [vmem:[#allocation5 + $0x1a0] ss:$16 sps:$4 sm:$0xff]   ;;  %v4739_v18 = vld [vmem:[#allocation5 + $0x1a8] ss:$16 sps:$4 sm:$0xff]  }
 0x3fb   :  { %6057 = vst [vmem:[#allocation12_spill] sm:$0xff] %v4736_v23  ;;  %6058 = vst [vmem:[#allocation13_spill] sm:$0xff] %v4739_v18 }
 0x3fd   :  { %1694 = vmatpush1.bf16.msra.mxu0 %v4724_v19  ;;  %1735 = vmatpush1.bf16.msra.mxu1 %v4727_v20  ;;  %v4742_v19 = vld [vmem:[#allocation5 + $0x1c4] ss:$16 sps:$4 sm:$0xff]   ;;  %v4745_v20 = vld [vmem:[#allocation5 + $0x1cc] ss:$16 sps:$4 sm:$0xff]  }
 0x3fe   :  { %1695 = vmatprep.subr.bf16.mxu0 %v4730_v21  ;;  %1736 = vmatprep.subr.bf16.mxu1 %v4733_v22  ;;  %6059 = vst [vmem:[#allocation72_spill] sm:$0xff] %v4742_v19  ;;  %6060 = vst [vmem:[#allocation73_spill] sm:$0xff] %v4745_v20  ;;  %v4748_v21 = vld [vmem:[#allocation5 + $0x1c0] ss:$16 sps:$4 sm:$0xff]   ;;  %v4751_v22 = vld [vmem:[#allocation5 + $0x1c8] ss:$16 sps:$4 sm:$0xff]  }
 0x3ff   :  { %6061 = vst [vmem:[#allocation74_spill] sm:$0xff] %v4748_v21  ;;  %6062 = vst [vmem:[#allocation75_spill] sm:$0xff] %v4751_v22 }
 0x401   :  { %1696 = vmatpush1.bf16.msra.mxu0 %v4736_v23  ;;  %1737 = vmatpush1.bf16.msra.mxu1 %v4739_v18  ;;  %v4754_v23 = vld [vmem:[#allocation5 + $0x1e4] ss:$16 sps:$4 sm:$0xff]   ;;  %v4757_v18 = vld [vmem:[#allocation5 + $0x1ec] ss:$16 sps:$4 sm:$0xff]  }
 0x402   :  { %1697 = vmatprep.subr.bf16.mxu0 %v4742_v19  ;;  %1738 = vmatprep.subr.bf16.mxu1 %v4745_v20  ;;  %6063 = vst [vmem:[#allocation17_spill] sm:$0xff] %v4754_v23  ;;  %6064 = vst [vmem:[#allocation18_spill] sm:$0xff] %v4757_v18  ;;  %v4760_v19 = vld [vmem:[#allocation5 + $0x1e0] ss:$16 sps:$4 sm:$0xff]   ;;  %v4763_v20 = vld [vmem:[#allocation5 + $0x1e8] ss:$16 sps:$4 sm:$0xff]  }
 0x403   :  { %6065 = vst [vmem:[#allocation19_spill] sm:$0xff] %v4760_v19  ;;  %6066 = vst [vmem:[#allocation20_spill] sm:$0xff] %v4763_v20 }
 0x405   :  { %1698 = vmatpush1.bf16.msra.mxu0 %v4748_v21  ;;  %1739 = vmatpush1.bf16.msra.mxu1 %v4751_v22 }
 0x406   :  { %1699 = vmatprep.subr.bf16.mxu0 %v4754_v23  ;;  %1740 = vmatprep.subr.bf16.mxu1 %v4757_v18 }
 0x409   :  { %1700 = vmatpush1.bf16.msra.mxu0 %v4760_v19  ;;  %1741 = vmatpush1.bf16.msra.mxu1 %v4763_v20 }
 0x40a   :  { %1775 = vmatprep.subr.bf16.mxu0 %v5993_v27  ;;  %1816 = vmatprep.subr.bf16.mxu1 %v5994_v28 }
 0x47f   :  { %v1485_v22 = vpop.f32.mrb[36].mxu0  ;;  %v1526_v21 = vpop.f32.mrb[36].mxu1 }
 0x480   :  { %v1486_v23 = vadd.f32 %v1485_v22, %v5995_v31  ;;  %v1487_v17 = vpop.f32.mrb[37].mxu0  ;;  %v1528_v15 = vpop.f32.mrb[37].mxu1 }
 0x481   :  { %v1488_v18 = vadd.f32 %v1487_v17, %v5996_v36  ;;  %v1489_v12 = vpop.f32.mrb[38].mxu0  ;;  %v1530_v30 = vpop.f32.mrb[38].mxu1  ;;  %v1529_v27 = vadd.f32 %v1528_v15, %v5997_v44  ;;  %v6068_v15 = vld [vmem:[#allocation77_spill] sm:$0xff] }
 0x482   :  { %v2903_v11 = vmul.f32 -1.442695, %v1486_v23  ;;  %v1490_v19 = vpop.f32.mrb[39].mxu0  ;;  %v1531_v10 = vpop.f32.mrb[39].mxu1 }
 0x483   :  { %v2904_v9 = vmul.f32 -1.442695, %v1488_v18 }
 0x484   :  { %3228 = vpow2.f32 %v2903_v11 }
 0x485   :  { %3230 = vpow2.f32 %v2904_v9  ;;  %v6067_v9 = vld [vmem:[#allocation76_spill] sm:$0xff] }
 0x486   :  { %3232 = vtanh.f32 %v1529_v27  ;;  %v6069_v27 = vld [vmem:[#allocation78_spill] sm:$0xff] }
 0x48e   :  { %v3229_v20 = vpop.eup %3228 }
 0x48f   :  { %v1542_v28 = vadd.f32 1.0, %v3229_v20  ;;  %v3231_v8 = vpop.eup %3230 }
 0x490   :  { %v1543_v22 = vadd.f32 1.0, %v3231_v8  ;;  %v3233_v31 = vpop.eup %3232  ;;  %v6070_v8 = vld [vmem:[#allocation79_spill] sm:$0xff] }
 0x491   :  { %3234 = vrcp.f32 %v1542_v28 }
 0x492   :  { %3236 = vrcp.f32 %v1543_v22 }
 0x49b   :  { %v3235_v49 = vpop.eup %3234 }
 0x49c   :  { %v1553_v17 = vmul.f32 %v3235_v49, %v3233_v31  ;;  %v3237_v12 = vpop.eup %3236 }
 0x49d   :  { %v1552_v30 = vmul.f32 %v3237_v12, %v4530_v16 }
 0x49f   :  { %v1591_v19 = vpop.f32.mrb[40].mxu0  ;;  %v1632_v10 = vpop.f32.mrb[40].mxu1  ;;  %v4772_v18 = vadd.f32 %v1553_v17, %v1552_v30  ;;  %v1527_v17 = vadd.f32 %v1526_v21, %v4352_v60 }
 0x4a0   :  { %v1639_v11 = vadd.f32 %v1591_v19, %v6067_v9  ;;  %v1641_v23 = vadd.f32 %v1632_v10, %v6068_v15  ;;  %v1593_v20 = vpop.f32.mrb[41].mxu0  ;;  %v1634_v44 = vpop.f32.mrb[41].mxu1 }
 0x4a1   :  { %v1640_v28 = vadd.f32 %v1593_v20, %v6069_v27  ;;  %v1642_v22 = vadd.f32 %v1634_v44, %v6070_v8  ;;  %v1595_v36 = vpop.f32.mrb[42].mxu0  ;;  %v1636_v48 = vpop.f32.mrb[42].mxu1  ;;  %v2905_v12 = vmul.f32 -1.442695, %v1527_v17 }
 0x4a2   :  { %v2906_v31 = vmul.f32 -1.442695, %v1639_v11  ;;  %v1596_v49 = vpop.f32.mrb[43].mxu0  ;;  %v1637_v47 = vpop.f32.mrb[43].mxu1  ;;  %v2908_v30 = vmul.f32 -1.442695, %v1641_v23 }
 0x4a3   :  { %v2907_v16 = vmul.f32 -1.442695, %v1640_v28 }
 0x4a4   :  { %3238 = vpow2.f32 %v2906_v31 }
 0x4a5   :  { %3240 = vpow2.f32 %v2907_v16 }
 0x4a6   :  { %3242 = vpow2.f32 %v2905_v12 }
 0x4a7   :  { %3244 = vtanh.f32 %v1642_v22 }
 0x4a8   :  { %3246 = vpow2.f32 %v2908_v30 }
 0x4ae   :  { %v3239_v19 = vpop.eup %3238 }
 0x4af   :  { %v1652_v10 = vadd.f32 1.0, %v3239_v19  ;;  %v3241_v9 = vpop.eup %3240  ;;  %v6102_v19 = vld [vmem:[#allocation52_spill] sm:$0xff] }
 0x4b0   :  { %v1653_v44 = vadd.f32 1.0, %v3241_v9  ;;  %v3243_v36 = vpop.eup %3242  ;;  %v6104_v9 = vld [vmem:[#allocation54_spill] sm:$0xff] }
 0x4b1   :  { %3248 = vrcp.f32 %v1652_v10  ;;  %v3245_v48 = vpop.eup %3244  ;;  %v1544_v15 = vadd.f32 1.0, %v3243_v36  ;;  %v6103_v10 = vld [vmem:[#allocation53_spill] sm:$0xff]  ;;  %v6106_v36 = vld [vmem:[#allocation56_spill] sm:$0xff] }
 0x4b2   :  { %3250 = vrcp.f32 %v1653_v44  ;;  %v3247_v11 = vpop.eup %3246  ;;  %v6105_v44 = vld [vmem:[#allocation55_spill] sm:$0xff] }
 0x4b3   :  { %v1654_v21 = vadd.f32 1.0, %v3247_v11  ;;  %3252 = vtanh.f32 %v4772_v18  ;;  %v6108_v11 = vld [vmem:[#allocation58_spill] sm:$0xff] }
 0x4b4   :  { %3254 = vrcp.f32 %v1544_v15  ;;  %v6110_v15 = vld [vmem:[#allocation60_spill] sm:$0xff] }
 0x4b5   :  { %3256 = vrcp.f32 %v1654_v21  ;;  %v6113_v21 = vld [vmem:[#allocation63_spill] sm:$0xff] }
 0x4bb   :  { %v3249_v47 = vpop.eup %3248 }
 0x4bc   :  { %v1663_v20 = vmul.f32 %v3249_v47, %v3245_v48  ;;  %v3251_v27 = vpop.eup %3250  ;;  %v6107_v48 = vld [vmem:[#allocation57_spill] sm:$0xff]  ;;  %v6109_v47 = vld [vmem:[#allocation59_spill] sm:$0xff] }
 0x4bd   :  { %v1662_v28 = vmul.f32 %v3251_v27, %v4539_v13  ;;  %v3253_v8 = vpop.eup %3252  ;;  %v6092_v13 = vld [vmem:[#allocation42_spill] sm:$0xff] }
 0x4be   :  { %v3255_v22 = vpop.eup %3254  ;;  %v6112_v27 = vld [vmem:[#allocation62_spill] sm:$0xff] }
 0x4bf   :  { %v4781_v23 = vadd.f32 %v1663_v20, %v1662_v28  ;;  %v3257_v31 = vpop.eup %3256  ;;  %v1556_v16 = vmul.f32 %v3255_v22, %v3253_v8  ;;  %v6111_v20 = vld [vmem:[#allocation61_spill] sm:$0xff]  ;;  %v6114_v28 = vld [vmem:[#allocation64_spill] sm:$0xff]  ;;  %v6116_v22 = vld [vmem:[#allocation66_spill] sm:$0xff] }
 0x4c0   :  { %v6115_v8 = vld [vmem:[#allocation65_spill] sm:$0xff] }
 0x4c1   :  { %3258 = vtanh.f32 %v4781_v23  ;;  %v1667_v30 = vpack.c.bf16 %v1556_v16, %v1556_v16  ;;  %v6119_v16 = vld [vmem:[#allocation72_spill] sm:$0xff] }
 0x4cb   :  { %v3259_v49 = vpop.eup %3258 }
 0x4cc   :  { %v1666_v17 = vmul.f32 %v3259_v49, %v3257_v31  ;;  %v6117_v31 = vld [vmem:[#allocation12_spill] sm:$0xff]  ;;  %v6118_v49 = vld [vmem:[#allocation13_spill] sm:$0xff] }
 0x4ce   :  { %v1668_v12 = vpack.c.bf16 %v1666_v17, %v1666_v17  ;;  %v6120_v17 = vld [vmem:[#allocation73_spill] sm:$0xff] }
 0x4d0   :  { %1701 = vmatprep.mubr.bf16.mxu0 %v1668_v12  ;;  %1742 = vmatprep.mubr.bf16.mxu1 %v1668_v12 }
 0x4d1   :  { %1702 = vmatmul.mubr.bf16.vlgmr.msra.gmra.mrb[44].mxu0 %v1667_v30  ;;  %1743 = vmatmul.mubr.bf16.vlgmr.msra.gmra.mrb[44].mxu1 %v1667_v30  ;;  %v6122_v30 = vld [vmem:[#allocation75_spill] sm:$0xff] }
 0x4d2   :  { %1776 = vmatpush1.bf16.msra.mxu0 %v4366_v2  ;;  %1817 = vmatpush1.bf16.msra.mxu1 %v4369_v55  ;;  %v6071_v2 = vld [vmem:[#allocation26_spill] sm:$0xff]  ;;  %v6072_v55 = vld [vmem:[#allocation27_spill] sm:$0xff] }
 0x4d3   :  { %1777 = vmatprep.subr.bf16.mxu0 %v4372_v56  ;;  %1818 = vmatprep.subr.bf16.mxu1 %v4375_v54  ;;  %v6073_v56 = vld [vmem:[#allocation28_spill] sm:$0xff]  ;;  %v6074_v54 = vld [vmem:[#allocation29_spill] sm:$0xff] }
 0x4d4   :  { %1807 = vmatprep.mubr.bf16.mxu0 %v5888_v0  ;;  %1848 = vmatprep.mubr.bf16.mxu1 %v5888_v0 }
 0x4d6   :  { %1778 = vmatpush1.bf16.msra.mxu0 %v4380_v58  ;;  %1819 = vmatpush1.bf16.msra.mxu1 %v4383_v7  ;;  %v6075_v58 = vld [vmem:[#allocation30_spill] sm:$0xff]  ;;  %v6076_v7 = vld [vmem:[#allocation31_spill] sm:$0xff] }
 0x4d7   :  { %1779 = vmatprep.subr.bf16.mxu0 %v4386_v57  ;;  %1820 = vmatprep.subr.bf16.mxu1 %v4389_v1  ;;  %v6077_v57 = vld [vmem:[#allocation32_spill] sm:$0xff]  ;;  %v6078_v1 = vld [vmem:[#allocation33_spill] sm:$0xff] }
 0x4da   :  { %1780 = vmatpush1.bf16.msra.mxu0 %v4392_v14  ;;  %1821 = vmatpush1.bf16.msra.mxu1 %v4395_v50  ;;  %v6079_v14 = vld [vmem:[#allocation34_spill] sm:$0xff]  ;;  %v6080_v50 = vld [vmem:[#allocation35_spill] sm:$0xff] }
 0x4db   :  { %1781 = vmatprep.subr.bf16.mxu0 %v4398_v32  ;;  %1822 = vmatprep.subr.bf16.mxu1 %v4401_v62  ;;  %v6081_v32 = vld [vmem:[#allocation36_spill] sm:$0xff]  ;;  %v6082_v62 = vld [vmem:[#allocation37_spill] sm:$0xff] }
 0x4de   :  { %1782 = vmatpush1.bf16.msra.mxu0 %v4404_v3  ;;  %1823 = vmatpush1.bf16.msra.mxu1 %v4407_v40  ;;  %v6083_v3 = vld [vmem:[#allocation38_spill] sm:$0xff]  ;;  %v6084_v40 = vld [vmem:[#allocation39_spill] sm:$0xff] }
 0x4df   :  { %1783 = vmatprep.subr.bf16.mxu0 %v4410_v59  ;;  %1824 = vmatprep.subr.bf16.mxu1 %v6002_v53  ;;  %v6085_v59 = vld [vmem:[#allocation40_spill] sm:$0xff]  ;;  %v6093_v53 = vld [vmem:[#allocation43_spill] sm:$0xff] }
 0x4e2   :  { %1784 = vmatpush1.bf16.msra.mxu0 %v6003_v24  ;;  %1825 = vmatpush1.bf16.msra.mxu1 %v6004_v26  ;;  %v6094_v24 = vld [vmem:[#allocation44_spill] sm:$0xff]  ;;  %v6095_v26 = vld [vmem:[#allocation45_spill] sm:$0xff] }
 0x4e3   :  { %1785 = vmatprep.subr.bf16.mxu0 %v6005_v29  ;;  %1826 = vmatprep.subr.bf16.mxu1 %v6006_v33  ;;  %v6096_v29 = vld [vmem:[#allocation46_spill] sm:$0xff]  ;;  %v6097_v33 = vld [vmem:[#allocation47_spill] sm:$0xff] }
 0x4e6   :  { %1786 = vmatpush1.bf16.msra.mxu0 %v6007_v34  ;;  %1827 = vmatpush1.bf16.msra.mxu1 %v6008_v35  ;;  %v6098_v34 = vld [vmem:[#allocation48_spill] sm:$0xff]  ;;  %v6099_v35 = vld [vmem:[#allocation49_spill] sm:$0xff] }
 0x4e7   :  { %1787 = vmatprep.subr.bf16.mxu0 %v6009_v37  ;;  %1828 = vmatprep.subr.bf16.mxu1 %v6010_v38  ;;  %v6100_v37 = vld [vmem:[#allocation50_spill] sm:$0xff]  ;;  %v6101_v38 = vld [vmem:[#allocation51_spill] sm:$0xff] }
 0x4ea   :  { %1788 = vmatpush1.bf16.msra.mxu0 %v4440_v63  ;;  %1829 = vmatpush1.bf16.msra.mxu1 %v4443_v4  ;;  %v6089_v63 = vld [vmem:[#allocation70_spill] sm:$0xff]  ;;  %v6090_v4 = vld [vmem:[#allocation71_spill] sm:$0xff] }
 0x4eb   :  { %1789 = vmatprep.subr.bf16.mxu0 %v4446_v52  ;;  %1830 = vmatprep.subr.bf16.mxu1 %v4449_v25  ;;  %v6086_v25 = vld [vmem:[#allocation67_spill] sm:$0xff]  ;;  %v6091_v52 = vld [vmem:[#allocation41_spill] sm:$0xff] }
 0x4ee   :  { %1790 = vmatpush1.bf16.msra.mxu0 %v4452_v5  ;;  %1831 = vmatpush1.bf16.msra.mxu1 %v4455_v61  ;;  %v6087_v5 = vld [vmem:[#allocation68_spill] sm:$0xff]  ;;  %v6088_v61 = vld [vmem:[#allocation69_spill] sm:$0xff] }
 0x4ef   :  { %1887 = vmatprep.subr.bf16.mxu0 %v4574_v6  ;;  %1928 = vmatprep.subr.bf16.mxu1 %v4577_v39 }
 0x4f1   :  { %1808 = vmatmul.mubr.bf16.vlgmr.msra.gmra.mrb[48].mxu0 %v1668_v12  ;;  %1849 = vmatmul.mubr.bf16.vlgmr.msra.gmra.mrb[48].mxu1 %v1668_v12  ;;  %v6121_v12 = vld [vmem:[#allocation74_spill] sm:$0xff] }
 0x4f2   :  { %1888 = vmatpush1.bf16.msra.mxu0 %v4580_v51  ;;  %1929 = vmatpush1.bf16.msra.mxu1 %v4583_v41 }
 0x4f3   :  { %1889 = vmatprep.subr.bf16.mxu0 %v4586_v42  ;;  %1930 = vmatprep.subr.bf16.mxu1 %v4589_v43 }
 0x4f6   :  { %1890 = vmatpush1.bf16.msra.mxu0 %v4592_v45  ;;  %1931 = vmatpush1.bf16.msra.mxu1 %v4595_v46 }
 0x4f7   :  { %1891 = vmatprep.subr.bf16.mxu0 %v6071_v2  ;;  %1932 = vmatprep.subr.bf16.mxu1 %v6072_v55 }
 0x4fa   :  { %1892 = vmatpush1.bf16.msra.mxu0 %v6073_v56  ;;  %1933 = vmatpush1.bf16.msra.mxu1 %v6074_v54 }
 0x4fb   :  { %1893 = vmatprep.subr.bf16.mxu0 %v6075_v58  ;;  %1934 = vmatprep.subr.bf16.mxu1 %v6076_v7 }
 0x4fe   :  { %1894 = vmatpush1.bf16.msra.mxu0 %v6077_v57  ;;  %1935 = vmatpush1.bf16.msra.mxu1 %v6078_v1 }
 0x4ff   :  { %1895 = vmatprep.subr.bf16.mxu0 %v6079_v14  ;;  %1936 = vmatprep.subr.bf16.mxu1 %v6080_v50 }
 0x502   :  { %1896 = vmatpush1.bf16.msra.mxu0 %v6081_v32  ;;  %1937 = vmatpush1.bf16.msra.mxu1 %v6082_v62 }
 0x503   :  { %1897 = vmatprep.subr.bf16.mxu0 %v6083_v3  ;;  %1938 = vmatprep.subr.bf16.mxu1 %v6084_v40 }
 0x506   :  { %1898 = vmatpush1.bf16.msra.mxu0 %v6085_v59  ;;  %1939 = vmatpush1.bf16.msra.mxu1 %v6086_v25 }
 0x507   :  { %1899 = vmatprep.subr.bf16.mxu0 %v6087_v5  ;;  %1940 = vmatprep.subr.bf16.mxu1 %v6088_v61 }
 0x50a   :  { %1900 = vmatpush1.bf16.msra.mxu0 %v6089_v63  ;;  %1941 = vmatpush1.bf16.msra.mxu1 %v6090_v4 }
 0x50b   :  { %1901 = vmatprep.subr.bf16.mxu0 %v6091_v52  ;;  %1942 = vmatprep.subr.bf16.mxu1 %v6092_v13 }
 0x50e   :  { %1902 = vmatpush1.bf16.msra.mxu0 %v6093_v53  ;;  %1943 = vmatpush1.bf16.msra.mxu1 %v6094_v24 }
 0x50f   :  { %1903 = vmatprep.subr.bf16.mxu0 %v6095_v26  ;;  %1944 = vmatprep.subr.bf16.mxu1 %v6096_v29 }
 0x512   :  { %1904 = vmatpush1.bf16.msra.mxu0 %v6097_v33  ;;  %1945 = vmatpush1.bf16.msra.mxu1 %v6098_v34 }
 0x513   :  { %1905 = vmatprep.subr.bf16.mxu0 %v6099_v35  ;;  %1946 = vmatprep.subr.bf16.mxu1 %v6100_v37 }
 0x516   :  { %1906 = vmatpush1.bf16.msra.mxu0 %v6101_v38  ;;  %1947 = vmatpush1.bf16.msra.mxu1 %v6102_v19 }
 0x517   :  { %1907 = vmatprep.subr.bf16.mxu0 %v6103_v10  ;;  %1948 = vmatprep.subr.bf16.mxu1 %v6104_v9 }
 0x51a   :  { %1908 = vmatpush1.bf16.msra.mxu0 %v6105_v44  ;;  %1949 = vmatpush1.bf16.msra.mxu1 %v6106_v36 }
 0x51b   :  { %1909 = vmatprep.subr.bf16.mxu0 %v6107_v48  ;;  %1950 = vmatprep.subr.bf16.mxu1 %v6108_v11 }
 0x51e   :  { %1910 = vmatpush1.bf16.msra.mxu0 %v6109_v47  ;;  %1951 = vmatpush1.bf16.msra.mxu1 %v6110_v15 }
 0x51f   :  { %1911 = vmatprep.subr.bf16.mxu0 %v6111_v20  ;;  %1952 = vmatprep.subr.bf16.mxu1 %v6112_v27  ;;  %v6123_v27 = vld [vmem:[#allocation17_spill] sm:$0xff]  ;;  %v6130_v20 = vld [vmem:[#allocation15_spill] sm:$0xff] }
 0x522   :  { %1912 = vmatpush1.bf16.msra.mxu0 %v6113_v21  ;;  %1953 = vmatpush1.bf16.msra.mxu1 %v6114_v28  ;;  %v6124_v21 = vld [vmem:[#allocation18_spill] sm:$0xff]  ;;  %v6125_v28 = vld [vmem:[#allocation19_spill] sm:$0xff] }
 0x523   :  { %1913 = vmatprep.subr.bf16.mxu0 %v6115_v8  ;;  %1954 = vmatprep.subr.bf16.mxu1 %v6116_v22  ;;  %v6126_v8 = vld [vmem:[#allocation20_spill] sm:$0xff]  ;;  %v4880_v22 = vld [vmem:[#allocation2 + $0x4] ss:$16 sps:$4 sm:$0xff]  }
 0x524   :  { %6127 = vst [vmem:[#allocation21_spill] sm:$0xff] %v4880_v22 }
 0x526   :  { %1914 = vmatpush1.bf16.msra.mxu0 %v6117_v31  ;;  %1955 = vmatpush1.bf16.msra.mxu1 %v6118_v49  ;;  %v4883_v49 = vld [vmem:[#allocation2 + $0xc] ss:$16 sps:$4 sm:$0xff]  }
 0x527   :  { %1915 = vmatprep.subr.bf16.mxu0 %v6119_v16  ;;  %1956 = vmatprep.subr.bf16.mxu1 %v6120_v17  ;;  %6128 = vst [vmem:[#allocation22_spill] sm:$0xff] %v4883_v49  ;;  %v6129_v16 = vld [vmem:[#allocation14_spill] sm:$0xff] }
 0x52a   :  { %1916 = vmatpush1.bf16.msra.mxu0 %v6121_v12  ;;  %1957 = vmatpush1.bf16.msra.mxu1 %v6122_v30 }
 0x52b   :  { %1917 = vmatprep.subr.bf16.mxu0 %v6123_v27  ;;  %1958 = vmatprep.subr.bf16.mxu1 %v6124_v21 }
 0x52e   :  { %1918 = vmatpush1.bf16.msra.mxu0 %v6125_v28  ;;  %1959 = vmatpush1.bf16.msra.mxu1 %v6126_v8 }
 0x52f   :  { %1993 = vmatprep.subr.bf16.mxu0 %v4880_v22  ;;  %2034 = vmatprep.subr.bf16.mxu1 %v4883_v49  ;;  %v6131_v22 = vld [vmem:[#allocation16_spill] sm:$0xff] }
 0x5a4   :  { %v1703_v17 = vpop.f32.mrb[44].mxu0  ;;  %v1744_v12 = vpop.f32.mrb[44].mxu1 }
 0x5a5   :  { %v1704_v30 = vadd.f32 %v1703_v17, %v6129_v16  ;;  %v1705_v31 = vpop.f32.mrb[45].mxu0  ;;  %v1746_v27 = vpop.f32.mrb[45].mxu1 }
 0x5a6   :  { %v1706_v21 = vadd.f32 %v1705_v31, %v6130_v20  ;;  %v1707_v15 = vpop.f32.mrb[46].mxu0  ;;  %v1748_v28 = vpop.f32.mrb[46].mxu1  ;;  %v1747_v36 = vadd.f32 %v1746_v27, %v6131_v22  ;;  %v6133_v27 = vld [vmem:[#allocation81_spill] sm:$0xff] }
 0x5a7   :  { %v2909_v47 = vmul.f32 -1.442695, %v1704_v30  ;;  %v1708_v8 = vpop.f32.mrb[47].mxu0  ;;  %v1749_v11 = vpop.f32.mrb[47].mxu1 }
 0x5a8   :  { %v2910_v48 = vmul.f32 -1.442695, %v1706_v21 }
 0x5a9   :  { %3260 = vpow2.f32 %v2909_v47 }
 0x5aa   :  { %3262 = vpow2.f32 %v2910_v48  ;;  %v6132_v48 = vld [vmem:[#allocation80_spill] sm:$0xff] }
 0x5ab   :  { %3264 = vtanh.f32 %v1747_v36  ;;  %v6134_v36 = vld [vmem:[#allocation82_spill] sm:$0xff] }
 0x5b3   :  { %v3261_v44 = vpop.eup %3260 }
 0x5b4   :  { %v1760_v49 = vadd.f32 1.0, %v3261_v44  ;;  %v3263_v9 = vpop.eup %3262 }
 0x5b5   :  { %v1761_v17 = vadd.f32 1.0, %v3263_v9  ;;  %v3265_v16 = vpop.eup %3264  ;;  %v6135_v9 = vld [vmem:[#allocation83_spill] sm:$0xff] }
 0x5b6   :  { %3266 = vrcp.f32 %v1760_v49 }
 0x5b7   :  { %3268 = vrcp.f32 %v1761_v17 }
 0x5c0   :  { %v3267_v10 = vpop.eup %3266 }
 0x5c1   :  { %v1771_v31 = vmul.f32 %v3267_v10, %v3265_v16  ;;  %v3269_v15 = vpop.eup %3268 }
 0x5c2   :  { %v1770_v28 = vmul.f32 %v3269_v15, %v4772_v18 }
 0x5c4   :  { %v1809_v8 = vpop.f32.mrb[48].mxu0  ;;  %v1850_v11 = vpop.f32.mrb[48].mxu1  ;;  %v4890_v21 = vadd.f32 %v1771_v31, %v1770_v28  ;;  %v1745_v31 = vadd.f32 %v1744_v12, %v4352_v60 }
 0x5c5   :  { %v1857_v47 = vadd.f32 %v1809_v8, %v6132_v48  ;;  %v1859_v30 = vadd.f32 %v1850_v11, %v6133_v27  ;;  %v1811_v44 = vpop.f32.mrb[49].mxu0  ;;  %v1852_v22 = vpop.f32.mrb[49].mxu1 }
 0x5c6   :  { %v1858_v49 = vadd.f32 %v1811_v44, %v6134_v36  ;;  %v1860_v17 = vadd.f32 %v1852_v22, %v6135_v9  ;;  %v1813_v20 = vpop.f32.mrb[50].mxu0  ;;  %v1854_v19 = vpop.f32.mrb[50].mxu1  ;;  %v2911_v15 = vmul.f32 -1.442695, %v1745_v31 }
 0x5c7   :  { %v2912_v10 = vmul.f32 -1.442695, %v1857_v47  ;;  %v1814_v16 = vpop.f32.mrb[51].mxu0  ;;  %v1855_v38 = vpop.f32.mrb[51].mxu1  ;;  %v2914_v28 = vmul.f32 -1.442695, %v1859_v30 }
 0x5c8   :  { %v2913_v18 = vmul.f32 -1.442695, %v1858_v49 }
 0x5c9   :  { %3270 = vpow2.f32 %v2912_v10 }
 0x5ca   :  { %3272 = vpow2.f32 %v2913_v18 }
 0x5cb   :  { %3274 = vpow2.f32 %v2911_v15 }
 0x5cc   :  { %3276 = vtanh.f32 %v1860_v17 }
 0x5cd   :  { %3278 = vpow2.f32 %v2914_v28 }
 0x5d3   :  { %v3271_v8 = vpop.eup %3270 }
 0x5d4   :  { %v1870_v11 = vadd.f32 1.0, %v3271_v8  ;;  %v3273_v48 = vpop.eup %3272  ;;  %v4909_v8 = vld [vmem:[#allocation2 + $0x8] ss:$16 sps:$4 sm:$0xff]  }
 0x5d5   :  { %v1871_v22 = vadd.f32 1.0, %v3273_v48  ;;  %v3275_v19 = vpop.eup %3274  ;;  %v4915_v48 = vld [vmem:[#allocation2 + $0x2c] ss:$16 sps:$4 sm:$0xff]  }
 0x5d6   :  { %3280 = vrcp.f32 %v1870_v11  ;;  %v3277_v20 = vpop.eup %3276  ;;  %v1762_v27 = vadd.f32 1.0, %v3275_v19  ;;  %v4912_v11 = vld [vmem:[#allocation2 + $0x24] ss:$16 sps:$4 sm:$0xff]   ;;  %v4923_v19 = vld [vmem:[#allocation2 + $0x28] ss:$16 sps:$4 sm:$0xff]  }
 0x5d7   :  { %3282 = vrcp.f32 %v1871_v22  ;;  %v3279_v47 = vpop.eup %3278  ;;  %v4920_v22 = vld [vmem:[#allocation2 + $0x20] ss:$16 sps:$4 sm:$0xff]  }
 0x5d8   :  { %v1872_v12 = vadd.f32 1.0, %v3279_v47  ;;  %3284 = vtanh.f32 %v4890_v21  ;;  %v4929_v47 = vld [vmem:[#allocation2 + $0x4c] ss:$16 sps:$4 sm:$0xff]  }
 0x5d9   :  { %3286 = vrcp.f32 %v1762_v27  ;;  %v4935_v27 = vld [vmem:[#allocation2 + $0x48] ss:$16 sps:$4 sm:$0xff]  }
 0x5da   :  { %3288 = vrcp.f32 %v1872_v12  ;;  %v4944_v12 = vld [vmem:[#allocation2 + $0x60] ss:$16 sps:$4 sm:$0xff]  }
 0x5e0   :  { %v3281_v38 = vpop.eup %3280 }
 0x5e1   :  { %v1881_v44 = vmul.f32 %v3281_v38, %v3277_v20  ;;  %v3283_v36 = vpop.eup %3282  ;;  %v4926_v20 = vld [vmem:[#allocation2 + $0x44] ss:$16 sps:$4 sm:$0xff]   ;;  %v4932_v38 = vld [vmem:[#allocation2 + $0x40] ss:$16 sps:$4 sm:$0xff]  }
 0x5e2   :  { %v1880_v49 = vmul.f32 %v3283_v36, %v4781_v23  ;;  %v3285_v9 = vpop.eup %3284  ;;  %v4906_v23 = vld [vmem:[#allocation2] ss:$16 sps:$4 sm:$0xff]   ;;  %v4941_v36 = vld [vmem:[#allocation2 + $0x6c] ss:$16 sps:$4 sm:$0xff]  }
 0x5e3   :  { %v3287_v17 = vpop.eup %3286 }
 0x5e4   :  { %v4899_v30 = vadd.f32 %v1881_v44, %v1880_v49  ;;  %v3289_v10 = vpop.eup %3288  ;;  %v1774_v18 = vmul.f32 %v3287_v17, %v3285_v9  ;;  %v4938_v44 = vld [vmem:[#allocation2 + $0x64] ss:$16 sps:$4 sm:$0xff]   ;;  %v4947_v49 = vld [vmem:[#allocation2 + $0x68] ss:$16 sps:$4 sm:$0xff]   ;;  %v4953_v17 = vld [vmem:[#allocation2 + $0x8c] ss:$16 sps:$4 sm:$0xff]  }
 0x5e5   :  { %v4950_v9 = vld [vmem:[#allocation2 + $0x84] ss:$16 sps:$4 sm:$0xff]   ;;  %6136 = vst [vmem:[#allocation23_spill] sm:$0xff] %v4953_v17 }
 0x5e6   :  { %3290 = vtanh.f32 %v4899_v30  ;;  %v1885_v28 = vpack.c.bf16 %v1774_v18, %v1774_v18  ;;  %v4962_v18 = vld [vmem:[#allocation2 + $0xa4] ss:$16 sps:$4 sm:$0xff]  }
 0x5e7   :  { %6139 = vst [vmem:[#allocation76_spill] sm:$0xff] %v4962_v18 }
 0x5f0   :  { %v3291_v16 = vpop.eup %3290 }
 0x5f1   :  { %v1884_v31 = vmul.f32 %v3291_v16, %v3289_v10  ;;  %v4956_v10 = vld [vmem:[#allocation2 + $0x80] ss:$16 sps:$4 sm:$0xff]   ;;  %v4959_v16 = vld [vmem:[#allocation2 + $0x88] ss:$16 sps:$4 sm:$0xff]  }
 0x5f2   :  { %6137 = vst [vmem:[#allocation24_spill] sm:$0xff] %v4956_v10  ;;  %6138 = vst [vmem:[#allocation25_spill] sm:$0xff] %v4959_v16 }
 0x5f3   :  { %v4902_v15 = vpack.c.bf16 %v1884_v31, %v1884_v31  ;;  %v4965_v31 = vld [vmem:[#allocation2 + $0xac] ss:$16 sps:$4 sm:$0xff]  }
 0x5f4   :  { %6140 = vst [vmem:[#allocation77_spill] sm:$0xff] %v4965_v31 }
 0x5f5   :  { %1919 = vmatprep.mubr.bf16.mxu0 %v4902_v15  ;;  %1960 = vmatprep.mubr.bf16.mxu1 %v4902_v15 }
 0x5f6   :  { %1920 = vmatmul.mubr.bf16.vlgmr.msra.gmra.mrb[52].mxu0 %v1885_v28  ;;  %1961 = vmatmul.mubr.bf16.vlgmr.msra.gmra.mrb[52].mxu1 %v1885_v28  ;;  %v4968_v28 = vld [vmem:[#allocation2 + $0xa0] ss:$16 sps:$4 sm:$0xff]  }
 0x5f7   :  { %1994 = vmatpush1.bf16.msra.mxu0 %v4906_v23  ;;  %2035 = vmatpush1.bf16.msra.mxu1 %v4909_v8  ;;  %6141 = vst [vmem:[#allocation78_spill] sm:$0xff] %v4968_v28 }
 0x5f8   :  { %1995 = vmatprep.subr.bf16.mxu0 %v4912_v11  ;;  %2036 = vmatprep.subr.bf16.mxu1 %v4915_v48 }
 0x5f9   :  { %2025 = vmatprep.mubr.bf16.mxu0 %v5888_v0  ;;  %2066 = vmatprep.mubr.bf16.mxu1 %v5888_v0 }
 0x5fb   :  { %1996 = vmatpush1.bf16.msra.mxu0 %v4920_v22  ;;  %2037 = vmatpush1.bf16.msra.mxu1 %v4923_v19 }
 0x5fc   :  { %1997 = vmatprep.subr.bf16.mxu0 %v4926_v20  ;;  %2038 = vmatprep.subr.bf16.mxu1 %v4929_v47 }
 0x5ff   :  { %1998 = vmatpush1.bf16.msra.mxu0 %v4932_v38  ;;  %2039 = vmatpush1.bf16.msra.mxu1 %v4935_v27 }
 0x600   :  { %1999 = vmatprep.subr.bf16.mxu0 %v4938_v44  ;;  %2040 = vmatprep.subr.bf16.mxu1 %v4941_v36 }
 0x603   :  { %2000 = vmatpush1.bf16.msra.mxu0 %v4944_v12  ;;  %2041 = vmatpush1.bf16.msra.mxu1 %v4947_v49 }
 0x604   :  { %2001 = vmatprep.subr.bf16.mxu0 %v4950_v9  ;;  %2042 = vmatprep.subr.bf16.mxu1 %v4953_v17  ;;  %v4971_v17 = vld [vmem:[#allocation2 + $0xa8] ss:$16 sps:$4 sm:$0xff]  }
 0x605   :  { %6142 = vst [vmem:[#allocation79_spill] sm:$0xff] %v4971_v17 }
 0x607   :  { %2002 = vmatpush1.bf16.msra.mxu0 %v4956_v10  ;;  %2043 = vmatpush1.bf16.msra.mxu1 %v4959_v16  ;;  %v4974_v10 = vld [vmem:[#allocation2 + $0xc4] ss:$16 sps:$4 sm:$0xff]   ;;  %v4977_v16 = vld [vmem:[#allocation2 + $0xcc] ss:$16 sps:$4 sm:$0xff]  }
 0x608   :  { %2003 = vmatprep.subr.bf16.mxu0 %v4962_v18  ;;  %2044 = vmatprep.subr.bf16.mxu1 %v4965_v31  ;;  %6143 = vst [vmem:[#allocation26_spill] sm:$0xff] %v4974_v10  ;;  %6144 = vst [vmem:[#allocation27_spill] sm:$0xff] %v4977_v16  ;;  %v4980_v18 = vld [vmem:[#allocation2 + $0xc0] ss:$16 sps:$4 sm:$0xff]   ;;  %v4983_v31 = vld [vmem:[#allocation2 + $0xc8] ss:$16 sps:$4 sm:$0xff]  }
 0x60b   :  { %2004 = vmatpush1.bf16.msra.mxu0 %v4968_v28  ;;  %2045 = vmatpush1.bf16.msra.mxu1 %v4971_v17  ;;  %v4986_v28 = vld [vmem:[#allocation2 + $0xe4] ss:$16 sps:$4 sm:$0xff]   ;;  %v4989_v17 = vld [vmem:[#allocation2 + $0xec] ss:$16 sps:$4 sm:$0xff]  }
 0x60c   :  { %2005 = vmatprep.subr.bf16.mxu0 %v4974_v10  ;;  %2046 = vmatprep.subr.bf16.mxu1 %v4977_v16  ;;  %v4992_v10 = vld [vmem:[#allocation2 + $0xe0] ss:$16 sps:$4 sm:$0xff]   ;;  %v4995_v16 = vld [vmem:[#allocation2 + $0xe8] ss:$16 sps:$4 sm:$0xff]  }
 0x60f   :  { %2006 = vmatpush1.bf16.msra.mxu0 %v4980_v18  ;;  %2047 = vmatpush1.bf16.msra.mxu1 %v4983_v31 }
 0x610   :  { %2007 = vmatprep.subr.bf16.mxu0 %v4986_v28  ;;  %2048 = vmatprep.subr.bf16.mxu1 %v4989_v17 }
 0x613   :  { %2008 = vmatpush1.bf16.msra.mxu0 %v4992_v10  ;;  %2049 = vmatpush1.bf16.msra.mxu1 %v4995_v16 }
 0x614   :  { %2105 = vmatprep.subr.bf16.mxu0 %v4574_v6  ;;  %2146 = vmatprep.subr.bf16.mxu1 %v4577_v39  ;;  %v6145_v6 = vld [vmem:[#allocation51_spill] sm:$0xff]  ;;  %v6146_v39 = vld [vmem:[#allocation52_spill] sm:$0xff] }
 0x616   :  { %2026 = vmatmul.mubr.bf16.vlgmr.msra.gmra.mrb[56].mxu0 %v4902_v15  ;;  %2067 = vmatmul.mubr.bf16.vlgmr.msra.gmra.mrb[56].mxu1 %v4902_v15 }
 0x617   :  { %2106 = vmatpush1.bf16.msra.mxu0 %v4580_v51  ;;  %2147 = vmatpush1.bf16.msra.mxu1 %v4583_v41  ;;  %v6147_v51 = vld [vmem:[#allocation53_spill] sm:$0xff]  ;;  %v6148_v41 = vld [vmem:[#allocation54_spill] sm:$0xff] }
 0x618   :  { %2107 = vmatprep.subr.bf16.mxu0 %v4586_v42  ;;  %2148 = vmatprep.subr.bf16.mxu1 %v4589_v43  ;;  %v6149_v42 = vld [vmem:[#allocation55_spill] sm:$0xff]  ;;  %v6150_v43 = vld [vmem:[#allocation56_spill] sm:$0xff] }
 0x61b   :  { %2108 = vmatpush1.bf16.msra.mxu0 %v4592_v45  ;;  %2149 = vmatpush1.bf16.msra.mxu1 %v4595_v46  ;;  %v6151_v45 = vld [vmem:[#allocation57_spill] sm:$0xff]  ;;  %v6152_v46 = vld [vmem:[#allocation58_spill] sm:$0xff] }
 0x61c   :  { %2109 = vmatprep.subr.bf16.mxu0 %v6071_v2  ;;  %2150 = vmatprep.subr.bf16.mxu1 %v6072_v55  ;;  %v6153_v2 = vld [vmem:[#allocation59_spill] sm:$0xff]  ;;  %v6154_v55 = vld [vmem:[#allocation60_spill] sm:$0xff] }
 0x61f   :  { %2110 = vmatpush1.bf16.msra.mxu0 %v6073_v56  ;;  %2151 = vmatpush1.bf16.msra.mxu1 %v6074_v54  ;;  %v6155_v56 = vld [vmem:[#allocation61_spill] sm:$0xff]  ;;  %v6156_v54 = vld [vmem:[#allocation62_spill] sm:$0xff] }
 0x620   :  { %2111 = vmatprep.subr.bf16.mxu0 %v6075_v58  ;;  %2152 = vmatprep.subr.bf16.mxu1 %v6076_v7  ;;  %v6157_v58 = vld [vmem:[#allocation63_spill] sm:$0xff]  ;;  %v6158_v7 = vld [vmem:[#allocation64_spill] sm:$0xff] }
 0x623   :  { %2112 = vmatpush1.bf16.msra.mxu0 %v6077_v57  ;;  %2153 = vmatpush1.bf16.msra.mxu1 %v6078_v1  ;;  %v6159_v57 = vld [vmem:[#allocation65_spill] sm:$0xff]  ;;  %v6160_v1 = vld [vmem:[#allocation66_spill] sm:$0xff] }
 0x624   :  { %2113 = vmatprep.subr.bf16.mxu0 %v6079_v14  ;;  %2154 = vmatprep.subr.bf16.mxu1 %v6080_v50  ;;  %v6161_v14 = vld [vmem:[#allocation12_spill] sm:$0xff]  ;;  %v6162_v50 = vld [vmem:[#allocation13_spill] sm:$0xff] }
 0x627   :  { %2114 = vmatpush1.bf16.msra.mxu0 %v6081_v32  ;;  %2155 = vmatpush1.bf16.msra.mxu1 %v6082_v62  ;;  %v6163_v32 = vld [vmem:[#allocation72_spill] sm:$0xff]  ;;  %v6164_v62 = vld [vmem:[#allocation73_spill] sm:$0xff] }
 0x628   :  { %2115 = vmatprep.subr.bf16.mxu0 %v6083_v3  ;;  %2156 = vmatprep.subr.bf16.mxu1 %v6084_v40  ;;  %v6165_v3 = vld [vmem:[#allocation74_spill] sm:$0xff]  ;;  %v6166_v40 = vld [vmem:[#allocation75_spill] sm:$0xff] }
 0x62b   :  { %2116 = vmatpush1.bf16.msra.mxu0 %v6085_v59  ;;  %2157 = vmatpush1.bf16.msra.mxu1 %v6086_v25  ;;  %v6167_v59 = vld [vmem:[#allocation17_spill] sm:$0xff]  ;;  %v6168_v25 = vld [vmem:[#allocation18_spill] sm:$0xff] }
 0x62c   :  { %2117 = vmatprep.subr.bf16.mxu0 %v6087_v5  ;;  %2158 = vmatprep.subr.bf16.mxu1 %v6088_v61  ;;  %v6169_v5 = vld [vmem:[#allocation19_spill] sm:$0xff]  ;;  %v6170_v61 = vld [vmem:[#allocation20_spill] sm:$0xff] }
 0x62f   :  { %2118 = vmatpush1.bf16.msra.mxu0 %v6089_v63  ;;  %2159 = vmatpush1.bf16.msra.mxu1 %v6090_v4  ;;  %v6171_v63 = vld [vmem:[#allocation21_spill] sm:$0xff]  ;;  %v6172_v4 = vld [vmem:[#allocation22_spill] sm:$0xff] }
 0x630   :  { %2119 = vmatprep.subr.bf16.mxu0 %v6091_v52  ;;  %2160 = vmatprep.subr.bf16.mxu1 %v6092_v13 }
 0x633   :  { %2120 = vmatpush1.bf16.msra.mxu0 %v6093_v53  ;;  %2161 = vmatpush1.bf16.msra.mxu1 %v6094_v24  ;;  %v6173_v53 = vld [vmem:[#allocation14_spill] sm:$0xff] }
 0x634   :  { %2121 = vmatprep.subr.bf16.mxu0 %v6095_v26  ;;  %2162 = vmatprep.subr.bf16.mxu1 %v6096_v29 }
 0x637   :  { %2122 = vmatpush1.bf16.msra.mxu0 %v6097_v33  ;;  %2163 = vmatpush1.bf16.msra.mxu1 %v6098_v34  ;;  %v6174_v33 = vld [vmem:[#allocation15_spill] sm:$0xff] }
 0x638   :  { %2123 = vmatprep.subr.bf16.mxu0 %v6099_v35  ;;  %2164 = vmatprep.subr.bf16.mxu1 %v6100_v37 }
 0x63b   :  { %2124 = vmatpush1.bf16.msra.mxu0 %v6145_v6  ;;  %2165 = vmatpush1.bf16.msra.mxu1 %v6146_v39 }
 0x63c   :  { %2125 = vmatprep.subr.bf16.mxu0 %v6147_v51  ;;  %2166 = vmatprep.subr.bf16.mxu1 %v6148_v41  ;;  %v6175_v41 = vld [vmem:[#allocation16_spill] sm:$0xff] }
 0x63f   :  { %2126 = vmatpush1.bf16.msra.mxu0 %v6149_v42  ;;  %2167 = vmatpush1.bf16.msra.mxu1 %v6150_v43 }
 0x640   :  { %2127 = vmatprep.subr.bf16.mxu0 %v6151_v45  ;;  %2168 = vmatprep.subr.bf16.mxu1 %v6152_v46 }
 0x643   :  { %2128 = vmatpush1.bf16.msra.mxu0 %v6153_v2  ;;  %2169 = vmatpush1.bf16.msra.mxu1 %v6154_v55 }
 0x644   :  { %2129 = vmatprep.subr.bf16.mxu0 %v6155_v56  ;;  %2170 = vmatprep.subr.bf16.mxu1 %v6156_v54 }
 0x647   :  { %2130 = vmatpush1.bf16.msra.mxu0 %v6157_v58  ;;  %2171 = vmatpush1.bf16.msra.mxu1 %v6158_v7 }
 0x648   :  { %2131 = vmatprep.subr.bf16.mxu0 %v6159_v57  ;;  %2172 = vmatprep.subr.bf16.mxu1 %v6160_v1 }
 0x64b   :  { %2132 = vmatpush1.bf16.msra.mxu0 %v6161_v14  ;;  %2173 = vmatpush1.bf16.msra.mxu1 %v6162_v50  ;;  %v6176_v50 = vld [vmem:[#allocation84_spill] sm:$0xff] }
 0x64c   :  { %2133 = vmatprep.subr.bf16.mxu0 %v6163_v32  ;;  %2174 = vmatprep.subr.bf16.mxu1 %v6164_v62  ;;  %v6177_v62 = vld [vmem:[#allocation85_spill] sm:$0xff] }
 0x64f   :  { %2134 = vmatpush1.bf16.msra.mxu0 %v6165_v3  ;;  %2175 = vmatpush1.bf16.msra.mxu1 %v6166_v40 }
 0x650   :  { %2135 = vmatprep.subr.bf16.mxu0 %v6167_v59  ;;  %2176 = vmatprep.subr.bf16.mxu1 %v6168_v25  ;;  %v6178_v25 = vld [vmem:[#allocation86_spill] sm:$0xff] }
 0x653   :  { %2136 = vmatpush1.bf16.msra.mxu0 %v6169_v5  ;;  %2177 = vmatpush1.bf16.msra.mxu1 %v6170_v61  ;;  %v6179_v61 = vld [vmem:[#allocation87_spill] sm:$0xff] }
 0x654   :  { %2211 = vmatprep.subr.bf16.mxu0 %v6171_v63  ;;  %2252 = vmatprep.subr.bf16.mxu1 %v6172_v4 }
 0x6c9   :  { %v1921_v52 = vpop.f32.mrb[52].mxu0  ;;  %v1962_v13 = vpop.f32.mrb[52].mxu1 }
 0x6ca   :  { %v1922_v24 = vadd.f32 %v1921_v52, %v6173_v53  ;;  %v1923_v26 = vpop.f32.mrb[53].mxu0  ;;  %v1964_v29 = vpop.f32.mrb[53].mxu1 }
 0x6cb   :  { %v1924_v34 = vadd.f32 %v1923_v26, %v6174_v33  ;;  %v1925_v35 = vpop.f32.mrb[54].mxu0  ;;  %v1966_v37 = vpop.f32.mrb[54].mxu1  ;;  %v1965_v42 = vadd.f32 %v1964_v29, %v6175_v41 }
 0x6cc   :  { %v2915_v15 = vmul.f32 -1.442695, %v1922_v24  ;;  %v1926_v6 = vpop.f32.mrb[55].mxu0  ;;  %v1967_v39 = vpop.f32.mrb[55].mxu1  ;;  %v1963_v37 = vadd.f32 %v1962_v13, %v4352_v60 }
 0x6cd   :  { %v2916_v51 = vmul.f32 -1.442695, %v1924_v34 }
 0x6ce   :  { %3292 = vpow2.f32 %v2915_v15  ;;  %v2917_v15 = vmul.f32 -1.442695, %v1963_v37  ;;  %v5117_v37 = vld [vmem:[#allocation5 + $0xc] ss:$16 sps:$4 sm:$0xff]  }
 0x6cf   :  { %3294 = vpow2.f32 %v2916_v51 }
 0x6d0   :  { %3296 = vtanh.f32 %v1965_v42 }
 0x6d8   :  { %v3293_v43 = vpop.eup %3292 }
 0x6d9   :  { %v1978_v45 = vadd.f32 1.0, %v3293_v43  ;;  %v3295_v46 = vpop.eup %3294 }
 0x6da   :  { %v1979_v2 = vadd.f32 1.0, %v3295_v46  ;;  %v3297_v55 = vpop.eup %3296 }
 0x6db   :  { %3298 = vrcp.f32 %v1978_v45 }
 0x6dc   :  { %3300 = vrcp.f32 %v1979_v2 }
 0x6e5   :  { %v3299_v56 = vpop.eup %3298 }
 0x6e6   :  { %v1989_v54 = vmul.f32 %v3299_v56, %v3297_v55  ;;  %v3301_v58 = vpop.eup %3300 }
 0x6e7   :  { %v1988_v7 = vmul.f32 %v3301_v58, %v4890_v21 }
 0x6e9   :  { %v2027_v57 = vpop.f32.mrb[56].mxu0  ;;  %v2068_v1 = vpop.f32.mrb[56].mxu1  ;;  %v5070_v14 = vadd.f32 %v1989_v54, %v1988_v7 }
 0x6ea   :  { %v2075_v32 = vadd.f32 %v2027_v57, %v6176_v50  ;;  %v2077_v3 = vadd.f32 %v2068_v1, %v6177_v62  ;;  %v2029_v40 = vpop.f32.mrb[57].mxu0  ;;  %v2070_v59 = vpop.f32.mrb[57].mxu1 }
 0x6eb   :  { %v2076_v5 = vadd.f32 %v2029_v40, %v6178_v25  ;;  %v2078_v52 = vadd.f32 %v2070_v59, %v6179_v61  ;;  %v2031_v24 = vpop.f32.mrb[58].mxu0  ;;  %v2072_v26 = vpop.f32.mrb[58].mxu1  ;;  %v6182_v61 = vld [vmem:[#allocation25_spill] sm:$0xff] }
 0x6ec   :  { %v2918_v29 = vmul.f32 -1.442695, %v2075_v32  ;;  %v2032_v34 = vpop.f32.mrb[59].mxu0  ;;  %v2073_v35 = vpop.f32.mrb[59].mxu1  ;;  %v2920_v6 = vmul.f32 -1.442695, %v2077_v3 }
 0x6ed   :  { %v2919_v21 = vmul.f32 -1.442695, %v2076_v5  ;;  %v6181_v5 = vld [vmem:[#allocation24_spill] sm:$0xff]  ;;  %v6184_v24 = vld [vmem:[#allocation77_spill] sm:$0xff]  ;;  %v6185_v26 = vld [vmem:[#allocation78_spill] sm:$0xff] }
 0x6ee   :  { %3302 = vpow2.f32 %v2918_v29  ;;  %v6186_v29 = vld [vmem:[#allocation79_spill] sm:$0xff]  ;;  %v6187_v34 = vld [vmem:[#allocation26_spill] sm:$0xff] }
 0x6ef   :  { %3304 = vpow2.f32 %v2919_v21  ;;  %v6188_v35 = vld [vmem:[#allocation27_spill] sm:$0xff] }
 0x6f0   :  { %3306 = vpow2.f32 %v2917_v15  ;;  %v5114_v21 = vld [vmem:[#allocation5 + $0x4] ss:$16 sps:$4 sm:$0xff]   ;;  %v5120_v15 = vld [vmem:[#allocation5] ss:$16 sps:$4 sm:$0xff]  }
 0x6f1   :  { %3308 = vtanh.f32 %v2078_v52  ;;  %v6183_v52 = vld [vmem:[#allocation76_spill] sm:$0xff] }
 0x6f2   :  { %3310 = vpow2.f32 %v2920_v6  ;;  %v5123_v6 = vld [vmem:[#allocation5 + $0x8] ss:$16 sps:$4 sm:$0xff]  }
 0x6f8   :  { %v3303_v39 = vpop.eup %3302 }
 0x6f9   :  { %v2088_v51 = vadd.f32 1.0, %v3303_v39  ;;  %v3305_v42 = vpop.eup %3304  ;;  %v5126_v39 = vld [vmem:[#allocation5 + $0x24] ss:$16 sps:$4 sm:$0xff]  }
 0x6fa   :  { %v2089_v43 = vadd.f32 1.0, %v3305_v42  ;;  %v3307_v45 = vpop.eup %3306  ;;  %v5132_v42 = vld [vmem:[#allocation5 + $0x20] ss:$16 sps:$4 sm:$0xff]  }
 0x6fb   :  { %3312 = vrcp.f32 %v2088_v51  ;;  %v3309_v46 = vpop.eup %3308  ;;  %v1980_v56 = vadd.f32 1.0, %v3307_v45  ;;  %v5129_v51 = vld [vmem:[#allocation5 + $0x2c] ss:$16 sps:$4 sm:$0xff]   ;;  %v5138_v45 = vld [vmem:[#allocation5 + $0x44] ss:$16 sps:$4 sm:$0xff]  }
 0x6fc   :  { %3314 = vrcp.f32 %v2089_v43  ;;  %v3311_v2 = vpop.eup %3310  ;;  %v5135_v43 = vld [vmem:[#allocation5 + $0x28] ss:$16 sps:$4 sm:$0xff]   ;;  %6189 = vst [vmem:[#allocation28_spill] sm:$0xff] %v5138_v45 }
 0x6fd   :  { %v2090_v13 = vadd.f32 1.0, %v3311_v2  ;;  %3316 = vtanh.f32 %v5070_v14  ;;  %v5144_v2 = vld [vmem:[#allocation5 + $0x40] ss:$16 sps:$4 sm:$0xff]  }
 0x6fe   :  { %3318 = vrcp.f32 %v1980_v56  ;;  %6191 = vst [vmem:[#allocation30_spill] sm:$0xff] %v5144_v2  ;;  %v5150_v56 = vld [vmem:[#allocation5 + $0x64] ss:$16 sps:$4 sm:$0xff]  }
 0x6ff   :  { %3320 = vrcp.f32 %v2090_v13  ;;  %6193 = vst [vmem:[#allocation32_spill] sm:$0xff] %v5150_v56  ;;  %v5159_v13 = vld [vmem:[#allocation5 + $0x68] ss:$16 sps:$4 sm:$0xff]  }
 0x700   :  { %6196 = vst [vmem:[#allocation35_spill] sm:$0xff] %v5159_v13 }
 0x705   :  { %v3313_v55 = vpop.eup %3312 }
 0x706   :  { %v2099_v54 = vmul.f32 %v3313_v55, %v3309_v46  ;;  %v3315_v58 = vpop.eup %3314  ;;  %v5141_v46 = vld [vmem:[#allocation5 + $0x4c] ss:$16 sps:$4 sm:$0xff]   ;;  %v5147_v55 = vld [vmem:[#allocation5 + $0x48] ss:$16 sps:$4 sm:$0xff]  }
 0x707   :  { %v2098_v7 = vmul.f32 %v3315_v58, %v4899_v30  ;;  %v3317_v1 = vpop.eup %3316  ;;  %v6180_v30 = vld [vmem:[#allocation23_spill] sm:$0xff]  ;;  %6190 = vst [vmem:[#allocation29_spill] sm:$0xff] %v5141_v46  ;;  %6192 = vst [vmem:[#allocation31_spill] sm:$0xff] %v5147_v55 }
 0x708   :  { %v3319_v50 = vpop.eup %3318  ;;  %v5156_v58 = vld [vmem:[#allocation5 + $0x60] ss:$16 sps:$4 sm:$0xff]  }
 0x709   :  { %v5079_v57 = vadd.f32 %v2099_v54, %v2098_v7  ;;  %v3321_v32 = vpop.eup %3320  ;;  %v1992_v3 = vmul.f32 %v3319_v50, %v3317_v1  ;;  %v5153_v54 = vld [vmem:[#allocation5 + $0x6c] ss:$16 sps:$4 sm:$0xff]   ;;  %6195 = vst [vmem:[#allocation34_spill] sm:$0xff] %v5156_v58  ;;  %v5162_v7 = vld [vmem:[#allocation5 + $0x84] ss:$16 sps:$4 sm:$0xff]  }
 0x70a   :  { %6194 = vst [vmem:[#allocation33_spill] sm:$0xff] %v5153_v54  ;;  %6197 = vst [vmem:[#allocation36_spill] sm:$0xff] %v5162_v7  ;;  %v5165_v1 = vld [vmem:[#allocation5 + $0x8c] ss:$16 sps:$4 sm:$0xff]   ;;  %v5168_v50 = vld [vmem:[#allocation5 + $0x80] ss:$16 sps:$4 sm:$0xff]  }
 0x70b   :  { %3322 = vtanh.f32 %v5079_v57  ;;  %v2103_v25 = vpack.c.bf16 %v1992_v3, %v1992_v3  ;;  %6198 = vst [vmem:[#allocation37_spill] sm:$0xff] %v5165_v1  ;;  %6199 = vst [vmem:[#allocation38_spill] sm:$0xff] %v5168_v50  ;;  %v5177_v3 = vld [vmem:[#allocation5 + $0xac] ss:$16 sps:$4 sm:$0xff]  }
 0x70c   :  { %6202 = vst [vmem:[#allocation67_spill] sm:$0xff] %v5177_v3 }
 0x715   :  { %v3323_v62 = vpop.eup %3322 }
 0x716   :  { %v2102_v40 = vmul.f32 %v3323_v62, %v3321_v32  ;;  %v5171_v32 = vld [vmem:[#allocation5 + $0x88] ss:$16 sps:$4 sm:$0xff]   ;;  %v5174_v62 = vld [vmem:[#allocation5 + $0xa4] ss:$16 sps:$4 sm:$0xff]  }
 0x717   :  { %6200 = vst [vmem:[#allocation39_spill] sm:$0xff] %v5171_v32  ;;  %6201 = vst [vmem:[#allocation40_spill] sm:$0xff] %v5174_v62 }
 0x718   :  { %v2104_v59 = vpack.c.bf16 %v2102_v40, %v2102_v40  ;;  %v5180_v40 = vld [vmem:[#allocation5 + $0xa0] ss:$16 sps:$4 sm:$0xff]  }
 0x719   :  { %6203 = vst [vmem:[#allocation68_spill] sm:$0xff] %v5180_v40 }
 0x71a   :  { %2137 = vmatprep.mubr.bf16.mxu0 %v2104_v59  ;;  %2178 = vmatprep.mubr.bf16.mxu1 %v2104_v59 }
 0x71b   :  { %2138 = vmatmul.mubr.bf16.vlgmr.msra.gmra.mrb[60].mxu0 %v2103_v25  ;;  %2179 = vmatmul.mubr.bf16.vlgmr.msra.gmra.mrb[60].mxu1 %v2103_v25  ;;  %v5186_v25 = vld [vmem:[#allocation5 + $0xc4] ss:$16 sps:$4 sm:$0xff]  }
 0x71c   :  { %2212 = vmatpush1.bf16.msra.mxu0 %v4906_v23  ;;  %2253 = vmatpush1.bf16.msra.mxu1 %v4909_v8  ;;  %6205 = vst [vmem:[#allocation70_spill] sm:$0xff] %v5186_v25 }
 0x71d   :  { %2213 = vmatprep.subr.bf16.mxu0 %v4912_v11  ;;  %2254 = vmatprep.subr.bf16.mxu1 %v4915_v48 }
 0x71e   :  { %2243 = vmatprep.mubr.bf16.mxu0 %v5888_v0  ;;  %2284 = vmatprep.mubr.bf16.mxu1 %v5888_v0 }
 0x720   :  { %2214 = vmatpush1.bf16.msra.mxu0 %v4920_v22  ;;  %2255 = vmatpush1.bf16.msra.mxu1 %v4923_v19 }
 0x721   :  { %2215 = vmatprep.subr.bf16.mxu0 %v4926_v20  ;;  %2256 = vmatprep.subr.bf16.mxu1 %v4929_v47 }
 0x724   :  { %2216 = vmatpush1.bf16.msra.mxu0 %v4932_v38  ;;  %2257 = vmatpush1.bf16.msra.mxu1 %v4935_v27 }
 0x725   :  { %2217 = vmatprep.subr.bf16.mxu0 %v4938_v44  ;;  %2258 = vmatprep.subr.bf16.mxu1 %v4941_v36 }
 0x728   :  { %2218 = vmatpush1.bf16.msra.mxu0 %v4944_v12  ;;  %2259 = vmatpush1.bf16.msra.mxu1 %v4947_v49 }
 0x729   :  { %2219 = vmatprep.subr.bf16.mxu0 %v4950_v9  ;;  %2260 = vmatprep.subr.bf16.mxu1 %v6180_v30 }
 0x72c   :  { %2220 = vmatpush1.bf16.msra.mxu0 %v6181_v5  ;;  %2261 = vmatpush1.bf16.msra.mxu1 %v6182_v61 }
 0x72d   :  { %2221 = vmatprep.subr.bf16.mxu0 %v6183_v52  ;;  %2262 = vmatprep.subr.bf16.mxu1 %v6184_v24 }
 0x730   :  { %2222 = vmatpush1.bf16.msra.mxu0 %v6185_v26  ;;  %2263 = vmatpush1.bf16.msra.mxu1 %v6186_v29 }
 0x731   :  { %2223 = vmatprep.subr.bf16.mxu0 %v6187_v34  ;;  %2264 = vmatprep.subr.bf16.mxu1 %v6188_v35 }
 0x734   :  { %2224 = vmatpush1.bf16.msra.mxu0 %v4980_v18  ;;  %2265 = vmatpush1.bf16.msra.mxu1 %v4983_v31 }
 0x735   :  { %2225 = vmatprep.subr.bf16.mxu0 %v4986_v28  ;;  %2266 = vmatprep.subr.bf16.mxu1 %v4989_v17 }
 0x738   :  { %2226 = vmatpush1.bf16.msra.mxu0 %v4992_v10  ;;  %2267 = vmatpush1.bf16.msra.mxu1 %v4995_v16 }
 0x739   :  { %2323 = vmatprep.subr.bf16.mxu0 %v5114_v21  ;;  %2364 = vmatprep.subr.bf16.mxu1 %v5117_v37 }
 0x73b   :  { %2244 = vmatmul.mubr.bf16.vlgmr.msra.gmra.mrb[64].mxu0 %v2104_v59  ;;  %2285 = vmatmul.mubr.bf16.vlgmr.msra.gmra.mrb[64].mxu1 %v2104_v59  ;;  %v5183_v59 = vld [vmem:[#allocation5 + $0xa8] ss:$16 sps:$4 sm:$0xff]  }
 0x73c   :  { %2324 = vmatpush1.bf16.msra.mxu0 %v5120_v15  ;;  %2365 = vmatpush1.bf16.msra.mxu1 %v5123_v6  ;;  %6204 = vst [vmem:[#allocation69_spill] sm:$0xff] %v5183_v59 }
 0x73d   :  { %2325 = vmatprep.subr.bf16.mxu0 %v5126_v39  ;;  %2366 = vmatprep.subr.bf16.mxu1 %v5129_v51 }
 0x740   :  { %2326 = vmatpush1.bf16.msra.mxu0 %v5132_v42  ;;  %2367 = vmatpush1.bf16.msra.mxu1 %v5135_v43 }
 0x741   :  { %2327 = vmatprep.subr.bf16.mxu0 %v5138_v45  ;;  %2368 = vmatprep.subr.bf16.mxu1 %v5141_v46 }
 0x744   :  { %2328 = vmatpush1.bf16.msra.mxu0 %v5144_v2  ;;  %2369 = vmatpush1.bf16.msra.mxu1 %v5147_v55 }
 0x745   :  { %2329 = vmatprep.subr.bf16.mxu0 %v5150_v56  ;;  %2370 = vmatprep.subr.bf16.mxu1 %v5153_v54 }
 0x748   :  { %2330 = vmatpush1.bf16.msra.mxu0 %v5156_v58  ;;  %2371 = vmatpush1.bf16.msra.mxu1 %v5159_v13 }
 0x749   :  { %2331 = vmatprep.subr.bf16.mxu0 %v5162_v7  ;;  %2372 = vmatprep.subr.bf16.mxu1 %v5165_v1 }
 0x74c   :  { %2332 = vmatpush1.bf16.msra.mxu0 %v5168_v50  ;;  %2373 = vmatpush1.bf16.msra.mxu1 %v5171_v32  ;;  %v5189_v32 = vld [vmem:[#allocation5 + $0xcc] ss:$16 sps:$4 sm:$0xff]  }
 0x74d   :  { %2333 = vmatprep.subr.bf16.mxu0 %v5174_v62  ;;  %2374 = vmatprep.subr.bf16.mxu1 %v5177_v3  ;;  %6206 = vst [vmem:[#allocation71_spill] sm:$0xff] %v5189_v32  ;;  %v5192_v62 = vld [vmem:[#allocation5 + $0xc0] ss:$16 sps:$4 sm:$0xff]   ;;  %v5195_v3 = vld [vmem:[#allocation5 + $0xc8] ss:$16 sps:$4 sm:$0xff]  }
 0x74e   :  { %6207 = vst [vmem:[#allocation41_spill] sm:$0xff] %v5192_v62  ;;  %6208 = vst [vmem:[#allocation42_spill] sm:$0xff] %v5195_v3 }
 0x750   :  { %2334 = vmatpush1.bf16.msra.mxu0 %v5180_v40  ;;  %2375 = vmatpush1.bf16.msra.mxu1 %v5183_v59  ;;  %v5198_v40 = vld [vmem:[#allocation5 + $0xe4] ss:$16 sps:$4 sm:$0xff]   ;;  %v5201_v59 = vld [vmem:[#allocation5 + $0xec] ss:$16 sps:$4 sm:$0xff]  }
 0x751   :  { %2335 = vmatprep.subr.bf16.mxu0 %v5186_v25  ;;  %2376 = vmatprep.subr.bf16.mxu1 %v5189_v32  ;;  %6209 = vst [vmem:[#allocation43_spill] sm:$0xff] %v5198_v40  ;;  %6210 = vst [vmem:[#allocation44_spill] sm:$0xff] %v5201_v59  ;;  %v5204_v25 = vld [vmem:[#allocation5 + $0xe0] ss:$16 sps:$4 sm:$0xff]   ;;  %v5207_v32 = vld [vmem:[#allocation5 + $0xe8] ss:$16 sps:$4 sm:$0xff]  }
 0x752   :  { %6211 = vst [vmem:[#allocation45_spill] sm:$0xff] %v5204_v25  ;;  %6212 = vst [vmem:[#allocation46_spill] sm:$0xff] %v5207_v32 }
 0x754   :  { %2336 = vmatpush1.bf16.msra.mxu0 %v5192_v62  ;;  %2377 = vmatpush1.bf16.msra.mxu1 %v5195_v3  ;;  %v5210_v62 = vld [vmem:[#allocation5 + $0x104] ss:$16 sps:$4 sm:$0xff]   ;;  %v5213_v3 = vld [vmem:[#allocation5 + $0x10c] ss:$16 sps:$4 sm:$0xff]  }
 0x755   :  { %2337 = vmatprep.subr.bf16.mxu0 %v5198_v40  ;;  %2378 = vmatprep.subr.bf16.mxu1 %v5201_v59  ;;  %6213 = vst [vmem:[#allocation47_spill] sm:$0xff] %v5210_v62  ;;  %6214 = vst [vmem:[#allocation48_spill] sm:$0xff] %v5213_v3  ;;  %v5216_v40 = vld [vmem:[#allocation5 + $0x100] ss:$16 sps:$4 sm:$0xff]   ;;  %v5219_v59 = vld [vmem:[#allocation5 + $0x108] ss:$16 sps:$4 sm:$0xff]  }
 0x756   :  { %6215 = vst [vmem:[#allocation49_spill] sm:$0xff] %v5216_v40  ;;  %6216 = vst [vmem:[#allocation50_spill] sm:$0xff] %v5219_v59 }
 0x758   :  { %2338 = vmatpush1.bf16.msra.mxu0 %v5204_v25  ;;  %2379 = vmatpush1.bf16.msra.mxu1 %v5207_v32  ;;  %v5222_v25 = vld [vmem:[#allocation5 + $0x124] ss:$16 sps:$4 sm:$0xff]   ;;  %v5225_v32 = vld [vmem:[#allocation5 + $0x12c] ss:$16 sps:$4 sm:$0xff]  }
 0x759   :  { %2339 = vmatprep.subr.bf16.mxu0 %v5210_v62  ;;  %2380 = vmatprep.subr.bf16.mxu1 %v5213_v3  ;;  %6217 = vst [vmem:[#allocation80_spill] sm:$0xff] %v5222_v25  ;;  %6218 = vst [vmem:[#allocation81_spill] sm:$0xff] %v5225_v32  ;;  %v5228_v62 = vld [vmem:[#allocation5 + $0x120] ss:$16 sps:$4 sm:$0xff]   ;;  %v5231_v3 = vld [vmem:[#allocation5 + $0x128] ss:$16 sps:$4 sm:$0xff]  }
 0x75a   :  { %6219 = vst [vmem:[#allocation82_spill] sm:$0xff] %v5228_v62  ;;  %6220 = vst [vmem:[#allocation83_spill] sm:$0xff] %v5231_v3 }
 0x75c   :  { %2340 = vmatpush1.bf16.msra.mxu0 %v5216_v40  ;;  %2381 = vmatpush1.bf16.msra.mxu1 %v5219_v59  ;;  %v5234_v40 = vld [vmem:[#allocation5 + $0x144] ss:$16 sps:$4 sm:$0xff]   ;;  %v5237_v59 = vld [vmem:[#allocation5 + $0x14c] ss:$16 sps:$4 sm:$0xff]  }
 0x75d   :  { %2341 = vmatprep.subr.bf16.mxu0 %v5222_v25  ;;  %2382 = vmatprep.subr.bf16.mxu1 %v5225_v32  ;;  %6221 = vst [vmem:[#allocation51_spill] sm:$0xff] %v5234_v40  ;;  %6222 = vst [vmem:[#allocation52_spill] sm:$0xff] %v5237_v59  ;;  %v5240_v25 = vld [vmem:[#allocation5 + $0x140] ss:$16 sps:$4 sm:$0xff]   ;;  %v5243_v32 = vld [vmem:[#allocation5 + $0x148] ss:$16 sps:$4 sm:$0xff]  }
 0x75e   :  { %6223 = vst [vmem:[#allocation53_spill] sm:$0xff] %v5240_v25  ;;  %6224 = vst [vmem:[#allocation54_spill] sm:$0xff] %v5243_v32 }
 0x760   :  { %2342 = vmatpush1.bf16.msra.mxu0 %v5228_v62  ;;  %2383 = vmatpush1.bf16.msra.mxu1 %v5231_v3  ;;  %v5246_v62 = vld [vmem:[#allocation5 + $0x164] ss:$16 sps:$4 sm:$0xff]   ;;  %v5249_v3 = vld [vmem:[#allocation5 + $0x16c] ss:$16 sps:$4 sm:$0xff]  }
 0x761   :  { %2343 = vmatprep.subr.bf16.mxu0 %v5234_v40  ;;  %2384 = vmatprep.subr.bf16.mxu1 %v5237_v59  ;;  %6225 = vst [vmem:[#allocation55_spill] sm:$0xff] %v5246_v62  ;;  %6226 = vst [vmem:[#allocation56_spill] sm:$0xff] %v5249_v3  ;;  %v5252_v40 = vld [vmem:[#allocation5 + $0x160] ss:$16 sps:$4 sm:$0xff]   ;;  %v5255_v59 = vld [vmem:[#allocation5 + $0x168] ss:$16 sps:$4 sm:$0xff]  }
 0x762   :  { %6227 = vst [vmem:[#allocation57_spill] sm:$0xff] %v5252_v40  ;;  %6228 = vst [vmem:[#allocation58_spill] sm:$0xff] %v5255_v59 }
 0x764   :  { %2344 = vmatpush1.bf16.msra.mxu0 %v5240_v25  ;;  %2385 = vmatpush1.bf16.msra.mxu1 %v5243_v32  ;;  %v5258_v25 = vld [vmem:[#allocation5 + $0x184] ss:$16 sps:$4 sm:$0xff]   ;;  %v5261_v32 = vld [vmem:[#allocation5 + $0x18c] ss:$16 sps:$4 sm:$0xff]  }
 0x765   :  { %2345 = vmatprep.subr.bf16.mxu0 %v5246_v62  ;;  %2386 = vmatprep.subr.bf16.mxu1 %v5249_v3  ;;  %6229 = vst [vmem:[#allocation59_spill] sm:$0xff] %v5258_v25  ;;  %6230 = vst [vmem:[#allocation60_spill] sm:$0xff] %v5261_v32  ;;  %v5264_v62 = vld [vmem:[#allocation5 + $0x180] ss:$16 sps:$4 sm:$0xff]   ;;  %v5267_v3 = vld [vmem:[#allocation5 + $0x188] ss:$16 sps:$4 sm:$0xff]  }
 0x766   :  { %6231 = vst [vmem:[#allocation61_spill] sm:$0xff] %v5264_v62  ;;  %6232 = vst [vmem:[#allocation62_spill] sm:$0xff] %v5267_v3 }
 0x768   :  { %2346 = vmatpush1.bf16.msra.mxu0 %v5252_v40  ;;  %2387 = vmatpush1.bf16.msra.mxu1 %v5255_v59  ;;  %v5270_v40 = vld [vmem:[#allocation5 + $0x1a4] ss:$16 sps:$4 sm:$0xff]   ;;  %v5273_v59 = vld [vmem:[#allocation5 + $0x1ac] ss:$16 sps:$4 sm:$0xff]  }
 0x769   :  { %2347 = vmatprep.subr.bf16.mxu0 %v5258_v25  ;;  %2388 = vmatprep.subr.bf16.mxu1 %v5261_v32  ;;  %6233 = vst [vmem:[#allocation63_spill] sm:$0xff] %v5270_v40  ;;  %6234 = vst [vmem:[#allocation64_spill] sm:$0xff] %v5273_v59  ;;  %v5276_v25 = vld [vmem:[#allocation5 + $0x1a0] ss:$16 sps:$4 sm:$0xff]   ;;  %v5279_v32 = vld [vmem:[#allocation5 + $0x1a8] ss:$16 sps:$4 sm:$0xff]  }
 0x76a   :  { %6235 = vst [vmem:[#allocation65_spill] sm:$0xff] %v5276_v25  ;;  %6236 = vst [vmem:[#allocation66_spill] sm:$0xff] %v5279_v32 }
 0x76c   :  { %2348 = vmatpush1.bf16.msra.mxu0 %v5264_v62  ;;  %2389 = vmatpush1.bf16.msra.mxu1 %v5267_v3  ;;  %v5282_v62 = vld [vmem:[#allocation5 + $0x1c4] ss:$16 sps:$4 sm:$0xff]   ;;  %v5285_v3 = vld [vmem:[#allocation5 + $0x1cc] ss:$16 sps:$4 sm:$0xff]  }
 0x76d   :  { %2349 = vmatprep.subr.bf16.mxu0 %v5270_v40  ;;  %2390 = vmatprep.subr.bf16.mxu1 %v5273_v59  ;;  %6237 = vst [vmem:[#allocation12_spill] sm:$0xff] %v5282_v62  ;;  %6238 = vst [vmem:[#allocation13_spill] sm:$0xff] %v5285_v3  ;;  %v5288_v40 = vld [vmem:[#allocation5 + $0x1c0] ss:$16 sps:$4 sm:$0xff]   ;;  %v5291_v59 = vld [vmem:[#allocation5 + $0x1c8] ss:$16 sps:$4 sm:$0xff]  }
 0x76e   :  { %6239 = vst [vmem:[#allocation72_spill] sm:$0xff] %v5288_v40  ;;  %6240 = vst [vmem:[#allocation73_spill] sm:$0xff] %v5291_v59 }
 0x770   :  { %2350 = vmatpush1.bf16.msra.mxu0 %v5276_v25  ;;  %2391 = vmatpush1.bf16.msra.mxu1 %v5279_v32  ;;  %v5294_v25 = vld [vmem:[#allocation5 + $0x1e4] ss:$16 sps:$4 sm:$0xff]   ;;  %v5297_v32 = vld [vmem:[#allocation5 + $0x1ec] ss:$16 sps:$4 sm:$0xff]  }
 0x771   :  { %2351 = vmatprep.subr.bf16.mxu0 %v5282_v62  ;;  %2392 = vmatprep.subr.bf16.mxu1 %v5285_v3  ;;  %6241 = vst [vmem:[#allocation74_spill] sm:$0xff] %v5294_v25  ;;  %6242 = vst [vmem:[#allocation75_spill] sm:$0xff] %v5297_v32  ;;  %v5300_v62 = vld [vmem:[#allocation5 + $0x1e0] ss:$16 sps:$4 sm:$0xff]   ;;  %v5303_v3 = vld [vmem:[#allocation5 + $0x1e8] ss:$16 sps:$4 sm:$0xff]  }
 0x772   :  { %6243 = vst [vmem:[#allocation17_spill] sm:$0xff] %v5300_v62  ;;  %6244 = vst [vmem:[#allocation18_spill] sm:$0xff] %v5303_v3 }
 0x774   :  { %2352 = vmatpush1.bf16.msra.mxu0 %v5288_v40  ;;  %2393 = vmatpush1.bf16.msra.mxu1 %v5291_v59 }
 0x775   :  { %2353 = vmatprep.subr.bf16.mxu0 %v5294_v25  ;;  %2394 = vmatprep.subr.bf16.mxu1 %v5297_v32 }
 0x778   :  { %2354 = vmatpush1.bf16.msra.mxu0 %v5300_v62  ;;  %2395 = vmatpush1.bf16.msra.mxu1 %v5303_v3 }
 0x779   :  { %2429 = vmatprep.subr.bf16.mxu0 %v6171_v63  ;;  %2470 = vmatprep.subr.bf16.mxu1 %v6172_v4 }
 0x7ee   :  { %v2139_v59 = vpop.f32.mrb[60].mxu0  ;;  %v2180_v40 = vpop.f32.mrb[60].mxu1 }
 0x7ef   :  { %v2140_v25 = vadd.f32 %v2139_v59, %v6173_v53  ;;  %v2141_v50 = vpop.f32.mrb[61].mxu0  ;;  %v2182_v1 = vpop.f32.mrb[61].mxu1 }
 0x7f0   :  { %v2142_v32 = vadd.f32 %v2141_v50, %v6174_v33  ;;  %v2143_v7 = vpop.f32.mrb[62].mxu0  ;;  %v2184_v13 = vpop.f32.mrb[62].mxu1  ;;  %v2183_v63 = vadd.f32 %v2182_v1, %v6175_v41  ;;  %v6246_v1 = vld [vmem:[#allocation89_spill] sm:$0xff] }
 0x7f1   :  { %v2921_v58 = vmul.f32 -1.442695, %v2140_v25  ;;  %v2144_v62 = vpop.f32.mrb[63].mxu0  ;;  %v2185_v54 = vpop.f32.mrb[63].mxu1 }
 0x7f2   :  { %v2922_v56 = vmul.f32 -1.442695, %v2142_v32 }
 0x7f3   :  { %3324 = vpow2.f32 %v2921_v58 }
 0x7f4   :  { %3326 = vpow2.f32 %v2922_v56  ;;  %v6245_v56 = vld [vmem:[#allocation88_spill] sm:$0xff] }
 0x7f5   :  { %3328 = vtanh.f32 %v2183_v63  ;;  %v6247_v63 = vld [vmem:[#allocation90_spill] sm:$0xff] }
 0x7fd   :  { %v3325_v3 = vpop.eup %3324 }
 0x7fe   :  { %v2196_v4 = vadd.f32 1.0, %v3325_v3  ;;  %v3327_v55 = vpop.eup %3326 }
 0x7ff   :  { %v2197_v59 = vadd.f32 1.0, %v3327_v55  ;;  %v3329_v53 = vpop.eup %3328  ;;  %v6248_v55 = vld [vmem:[#allocation91_spill] sm:$0xff] }
 0x800   :  { %3330 = vrcp.f32 %v2196_v4 }
 0x801   :  { %3332 = vrcp.f32 %v2197_v59 }
 0x80a   :  { %v3331_v2 = vpop.eup %3330 }
 0x80b   :  { %v2207_v50 = vmul.f32 %v3331_v2, %v3329_v53  ;;  %v3333_v7 = vpop.eup %3332 }
 0x80c   :  { %v2206_v13 = vmul.f32 %v3333_v7, %v5070_v14 }
 0x80e   :  { %v2245_v62 = vpop.f32.mrb[64].mxu0  ;;  %v2286_v54 = vpop.f32.mrb[64].mxu1  ;;  %v5312_v32 = vadd.f32 %v2207_v50, %v2206_v13  ;;  %v2181_v50 = vadd.f32 %v2180_v40, %v4352_v60 }
 0x80f   :  { %v2293_v58 = vadd.f32 %v2245_v62, %v6245_v56  ;;  %v2295_v25 = vadd.f32 %v2286_v54, %v6246_v1  ;;  %v2247_v3 = vpop.f32.mrb[65].mxu0  ;;  %v2288_v41 = vpop.f32.mrb[65].mxu1 }
 0x810   :  { %v2294_v4 = vadd.f32 %v2247_v3, %v6247_v63  ;;  %v2296_v59 = vadd.f32 %v2288_v41, %v6248_v55  ;;  %v2249_v33 = vpop.f32.mrb[66].mxu0  ;;  %v2290_v46 = vpop.f32.mrb[66].mxu1  ;;  %v2923_v7 = vmul.f32 -1.442695, %v2181_v50 }
 0x811   :  { %v2924_v53 = vmul.f32 -1.442695, %v2293_v58  ;;  %v2250_v2 = vpop.f32.mrb[67].mxu0  ;;  %v2291_v45 = vpop.f32.mrb[67].mxu1  ;;  %v2926_v13 = vmul.f32 -1.442695, %v2295_v25 }
 0x812   :  { %v2925_v14 = vmul.f32 -1.442695, %v2294_v4 }
 0x813   :  { %3334 = vpow2.f32 %v2924_v53 }
 0x814   :  { %3336 = vpow2.f32 %v2925_v14 }
 0x815   :  { %3338 = vpow2.f32 %v2923_v7 }
 0x816   :  { %3340 = vtanh.f32 %v2296_v59 }
 0x817   :  { %3342 = vpow2.f32 %v2926_v13 }
 0x81d   :  { %v3335_v62 = vpop.eup %3334 }
 0x81e   :  { %v2306_v54 = vadd.f32 1.0, %v3335_v62  ;;  %v3337_v56 = vpop.eup %3336  ;;  %v6289_v62 = vld [vmem:[#allocation59_spill] sm:$0xff] }
 0x81f   :  { %v2307_v41 = vadd.f32 1.0, %v3337_v56  ;;  %v3339_v33 = vpop.eup %3338  ;;  %v6291_v56 = vld [vmem:[#allocation61_spill] sm:$0xff] }
 0x820   :  { %3344 = vrcp.f32 %v2306_v54  ;;  %v3341_v46 = vpop.eup %3340  ;;  %v2198_v1 = vadd.f32 1.0, %v3339_v33  ;;  %v6290_v54 = vld [vmem:[#allocation60_spill] sm:$0xff]  ;;  %v6293_v33 = vld [vmem:[#allocation63_spill] sm:$0xff] }
 0x821   :  { %3346 = vrcp.f32 %v2307_v41  ;;  %v3343_v58 = vpop.eup %3342  ;;  %v6292_v41 = vld [vmem:[#allocation62_spill] sm:$0xff] }
 0x822   :  { %v2308_v40 = vadd.f32 1.0, %v3343_v58  ;;  %3348 = vtanh.f32 %v5312_v32  ;;  %v6295_v58 = vld [vmem:[#allocation65_spill] sm:$0xff] }
 0x823   :  { %3350 = vrcp.f32 %v2198_v1  ;;  %v6297_v1 = vld [vmem:[#allocation12_spill] sm:$0xff] }
 0x824   :  { %3352 = vrcp.f32 %v2308_v40  ;;  %v6300_v40 = vld [vmem:[#allocation73_spill] sm:$0xff] }
 0x82a   :  { %v3345_v45 = vpop.eup %3344 }
 0x82b   :  { %v2317_v3 = vmul.f32 %v3345_v45, %v3341_v46  ;;  %v3347_v63 = vpop.eup %3346  ;;  %v6294_v46 = vld [vmem:[#allocation64_spill] sm:$0xff]  ;;  %v6296_v45 = vld [vmem:[#allocation66_spill] sm:$0xff] }
 0x82c   :  { %v2316_v4 = vmul.f32 %v3347_v63, %v5079_v57  ;;  %v3349_v55 = vpop.eup %3348  ;;  %v6271_v57 = vld [vmem:[#allocation45_spill] sm:$0xff]  ;;  %v6299_v63 = vld [vmem:[#allocation72_spill] sm:$0xff] }
 0x82d   :  { %v3351_v59 = vpop.eup %3350 }
 0x82e   :  { %v5321_v25 = vadd.f32 %v2317_v3, %v2316_v4  ;;  %v3353_v53 = vpop.eup %3352  ;;  %v2210_v14 = vmul.f32 %v3351_v59, %v3349_v55  ;;  %v6298_v3 = vld [vmem:[#allocation13_spill] sm:$0xff]  ;;  %v6301_v4 = vld [vmem:[#allocation74_spill] sm:$0xff]  ;;  %v6302_v55 = vld [vmem:[#allocation75_spill] sm:$0xff] }
 0x82f   :  { %v6303_v59 = vld [vmem:[#allocation17_spill] sm:$0xff] }
 0x830   :  { %3354 = vtanh.f32 %v5321_v25  ;;  %v2321_v13 = vpack.c.bf16 %v2210_v14, %v2210_v14 }
 0x83a   :  { %v3355_v2 = vpop.eup %3354 }
 0x83b   :  { %v2320_v50 = vmul.f32 %v3355_v2, %v3353_v53  ;;  %v6304_v53 = vld [vmem:[#allocation18_spill] sm:$0xff] }
 0x83d   :  { %v2322_v7 = vpack.c.bf16 %v2320_v50, %v2320_v50  ;;  %v6305_v50 = vld [vmem:[#allocation14_spill] sm:$0xff] }
 0x83f   :  { %2355 = vmatprep.mubr.bf16.mxu0 %v2322_v7  ;;  %2396 = vmatprep.mubr.bf16.mxu1 %v2322_v7 }
 0x840   :  { %2356 = vmatmul.mubr.bf16.vlgmr.msra.gmra.mrb[68].mxu0 %v2321_v13  ;;  %2397 = vmatmul.mubr.bf16.vlgmr.msra.gmra.mrb[68].mxu1 %v2321_v13 }
 0x841   :  { %2430 = vmatpush1.bf16.msra.mxu0 %v4906_v23  ;;  %2471 = vmatpush1.bf16.msra.mxu1 %v4909_v8  ;;  %v6250_v23 = vld [vmem:[#allocation29_spill] sm:$0xff]  ;;  %v6251_v8 = vld [vmem:[#allocation30_spill] sm:$0xff] }
 0x842   :  { %2431 = vmatprep.subr.bf16.mxu0 %v4912_v11  ;;  %2472 = vmatprep.subr.bf16.mxu1 %v4915_v48  ;;  %v6252_v11 = vld [vmem:[#allocation31_spill] sm:$0xff]  ;;  %v6253_v48 = vld [vmem:[#allocation32_spill] sm:$0xff] }
 0x843   :  { %2461 = vmatprep.mubr.bf16.mxu0 %v5888_v0  ;;  %2502 = vmatprep.mubr.bf16.mxu1 %v5888_v0  ;;  %v6249_v0 = vld [vmem:[#allocation28_spill] sm:$0xff] }
 0x845   :  { %2432 = vmatpush1.bf16.msra.mxu0 %v4920_v22  ;;  %2473 = vmatpush1.bf16.msra.mxu1 %v4923_v19  ;;  %v6254_v22 = vld [vmem:[#allocation33_spill] sm:$0xff]  ;;  %v6255_v19 = vld [vmem:[#allocation34_spill] sm:$0xff] }
 0x846   :  { %2433 = vmatprep.subr.bf16.mxu0 %v4926_v20  ;;  %2474 = vmatprep.subr.bf16.mxu1 %v4929_v47  ;;  %v6256_v20 = vld [vmem:[#allocation35_spill] sm:$0xff]  ;;  %v6257_v47 = vld [vmem:[#allocation36_spill] sm:$0xff] }
 0x849   :  { %2434 = vmatpush1.bf16.msra.mxu0 %v4932_v38  ;;  %2475 = vmatpush1.bf16.msra.mxu1 %v4935_v27  ;;  %v6258_v38 = vld [vmem:[#allocation37_spill] sm:$0xff]  ;;  %v6259_v27 = vld [vmem:[#allocation38_spill] sm:$0xff] }
 0x84a   :  { %2435 = vmatprep.subr.bf16.mxu0 %v4938_v44  ;;  %2476 = vmatprep.subr.bf16.mxu1 %v4941_v36  ;;  %v6260_v44 = vld [vmem:[#allocation39_spill] sm:$0xff]  ;;  %v6261_v36 = vld [vmem:[#allocation40_spill] sm:$0xff] }
 0x84d   :  { %2436 = vmatpush1.bf16.msra.mxu0 %v4944_v12  ;;  %2477 = vmatpush1.bf16.msra.mxu1 %v4947_v49  ;;  %v6262_v12 = vld [vmem:[#allocation67_spill] sm:$0xff]  ;;  %v6263_v49 = vld [vmem:[#allocation68_spill] sm:$0xff] }
 0x84e   :  { %2437 = vmatprep.subr.bf16.mxu0 %v4950_v9  ;;  %2478 = vmatprep.subr.bf16.mxu1 %v6180_v30  ;;  %v6264_v9 = vld [vmem:[#allocation69_spill] sm:$0xff]  ;;  %v6272_v30 = vld [vmem:[#allocation46_spill] sm:$0xff] }
 0x851   :  { %2438 = vmatpush1.bf16.msra.mxu0 %v6181_v5  ;;  %2479 = vmatpush1.bf16.msra.mxu1 %v6182_v61  ;;  %v6273_v5 = vld [vmem:[#allocation47_spill] sm:$0xff]  ;;  %v6274_v61 = vld [vmem:[#allocation48_spill] sm:$0xff] }
 0x852   :  { %2439 = vmatprep.subr.bf16.mxu0 %v6183_v52  ;;  %2480 = vmatprep.subr.bf16.mxu1 %v6184_v24  ;;  %v6275_v52 = vld [vmem:[#allocation49_spill] sm:$0xff]  ;;  %v6276_v24 = vld [vmem:[#allocation50_spill] sm:$0xff] }
 0x855   :  { %2440 = vmatpush1.bf16.msra.mxu0 %v6185_v26  ;;  %2481 = vmatpush1.bf16.msra.mxu1 %v6186_v29  ;;  %v6277_v26 = vld [vmem:[#allocation80_spill] sm:$0xff]  ;;  %v6278_v29 = vld [vmem:[#allocation81_spill] sm:$0xff] }
 0x856   :  { %2441 = vmatprep.subr.bf16.mxu0 %v6187_v34  ;;  %2482 = vmatprep.subr.bf16.mxu1 %v6188_v35  ;;  %v6279_v34 = vld [vmem:[#allocation82_spill] sm:$0xff]  ;;  %v6280_v35 = vld [vmem:[#allocation83_spill] sm:$0xff] }
 0x859   :  { %2442 = vmatpush1.bf16.msra.mxu0 %v4980_v18  ;;  %2483 = vmatpush1.bf16.msra.mxu1 %v4983_v31  ;;  %v6268_v18 = vld [vmem:[#allocation42_spill] sm:$0xff]  ;;  %v6269_v31 = vld [vmem:[#allocation43_spill] sm:$0xff] }
 0x85a   :  { %2443 = vmatprep.subr.bf16.mxu0 %v4986_v28  ;;  %2484 = vmatprep.subr.bf16.mxu1 %v4989_v17  ;;  %v6265_v17 = vld [vmem:[#allocation70_spill] sm:$0xff]  ;;  %v6270_v28 = vld [vmem:[#allocation44_spill] sm:$0xff] }
 0x85d   :  { %2444 = vmatpush1.bf16.msra.mxu0 %v4992_v10  ;;  %2485 = vmatpush1.bf16.msra.mxu1 %v4995_v16  ;;  %v6266_v10 = vld [vmem:[#allocation71_spill] sm:$0xff]  ;;  %v6267_v16 = vld [vmem:[#allocation41_spill] sm:$0xff] }
 0x85e   :  { %2541 = vmatprep.subr.bf16.mxu0 %v5114_v21  ;;  %2582 = vmatprep.subr.bf16.mxu1 %v5117_v37  ;;  %v6281_v21 = vld [vmem:[#allocation51_spill] sm:$0xff]  ;;  %v6282_v37 = vld [vmem:[#allocation52_spill] sm:$0xff] }
 0x860   :  { %2462 = vmatmul.mubr.bf16.vlgmr.msra.gmra.mrb[72].mxu0 %v2322_v7  ;;  %2503 = vmatmul.mubr.bf16.vlgmr.msra.gmra.mrb[72].mxu1 %v2322_v7 }
 0x861   :  { %2542 = vmatpush1.bf16.msra.mxu0 %v5120_v15  ;;  %2583 = vmatpush1.bf16.msra.mxu1 %v5123_v6  ;;  %v6283_v15 = vld [vmem:[#allocation53_spill] sm:$0xff]  ;;  %v6284_v6 = vld [vmem:[#allocation54_spill] sm:$0xff] }
 0x862   :  { %2543 = vmatprep.subr.bf16.mxu0 %v5126_v39  ;;  %2584 = vmatprep.subr.bf16.mxu1 %v5129_v51  ;;  %v6285_v39 = vld [vmem:[#allocation55_spill] sm:$0xff]  ;;  %v6286_v51 = vld [vmem:[#allocation56_spill] sm:$0xff] }
 0x865   :  { %2544 = vmatpush1.bf16.msra.mxu0 %v5132_v42  ;;  %2585 = vmatpush1.bf16.msra.mxu1 %v5135_v43  ;;  %v6287_v42 = vld [vmem:[#allocation57_spill] sm:$0xff]  ;;  %v6288_v43 = vld [vmem:[#allocation58_spill] sm:$0xff] }
 0x866   :  { %2545 = vmatprep.subr.bf16.mxu0 %v6249_v0  ;;  %2586 = vmatprep.subr.bf16.mxu1 %v6250_v23  ;;  %v6306_v23 = vld [vmem:[#allocation15_spill] sm:$0xff] }
 0x869   :  { %2546 = vmatpush1.bf16.msra.mxu0 %v6251_v8  ;;  %2587 = vmatpush1.bf16.msra.mxu1 %v6252_v11 }
 0x86a   :  { %2547 = vmatprep.subr.bf16.mxu0 %v6253_v48  ;;  %2588 = vmatprep.subr.bf16.mxu1 %v6254_v22 }
 0x86d   :  { %2548 = vmatpush1.bf16.msra.mxu0 %v6255_v19  ;;  %2589 = vmatpush1.bf16.msra.mxu1 %v6256_v20 }
 0x86e   :  { %2549 = vmatprep.subr.bf16.mxu0 %v6257_v47  ;;  %2590 = vmatprep.subr.bf16.mxu1 %v6258_v38  ;;  %v6307_v38 = vld [vmem:[#allocation16_spill] sm:$0xff] }
 0x871   :  { %2550 = vmatpush1.bf16.msra.mxu0 %v6259_v27  ;;  %2591 = vmatpush1.bf16.msra.mxu1 %v6260_v44 }
 0x872   :  { %2551 = vmatprep.subr.bf16.mxu0 %v6261_v36  ;;  %2592 = vmatprep.subr.bf16.mxu1 %v6262_v12 }
 0x875   :  { %2552 = vmatpush1.bf16.msra.mxu0 %v6263_v49  ;;  %2593 = vmatpush1.bf16.msra.mxu1 %v6264_v9 }
 0x876   :  { %2553 = vmatprep.subr.bf16.mxu0 %v6265_v17  ;;  %2594 = vmatprep.subr.bf16.mxu1 %v6266_v10 }
 0x879   :  { %2554 = vmatpush1.bf16.msra.mxu0 %v6267_v16  ;;  %2595 = vmatpush1.bf16.msra.mxu1 %v6268_v18 }
 0x87a   :  { %2555 = vmatprep.subr.bf16.mxu0 %v6269_v31  ;;  %2596 = vmatprep.subr.bf16.mxu1 %v6270_v28 }
 0x87d   :  { %2556 = vmatpush1.bf16.msra.mxu0 %v6271_v57  ;;  %2597 = vmatpush1.bf16.msra.mxu1 %v6272_v30  ;;  %v6308_v30 = vld [vmem:[#allocation92_spill] sm:$0xff] }
 0x87e   :  { %2557 = vmatprep.subr.bf16.mxu0 %v6273_v5  ;;  %2598 = vmatprep.subr.bf16.mxu1 %v6274_v61  ;;  %v6309_v61 = vld [vmem:[#allocation93_spill] sm:$0xff] }
 0x881   :  { %2558 = vmatpush1.bf16.msra.mxu0 %v6275_v52  ;;  %2599 = vmatpush1.bf16.msra.mxu1 %v6276_v24 }
 0x882   :  { %2559 = vmatprep.subr.bf16.mxu0 %v6277_v26  ;;  %2600 = vmatprep.subr.bf16.mxu1 %v6278_v29  ;;  %v6310_v29 = vld [vmem:[#allocation94_spill] sm:$0xff] }
 0x885   :  { %2560 = vmatpush1.bf16.msra.mxu0 %v6279_v34  ;;  %2601 = vmatpush1.bf16.msra.mxu1 %v6280_v35  ;;  %v6311_v35 = vld [vmem:[#allocation95_spill] sm:$0xff] }
 0x886   :  { %2561 = vmatprep.subr.bf16.mxu0 %v6281_v21  ;;  %2602 = vmatprep.subr.bf16.mxu1 %v6282_v37 }
 0x889   :  { %2562 = vmatpush1.bf16.msra.mxu0 %v6283_v15  ;;  %2603 = vmatpush1.bf16.msra.mxu1 %v6284_v6 }
 0x88a   :  { %2563 = vmatprep.subr.bf16.mxu0 %v6285_v39  ;;  %2604 = vmatprep.subr.bf16.mxu1 %v6286_v51 }
 0x88d   :  { %2564 = vmatpush1.bf16.msra.mxu0 %v6287_v42  ;;  %2605 = vmatpush1.bf16.msra.mxu1 %v6288_v43 }
 0x88e   :  { %2565 = vmatprep.subr.bf16.mxu0 %v6289_v62  ;;  %2606 = vmatprep.subr.bf16.mxu1 %v6290_v54 }
 0x891   :  { %2566 = vmatpush1.bf16.msra.mxu0 %v6291_v56  ;;  %2607 = vmatpush1.bf16.msra.mxu1 %v6292_v41 }
 0x892   :  { %2567 = vmatprep.subr.bf16.mxu0 %v6293_v33  ;;  %2608 = vmatprep.subr.bf16.mxu1 %v6294_v46 }
 0x895   :  { %2568 = vmatpush1.bf16.msra.mxu0 %v6295_v58  ;;  %2609 = vmatpush1.bf16.msra.mxu1 %v6296_v45 }
 0x896   :  { %2569 = vmatprep.subr.bf16.mxu0 %v6297_v1  ;;  %2610 = vmatprep.subr.bf16.mxu1 %v6298_v3 }
 0x899   :  { %2570 = vmatpush1.bf16.msra.mxu0 %v6299_v63  ;;  %2611 = vmatpush1.bf16.msra.mxu1 %v6300_v40 }
 0x89a   :  { %2571 = vmatprep.subr.bf16.mxu0 %v6301_v4  ;;  %2612 = vmatprep.subr.bf16.mxu1 %v6302_v55 }
 0x89d   :  { %2572 = vmatpush1.bf16.msra.mxu0 %v6303_v59  ;;  %2613 = vmatpush1.bf16.msra.mxu1 %v6304_v53 }
 0x913   :  { %v2357_v2 = vpop.f32.mrb[68].mxu0  ;;  %v2398_v14 = vpop.f32.mrb[68].mxu1 }
 0x914   :  { %v2358_v7 = vadd.f32 %v2357_v2, %v6305_v50  ;;  %v2359_v13 = vpop.f32.mrb[69].mxu0  ;;  %v2400_v0 = vpop.f32.mrb[69].mxu1  ;;  %v2399_v42 = vadd.f32 %v2398_v14, %v4352_v60 }
 0x915   :  { %v2360_v8 = vadd.f32 %v2359_v13, %v6306_v23  ;;  %v2361_v11 = vpop.f32.mrb[70].mxu0  ;;  %v2402_v48 = vpop.f32.mrb[70].mxu1  ;;  %v2401_v27 = vadd.f32 %v2400_v0, %v6307_v38 }
 0x916   :  { %v2927_v22 = vmul.f32 -1.442695, %v2358_v7  ;;  %v2362_v19 = vpop.f32.mrb[71].mxu0  ;;  %v2403_v20 = vpop.f32.mrb[71].mxu1  ;;  %v2929_v43 = vmul.f32 -1.442695, %v2399_v42 }
 0x917   :  { %v2928_v47 = vmul.f32 -1.442695, %v2360_v8  ;;  %v3140_v48 = vld [vmem:[#allocation7] sm:$0xff]   ;;  %v3142_v19 = vld [vmem:[#allocation7 + $0x10] sm:$0xff]   ;;  %v3143_v20 = vld [vmem:[#allocation7 + $0x18] sm:$0xff]  }
 0x918   :  { %3356 = vpow2.f32 %v2927_v22  ;;  %v3141_v22 = vld [vmem:[#allocation7 + $0x8] sm:$0xff]  }
 0x919   :  { %3358 = vpow2.f32 %v2928_v47  ;;  %v3144_v47 = vld [vmem:[#allocation7 + $0x20] sm:$0xff]  }
 0x91a   :  { %3360 = vtanh.f32 %v2401_v27  ;;  %v3145_v27 = vld [vmem:[#allocation7 + $0x28] sm:$0xff]  }
 0x922   :  { %v3357_v44 = vpop.eup %3356 }
 0x923   :  { %v2414_v36 = vadd.f32 1.0, %v3357_v44  ;;  %v3359_v12 = vpop.eup %3358  ;;  %v3146_v44 = vld [vmem:[#allocation7 + $0x30] sm:$0xff]  }
 0x924   :  { %v2415_v49 = vadd.f32 1.0, %v3359_v12  ;;  %v3361_v9 = vpop.eup %3360 }
 0x925   :  { %3362 = vrcp.f32 %v2414_v36  ;;  %v3147_v36 = vld [vmem:[#allocation7 + $0x38] sm:$0xff]  }
 0x926   :  { %3364 = vrcp.f32 %v2415_v49 }
 0x92f   :  { %v3363_v17 = vpop.eup %3362 }
 0x930   :  { %v2425_v10 = vmul.f32 %v3363_v17, %v3361_v9  ;;  %v3365_v16 = vpop.eup %3364 }
 0x931   :  { %v2424_v18 = vmul.f32 %v3365_v16, %v5312_v32 }
 0x933   :  { %v2463_v31 = vpop.f32.mrb[72].mxu0  ;;  %v2504_v28 = vpop.f32.mrb[72].mxu1  ;;  %v5424_v57 = vadd.f32 %v2425_v10, %v2424_v18 }
 0x934   :  { %v2511_v5 = vadd.f32 %v2463_v31, %v6308_v30  ;;  %v2513_v52 = vadd.f32 %v2504_v28, %v6309_v61  ;;  %v2465_v24 = vpop.f32.mrb[73].mxu0  ;;  %v2506_v26 = vpop.f32.mrb[73].mxu1 }
 0x935   :  { %v2512_v34 = vadd.f32 %v2465_v24, %v6310_v29  ;;  %v2514_v21 = vadd.f32 %v2506_v26, %v6311_v35  ;;  %v2467_v37 = vpop.f32.mrb[74].mxu0  ;;  %v2508_v15 = vpop.f32.mrb[74].mxu1 }
 0x936   :  { %v2930_v6 = vmul.f32 -1.442695, %v2511_v5  ;;  %v2468_v39 = vpop.f32.mrb[75].mxu0  ;;  %v2509_v51 = vpop.f32.mrb[75].mxu1  ;;  %v2932_v62 = vmul.f32 -1.442695, %v2513_v52 }
 0x937   :  { %v2931_v32 = vmul.f32 -1.442695, %v2512_v34 }
 0x938   :  { %3366 = vpow2.f32 %v2930_v6 }
 0x939   :  { %3368 = vpow2.f32 %v2931_v32 }
 0x93a   :  { %3370 = vpow2.f32 %v2929_v43 }
 0x93b   :  { %3372 = vtanh.f32 %v2514_v21 }
 0x93c   :  { %3374 = vpow2.f32 %v2932_v62  ;;  %v2936_v62 = vld [vmem:[%s5460_s7] ss:$0 sm:$0xff] }
 0x942   :  { %v3367_v54 = vpop.eup %3366 }
 0x943   :  { %v2524_v56 = vadd.f32 1.0, %v3367_v54  ;;  %v3369_v41 = vpop.eup %3368 }
 0x944   :  { %v2525_v33 = vadd.f32 1.0, %v3369_v41  ;;  %v3371_v46 = vpop.eup %3370 }
 0x945   :  { %3376 = vrcp.f32 %v2524_v56  ;;  %v3373_v58 = vpop.eup %3372  ;;  %v2416_v3 = vadd.f32 1.0, %v3371_v46 }
 0x946   :  { %3378 = vrcp.f32 %v2525_v33  ;;  %v3375_v45 = vpop.eup %3374 }
 0x947   :  { %v2526_v4 = vadd.f32 1.0, %v3375_v45  ;;  %3380 = vtanh.f32 %v5424_v57 }
 0x948   :  { %3382 = vrcp.f32 %v2416_v3 }
 0x949   :  { %3384 = vrcp.f32 %v2526_v4 }
 0x94f   :  { %v3377_v1 = vpop.eup %3376 }
 0x950   :  { %v2535_v63 = vmul.f32 %v3377_v1, %v3373_v58  ;;  %v3379_v40 = vpop.eup %3378 }
 0x951   :  { %v2534_v55 = vmul.f32 %v3379_v40, %v5321_v25  ;;  %v3381_v53 = vpop.eup %3380  ;;  %v3699_v25 = vmov 0.0  }
 0x952   :  { %v3383_v2 = vpop.eup %3382  ;;  %2954 = vmatprep.subr.bf16.mxu0 %v3699_v25 }
 0x953   :  { %v2536_v59 = vadd.f32 %v2535_v63, %v2534_v55  ;;  %v3385_v14 = vpop.eup %3384  ;;  %v2428_v13 = vmul.f32 %v3383_v2, %v3381_v53 }
 0x955   :  { %3386 = vtanh.f32 %v2536_v59  ;;  %v2539_v11 = vpack.c.bf16 %v2428_v13, %v2428_v13 }
 0x95f   :  { %v3387_v7 = vpop.eup %3386 }
 0x960   :  { %v2538_v0 = vmul.f32 %v3387_v7, %v3385_v14 }
 0x962   :  { %v2540_v8 = vpack.c.bf16 %v2538_v0, %v2538_v0 }
 0x964   :  { %2573 = vmatprep.mubr.bf16.mxu0 %v2540_v8  ;;  %2614 = vmatprep.mubr.bf16.mxu1 %v2540_v8 }
 0x965   :  { %2574 = vmatmul.mubr.bf16.vlgmr.msra.gmra.mrb[76].mxu0 %v2539_v11  ;;  %2615 = vmatmul.mubr.bf16.vlgmr.msra.gmra.mrb[76].mxu1 %v2539_v11 }
 0x966   :  { %2955 = vmatpush3.bf16.msra.mxu0 %v3140_v48  ;;  %2970 = vmatprep.mubr.msk.bf16.mxu0 %vm3700_vm1, %v3699_v25 }
 0x967   :  { %2956 = vmatprep.subr.bf16.mxu0 %v3699_v25 }
 0x96a   :  { %2957 = vmatpush3.bf16.msra.mxu0 %v3141_v22 }
 0x96b   :  { %2958 = vmatprep.subr.bf16.mxu0 %v3699_v25 }
 0x96e   :  { %2959 = vmatpush3.bf16.msra.mxu0 %v3142_v19 }
 0x96f   :  { %2960 = vmatprep.subr.bf16.mxu0 %v3699_v25 }
 0x972   :  { %2961 = vmatpush3.bf16.msra.mxu0 %v3143_v20 }
 0x973   :  { %2962 = vmatprep.subr.bf16.mxu0 %v3699_v25 }
 0x976   :  { %2963 = vmatpush3.bf16.msra.mxu0 %v3144_v47 }
 0x977   :  { %2964 = vmatprep.subr.bf16.mxu0 %v3699_v25 }
 0x97a   :  { %2965 = vmatpush3.bf16.msra.mxu0 %v3145_v27 }
 0x97b   :  { %2966 = vmatprep.subr.bf16.mxu0 %v3699_v25 }
 0x97e   :  { %2967 = vmatpush3.bf16.msra.mxu0 %v3146_v44 }
 0x97f   :  { %2968 = vmatprep.subr.bf16.mxu0 %v3699_v25 }
 0x982   :  { %2969 = vmatpush3.bf16.msra.mxu0 %v3147_v36 }
 0xa38   :  { %v2575_v12 = vpop.f32.mrb[76].mxu0  ;;  %v2616_v49 = vpop.f32.mrb[76].mxu1 }
 0xa39   :  { %v2576_v9 = vadd.f32 %v2575_v12, %v6305_v50  ;;  %v2577_v17 = vpop.f32.mrb[77].mxu0  ;;  %v2618_v10 = vpop.f32.mrb[77].mxu1  ;;  %v2617_v52 = vadd.f32 %v2616_v49, %v4352_v60 }
 0xa3a   :  { %v2578_v16 = vadd.f32 %v2577_v17, %v6306_v23  ;;  %v2579_v18 = vpop.f32.mrb[78].mxu0  ;;  %v2620_v31 = vpop.f32.mrb[78].mxu1  ;;  %v2619_v24 = vadd.f32 %v2618_v10, %v6307_v38 }
 0xa3b   :  { %v2933_v28 = vmul.f32 -1.442695, %v2576_v9  ;;  %v2580_v30 = vpop.f32.mrb[79].mxu0  ;;  %v2621_v5 = vpop.f32.mrb[79].mxu1  ;;  %v2935_v26 = vmul.f32 -1.442695, %v2617_v52 }
 0xa3c   :  { %v2934_v61 = vmul.f32 -1.442695, %v2578_v16 }
 0xa3d   :  { %3388 = vpow2.f32 %v2933_v28 }
 0xa3e   :  { %3390 = vpow2.f32 %v2934_v61 }
 0xa3f   :  { %3392 = vtanh.f32 %v2619_v24 }
 0xa40   :  { %3394 = vpow2.f32 %v2935_v26 }
 0xa47   :  { %v3389_v29 = vpop.eup %3388 }
 0xa48   :  { %v2632_v34 = vadd.f32 1.0, %v3389_v29  ;;  %v3391_v50 = vpop.eup %3390 }
 0xa49   :  { %v2633_v23 = vadd.f32 1.0, %v3391_v50  ;;  %v3393_v35 = vpop.eup %3392 }
 0xa4a   :  { %3396 = vrcp.f32 %v2632_v34  ;;  %v3395_v21 = vpop.eup %3394 }
 0xa4b   :  { %3398 = vrcp.f32 %v2633_v23  ;;  %v2634_v39 = vadd.f32 1.0, %v3395_v21 }
 0xa4d   :  { %3400 = vrcp.f32 %v2634_v39 }
 0xa54   :  { %v3397_v37 = vpop.eup %3396 }
 0xa55   :  { %v2643_v15 = vmul.f32 %v3397_v37, %v3393_v35  ;;  %v3399_v6 = vpop.eup %3398 }
 0xa56   :  { %v2642_v51 = vmul.f32 %v3399_v6, %v5424_v57 }
 0xa57   :  { %v3401_v38 = vpop.eup %3400 }
 0xa58   :  { %v2644_v60 = vadd.f32 %v2643_v15, %v2642_v51 }
 0xa5a   :  { %3402 = vtanh.f32 %v2644_v60 }
 0xa64   :  { %v3403_v32 = vpop.eup %3402 }
 0xa65   :  { %v2646_v42 = vmul.f32 %v3403_v32, %v3401_v38 }
 0xa67   :  { %v2647_v43 = vpack.c.bf16 %v2646_v42, %v2646_v42 }
 0xa69   :  { %2971 = vmatmul.mubr.bf16.vlgmr.msra.gmra.mrb[80].mxu0 %v2647_v43 }
 0xb3c   :  { %v2753_v54 = vpop.f32.mrb[80].mxu0 }
 0xb3d   :  { %v2754_v56 = vadd.f32 %v2936_v62, %v2753_v54  ;;  %v2972_v41 = vpop.f32.mrb[81].mxu0 }
 0xb3e   :  { %v2756_v33 = vpop.f32.mrb[82].mxu0 }
 0xb3f   :  { %2759 = vst [vmem:[#allocation8] sm:$0xff] %v2754_v56  ;;  %v2973_v57 = vpop.f32.mrb[83].mxu0 }
 0xb40   :  { %3673 = shalt.err (!%p3670_p0)
}
 0xb41   :  { %s3674_s7 = scalar_lea.hbm %s5461_s8, 128 }
 0xb42   :  { %p3675_p1 = scmp.ne.s32.totalorder %s5461_s8, %s3674_s7  ;;  %p3678_p2 = scmp.lt.u32.totalorder %s3674_s7, %s5461_s8 }
 0xb44   :  { %p3680_p3 = pnand %p3678_p2, %p3675_p1 }
 0xb46   :  { %3683 = shalt.err (!%p3680_p3)
}
 0xb47   :  { %2769 = dma.vmem_to_hbm [thread:$0]  %s2767_s19, 128, %s5461_s8, [#allocation4]  }
 0xb48   :  { %3688 = dma.done.wait [#allocation4], 128  }
 0xb49   :  { %3689 = vsyncadd [#allocation4], 4294967168 }
 0xb4a   :  { %2773 = vsyncpa [#allocation3], 1 }
 0xb4b   :  { %2774 = vsyncpa [#allocation6], 1 }
 0xb4c   :  { %2775 = vsyncpa [#allocation4], 1 }

</bundles_post_ra>
